<compile_context>
chip_gen: v7x
topology: tpu7x:2x2x1
jax: 0.10.0
libtpu: 0.0.40
codegen_flags: <defaults>
</compile_context>

<pallas_src>
import jax
import jax.numpy as jnp
from jax.experimental import pallas as pl
from jax.experimental.pallas import tpu as pltpu

INPUT_SIZE = 3 * 64 * 64   # 12288
HIDDEN_SIZE = 128
OUTPUT_SIZE = 10


def mlp_kernel(x_ref, w1_ref, b1_ref, w2_ref, b2_ref, o_ref):
    """Fused fc1 + ReLU + fc2 for one batch tile (full feature dim in-block)."""
    # In-kernel cast (no-op if the operand already arrives bf16): the cast is
    # VMEM-local, so HBM only ever sees the operand's native dtype once.
    x = x_ref[...].astype(jnp.bfloat16)
    w1 = w1_ref[...].astype(jnp.bfloat16)
    # fc1: (tb, K) bf16 @ (K, H) bf16 -> (tb, H) f32 on the MXU.
    h = jnp.dot(x, w1, preferred_element_type=jnp.float32)
    h = jnp.maximum(h + b1_ref[...], 0.0)                       # bias + ReLU (f32)
    # fc2: bf16 operands, f32 accumulate -> single-pass MXU for the tiny tail.
    out = jnp.dot(h.astype(jnp.bfloat16), w2_ref[...].astype(jnp.bfloat16),
                  preferred_element_type=jnp.float32) + b2_ref[...]
    o_ref[...] = out.astype(o_ref.dtype)
    # NOTE: output is only O=10 lanes wide -> masked store, but total output
    # traffic is a few KB; padding to 128 lanes is not worth it here.


def simple_model_forward(x, w1, b1, w2, b2, *, tb=None):
    """y = ReLU(x @ w1 + b1) @ w2 + b2, fused in one pallas_call.

    x:  (B, K)  — any float dtype; cast to bf16 inside the kernel.
    w1: (K, H)  — pass bf16 (use prepare_params) to hit the HBM roofline.
    b1: (1, H), w2: (H, O), b2: (1, O).
    tb: batch tile.  Default = B (single grid step; best for single-TC
        v5e/v6e at small batch).  For v7x megacore / large B, pass B//2 etc.
    """
    B, K = x.shape
    H = w1.shape[1]
    O = w2.shape[1]

    if tb is None:
        tb = B                      # grid=(1,): no per-step pipeline overhead
    tb = min(tb, B)
    assert B % tb == 0, "batch must be divisible by the batch tile"
    assert tb == B or tb % 16 == 0, "batch tile must be bf16 sublane-aligned"

    grid = (B // tb,)
    return pl.pallas_call(
        mlp_kernel,
        out_shape=jax.ShapeDtypeStruct((B, O), jnp.float32),
        grid_spec=pltpu.PrefetchScalarGridSpec(
            num_scalar_prefetch=0,
            grid=grid,
            in_specs=[
                pl.BlockSpec((tb, K), lambda i: (i, 0)),   # x batch tile, full K
                pl.BlockSpec((K, H), lambda i: (0, 0)),    # w1 resident (bf16, 3 MB)
                pl.BlockSpec((1, H), lambda i: (0, 0)),    # b1 resident
                pl.BlockSpec((H, O), lambda i: (0, 0)),    # w2 resident
                pl.BlockSpec((1, O), lambda i: (0, 0)),    # b2 resident
            ],
            out_specs=pl.BlockSpec((tb, O), lambda i: (i, 0)),
        ),
        compiler_params=pltpu.CompilerParams(
            # Batch axis is independent -> both v7x TensorCores can take tiles
            # when the caller chooses tb < B.
            dimension_semantics=("parallel",),
            # Footprint here is ~8 MiB (w1 bf16 double-buffered + one f32 x
            # tile); 32 MiB leaves margin on every generation and stays within
            # v7x's 32 MiB scoped default / 64 MiB physical VMEM.
            vmem_limit_bytes=32 * 1024 * 1024,
        ),
    )(x, w1, b1, w2, b2)


def init_params(key, input_size, hidden_size, output_size):
    """Deterministic init mimicking PyTorch nn.Linear default (uniform +/- 1/sqrt(fan_in))."""
    k1, k2, k3, k4 = jax.random.split(key, 4)
    bound1 = 1.0 / jnp.sqrt(jnp.float32(input_size))
    bound2 = 1.0 / jnp.sqrt(jnp.float32(hidden_size))
    w1 = jax.random.uniform(k1, (input_size, hidden_size), jnp.float32,
                            -bound1, bound1)
    b1 = jax.random.uniform(k2, (1, hidden_size), jnp.float32, -bound1, bound1)
    w2 = jax.random.uniform(k3, (hidden_size, output_size), jnp.float32,
                            -bound2, bound2)
    b2 = jax.random.uniform(k4, (1, output_size), jnp.float32, -bound2, bound2)
    return w1, b1, w2, b2


def prepare_params(w1, w2):
    """One-time bf16 persist of the static weights (done once, not per call)."""
    return w1.astype(jnp.bfloat16), w2.astype(jnp.bfloat16)


if __name__ == "__main__":
    key = jax.random.PRNGKey(0)
    kx, kp = jax.random.split(key)

    # Small batch; model dims are fixed by the module (12288 -> 128 -> 10).
    batch = 16
    x = jax.random.normal(kx, (batch, INPUT_SIZE), jnp.float32)
    w1, b1, w2, b2 = init_params(kp, INPUT_SIZE, HIDDEN_SIZE, OUTPUT_SIZE)
    w1_bf, w2_bf = prepare_params(w1, w2)          # persisted bf16 weights

    out = simple_model_forward(x, w1_bf, b1, w2_bf, b2)
    out = jax.block_until_ready(out)
    assert out.shape == (batch, OUTPUT_SIZE)

    # Strict check against a reference that replicates the kernel's
    # quantization path (bf16 x/w1, f32 accumulate, bf16 h/w2 for fc2).
    xq = x.astype(jnp.bfloat16).astype(jnp.float32)
    w1q = w1_bf.astype(jnp.float32)
    w2q = w2_bf.astype(jnp.float32)
    hq = jnp.maximum(xq @ w1q + b1, 0.0)
    ref_q = hq.astype(jnp.bfloat16).astype(jnp.float32) @ w2q + b2
    assert jnp.allclose(out, ref_q, atol=2e-3, rtol=2e-3)

    # Loose check against the full-f32 PyTorch-equivalent forward (bounds the
    # intentional bf16 quantization error).
    ref_f32 = jnp.maximum(x @ w1 + b1, 0.0) @ w2 + b2
    assert jnp.allclose(out, ref_f32, atol=5e-2, rtol=5e-2)

    print("KERNEL_OK")
</pallas_src>

<mosaic_0001>
module attributes {stable_mosaic.version = 11 : i64} {
  func.func @mlp_kernel(%arg0: i32, %arg1: memref<16x12288xf32, #tpu.memory_space<vmem>>, %arg2: memref<12288x128xbf16, #tpu.memory_space<vmem>>, %arg3: memref<1x128xf32, #tpu.memory_space<vmem>>, %arg4: memref<128x10xbf16, #tpu.memory_space<vmem>>, %arg5: memref<1x10xf32, #tpu.memory_space<vmem>>, %arg6: memref<16x10xf32, #tpu.memory_space<vmem>>) attributes {dimension_semantics = [#tpu.dimension_semantics<parallel>], iteration_bounds = array<i64: 1>, scalar_prefetch = 0 : i64, scratch_operands = 0 : i64, tpu.core_type = #tpu.core_type<tc>, window_params = [{transform_indices = @transform_0, window_bounds = array<i64: 16, 12288>}, {pipeline_mode = #tpu.pipeline_mode<synchronous>, transform_indices = @transform_1, window_bounds = array<i64: 12288, 128>}, {pipeline_mode = #tpu.pipeline_mode<synchronous>, transform_indices = @transform_2, window_bounds = array<i64: 1, 128>}, {pipeline_mode = #tpu.pipeline_mode<synchronous>, transform_indices = @transform_3, window_bounds = array<i64: 128, 10>}, {pipeline_mode = #tpu.pipeline_mode<synchronous>, transform_indices = @transform_4, window_bounds = array<i64: 1, 10>}, {transform_indices = @transform_5, window_bounds = array<i64: 16, 10>}]} {
    %c0 = arith.constant 0 : index
    %c0_0 = arith.constant 0 : index
    %0 = vector.load %arg1[%c0, %c0_0] : memref<16x12288xf32, #tpu.memory_space<vmem>>, vector<16x12288xf32>
    %1 = arith.truncf %0 : vector<16x12288xf32> to vector<16x12288xbf16>
    %c0_1 = arith.constant 0 : index
    %c0_2 = arith.constant 0 : index
    %2 = vector.load %arg2[%c0_1, %c0_2] : memref<12288x128xbf16, #tpu.memory_space<vmem>>, vector<12288x128xbf16>
    %cst = arith.constant dense<0.000000e+00> : vector<16x128xf32>
    %3 = tpu.matmul %1, %2, %cst {dimension_numbers = #tpu.dot_dimension_numbers<[1], [0], [0], [1], [0, 0, 1, 1], [], []>} : vector<16x12288xbf16>, vector<12288x128xbf16>, vector<16x128xf32> -> vector<16x128xf32>
    %c0_3 = arith.constant 0 : index
    %c0_4 = arith.constant 0 : index
    %4 = vector.load %arg3[%c0_3, %c0_4] : memref<1x128xf32, #tpu.memory_space<vmem>>, vector<1x128xf32>
    %5 = vector.broadcast %4 : vector<1x128xf32> to vector<16x128xf32>
    %6 = arith.addf %3, %5 : vector<16x128xf32>
    %cst_5 = arith.constant 0.000000e+00 : f32
    %7 = vector.broadcast %cst_5 : f32 to vector<16x128xf32>
    %8 = arith.maximumf %6, %7 : vector<16x128xf32>
    %9 = arith.truncf %8 : vector<16x128xf32> to vector<16x128xbf16>
    %c0_6 = arith.constant 0 : index
    %c0_7 = arith.constant 0 : index
    %10 = vector.load %arg4[%c0_6, %c0_7] : memref<128x10xbf16, #tpu.memory_space<vmem>>, vector<128x10xbf16>
    %cst_8 = arith.constant dense<0.000000e+00> : vector<16x10xf32>
    %11 = tpu.matmul %9, %10, %cst_8 {dimension_numbers = #tpu.dot_dimension_numbers<[1], [0], [0], [1], [0, 0, 1, 1], [], []>} : vector<16x128xbf16>, vector<128x10xbf16>, vector<16x10xf32> -> vector<16x10xf32>
    %c0_9 = arith.constant 0 : index
    %c0_10 = arith.constant 0 : index
    %12 = vector.load %arg5[%c0_9, %c0_10] : memref<1x10xf32, #tpu.memory_space<vmem>>, vector<1x10xf32>
    %13 = vector.broadcast %12 : vector<1x10xf32> to vector<16x10xf32>
    %14 = arith.addf %11, %13 : vector<16x10xf32>
    %c0_11 = arith.constant 0 : index
    %c0_12 = arith.constant 0 : index
    %15 = vector.load %arg6[%c0_11, %c0_12] : memref<16x10xf32, #tpu.memory_space<vmem>>, vector<16x10xf32>
    tpu.vector_store %arg6[%c0_11, %c0_12], %14 {strides = array<i32>} : memref<16x10xf32, #tpu.memory_space<vmem>>, vector<16x10xf32>,
    return
  }
  func.func @transform_0(%arg0: i32) -> (i32, i32) {
    %c0_i32 = arith.constant 0 : i32
    %c0_i32_0 = arith.constant 0 : i32
    return %arg0, %c0_i32 : i32, i32
  }
  func.func @transform_1(%arg0: i32) -> (i32, i32) {
    %c0_i32 = arith.constant 0 : i32
    %c0_i32_0 = arith.constant 0 : i32
    %c0_i32_1 = arith.constant 0 : i32
    return %c0_i32, %c0_i32_0 : i32, i32
  }
  func.func @transform_2(%arg0: i32) -> (i32, i32) {
    %c0_i32 = arith.constant 0 : i32
    %c0_i32_0 = arith.constant 0 : i32
    %c0_i32_1 = arith.constant 0 : i32
    return %c0_i32, %c0_i32_0 : i32, i32
  }
  func.func @transform_3(%arg0: i32) -> (i32, i32) {
    %c0_i32 = arith.constant 0 : i32
    %c0_i32_0 = arith.constant 0 : i32
    %c0_i32_1 = arith.constant 0 : i32
    return %c0_i32, %c0_i32_0 : i32, i32
  }
  func.func @transform_4(%arg0: i32) -> (i32, i32) {
    %c0_i32 = arith.constant 0 : i32
    %c0_i32_0 = arith.constant 0 : i32
    %c0_i32_1 = arith.constant 0 : i32
    return %c0_i32, %c0_i32_0 : i32, i32
  }
  func.func @transform_5(%arg0: i32) -> (i32, i32) {
    %c0_i32 = arith.constant 0 : i32
    %c0_i32_0 = arith.constant 0 : i32
    return %arg0, %c0_i32 : i32, i32
  }
}

</mosaic_0001>

<bundles_post_ra>
// kernel: tpu_custom_call.1
= control target key start
LH: loop header
LB: loop body
LE: loop exit
PB: predicated region body
PF: predicated region fallthrough
CT: control target
= control target key end

     0   :  { %10 = vsyncpa [#allocation3], 0  ;;  %s11616_s0 = inlined_call_operand.hbm [shape: f32[16,12288], index: 0, kind: input, shape index: {}]   ;;  %s11617_s1 = inlined_call_operand.hbm [shape: bf16[12288,128], index: 1, kind: input, shape index: {}]   ;;  %s11618_s2 = inlined_call_operand.hbm [shape: f32[1,128], index: 2, kind: input, shape index: {}]   ;;  %s11619_s3 = inlined_call_operand.vmem [shape: bf16[128,10], index: 3, kind: input, shape index: {}]   ;;  %s11620_s4 = inlined_call_operand.hbm [shape: f32[1,10], index: 4, kind: input, shape index: {}]   ;;  %s11621_s5 = inlined_call_operand.hbm [shape: f32[16,10], index: 5, kind: output, shape index: {}]  }
   0x1   :  { %11 = vsyncpa [#allocation6], 0 }
   0x2   :  { %12 = vsyncpa [#allocation9], 0 }
   0x3   :  { %13 = vsyncpa [#allocation4], 0  ;;  %s11387_s18 = smov [#allocation5]   ;;  %s11269_s22 = scalar_lea.hbm %s11617_s1, 98304 }
   0x4   :  { %s31_s19 = sshll.u32 %s11387_s18, 4  ;;  %p11270_p0 = scmp.ne.s32.totalorder %s11617_s1, %s11269_s22  ;;  %s32_s19 = int_to_ptr.vmem [resolvable:$true] %s31_s19 }
   0x5   :  { %p11273_p1 = scmp.lt.u32.totalorder %s11269_s22, %s11617_s1 }
   0x7   :  { %p11275_p2 = pnand %p11273_p1, %p11270_p0 }
   0x9   :  { %11278 = shalt.err (!%p11275_p2)
}
   0xa   :  { %s11279_s27 = scalar_lea.vmem %s32_s19, 98304  ;;  %p11284_p4 = scmp.lt.s32.totalorder %s32_s19, %s32_s19 }
   0xb   :  { %p11280_p3 = scmp.ne.s32.totalorder %s32_s19, %s11279_s27  ;;  %p11285_p5 = scmp.lt.s32.totalorder %s11279_s27, %s11279_s27 }
   0xd   :  { %p11286_p6 = por %p11285_p5, %p11284_p4 }
   0xf   :  { %p11287_p7 = pnand %p11286_p6, %p11280_p3 }
  0x11   :  { %11290 = shalt.err (!%p11287_p7)
}
  0x12   :  { %s11388_s28 = smov 64   ;;  %s11389_s29 = smov 4  }
  0x13   :  { %37 = dma.hbm_to_vmem [thread:$0]  %s11617_s1, 98304, %s32_s19, [#allocation6], %s11388_s28, %s11388_s28, %s11389_s29  }
  0x14   :  { %s11390_s7 = smov [#allocation2]   ;;  %s11291_s11 = scalar_lea.hbm %s11616_s0, 24576 }
  0x15   :  { %s19_s8 = sshll.u32 %s11390_s7, 4  ;;  %p11292_p8 = scmp.ne.s32.totalorder %s11616_s0, %s11291_s11  ;;  %s20_s8 = int_to_ptr.vmem [resolvable:$true] %s19_s8 }
  0x16   :  { %p11295_p9 = scmp.lt.u32.totalorder %s11291_s11, %s11616_s0 }
  0x18   :  { %p11297_p10 = pnand %p11295_p9, %p11292_p8 }
  0x1a   :  { %11300 = shalt.err (!%p11297_p10)
}
  0x1b   :  { %s11301_s16 = scalar_lea.vmem %s20_s8, 24576  ;;  %p11306_p12 = scmp.lt.s32.totalorder %s20_s8, %s20_s8 }
  0x1c   :  { %p11302_p11 = scmp.ne.s32.totalorder %s20_s8, %s11301_s16  ;;  %p11307_p13 = scmp.lt.s32.totalorder %s11301_s16, %s11301_s16 }
  0x1e   :  { %p11308_p0 = por %p11307_p13, %p11306_p12 }
  0x20   :  { %p11309_p1 = pnand %p11308_p0, %p11302_p11 }
  0x22   :  { %11312 = shalt.err (!%p11309_p1)
}
  0x23   :  { %s11391_s1 = smov 12288   ;;  %s11392_s17 = smov 768  }
  0x24   :  { %25 = dma.hbm_to_vmem [thread:$0]  %s11616_s0, 24576, %s20_s8, [#allocation3], %s11391_s1, %s11391_s1, %s11392_s17  }
  0x25   :  { %s11393_s20 = smov [#allocation7]   ;;  %s11394_s22 = smov [#allocation8]  }
  0x26   :  { %s44_s21 = sshll.u32 %s11393_s20, 4  ;;  %s56_s23 = sshll.u32 %s11394_s22, 4  ;;  %s45_s21 = int_to_ptr.vmem [resolvable:$true] %s44_s21  ;;  %s57_s23 = int_to_ptr.vmem [resolvable:$true] %s56_s23 }
  0x27   :  { %s11313_s26 = scalar_lea.hbm %s11618_s2, 16 }
  0x28   :  { %p11314_p2 = scmp.ne.s32.totalorder %s11618_s2, %s11313_s26  ;;  %p11317_p3 = scmp.lt.u32.totalorder %s11313_s26, %s11618_s2 }
  0x2a   :  { %p11319_p4 = pnand %p11317_p3, %p11314_p2 }
  0x2c   :  { %11322 = shalt.err (!%p11319_p4)
}
  0x2d   :  { %s11323_s0 = scalar_lea.vmem %s45_s21, 16  ;;  %s11327_s6 = scalar_lea.vmem %s45_s21, 32 }
  0x2e   :  { %p11324_p5 = scmp.ne.s32.totalorder %s45_s21, %s11323_s0  ;;  %p11328_p6 = scmp.lt.s32.totalorder %s45_s21, %s45_s21 }
  0x2f   :  { %p11329_p7 = scmp.lt.s32.totalorder %s11327_s6, %s11323_s0 }
  0x31   :  { %p11330_p8 = por %p11329_p7, %p11328_p6 }
  0x33   :  { %p11331_p9 = pnand %p11330_p8, %p11324_p5 }
  0x35   :  { %11334 = shalt.err (!%p11331_p9)
}
  0x36   :  { %47 = dma.hbm_to_vmem [thread:$0]  %s11618_s2, 16, %s45_s21, [#allocation6]  }
  0x37   :  { %s11335_s11 = scalar_lea.hbm %s11620_s4, 16 }
  0x38   :  { %p11336_p10 = scmp.ne.s32.totalorder %s11620_s4, %s11335_s11  ;;  %p11339_p11 = scmp.lt.u32.totalorder %s11335_s11, %s11620_s4 }
  0x3a   :  { %p11341_p12 = pnand %p11339_p11, %p11336_p10 }
  0x3c   :  { %11344 = shalt.err (!%p11341_p12)
}
  0x3d   :  { %s11345_s16 = scalar_lea.vmem %s57_s23, 16  ;;  %s11349_s1 = scalar_lea.vmem %s57_s23, 32 }
  0x3e   :  { %p11346_p13 = scmp.ne.s32.totalorder %s57_s23, %s11345_s16  ;;  %p11350_p0 = scmp.lt.s32.totalorder %s57_s23, %s57_s23 }
  0x3f   :  { %p11351_p1 = scmp.lt.s32.totalorder %s11349_s1, %s11345_s16 }
  0x41   :  { %p11352_p2 = por %p11351_p1, %p11350_p0 }
  0x43   :  { %p11353_p3 = pnand %p11352_p2, %p11346_p13 }
  0x45   :  { %11356 = shalt.err (!%p11353_p3)
}
  0x46   :  { %59 = dma.hbm_to_vmem [thread:$0]  %s11620_s4, 16, %s57_s23, [#allocation9]  }
  0x47   :  { %11379 = dma.done.wait [#allocation3], 24576  }
  0x48   :  { %11380 = vsyncadd [#allocation3], 4294942720 }
  0x49   :  { %11381 = dma.done.wait [#allocation6], 98320  }
  0x4a   :  { %11382 = vsyncadd [#allocation6], 4294868976 }
  0x4b   :  { %11383 = dma.done.wait [#allocation9], 16  }
  0x4c   :  { %11384 = vsyncadd [#allocation9], 4294967280  ;;  %v10493_v0 = vld [vmem:[#allocation5 + $0x40] sm:$0xff]   ;;  %v10497_v4 = vld [vmem:[#allocation5 + $0x48] sm:$0xff]   ;;  %vm11396_vm0 = vmmov 0   ;;  %vm8595_vm1 = vcmask 80896  }
  0x4d   :  { %v10494_v1 = vld [vmem:[#allocation5 + $0xc0] sm:$0xff]   ;;  %9395 = vmatprep.subr.bf16.mxu0 %v10493_v0  ;;  %v10498_v5 = vld [vmem:[#allocation5 + $0xc8] sm:$0xff]   ;;  %v10501_v8 = vld [vmem:[#allocation5 + $0x50] sm:$0xff]  }
  0x4e   :  { %v10495_v2 = vld [vmem:[#allocation5] sm:$0xff]   ;;  %9417 = vmatprep.subr.bf16.mxu1 %v10494_v1  ;;  %v10499_v6 = vld [vmem:[#allocation5 + $0x8] sm:$0xff]   ;;  %v10502_v9 = vld [vmem:[#allocation5 + $0xd0] sm:$0xff]  }
  0x4f   :  { %v10496_v3 = vld [vmem:[#allocation5 + $0x80] sm:$0xff]   ;;  %9396 = vmatpush3.bf16.msra.mxu0 %v10495_v2  ;;  %v10500_v7 = vld [vmem:[#allocation5 + $0x88] sm:$0xff]   ;;  %v10503_v10 = vld [vmem:[#allocation5 + $0x10] sm:$0xff]  }
  0x50   :  { %9418 = vmatpush3.bf16.msra.mxu1 %v10496_v3  ;;  %9397 = vmatprep.subr.bf16.mxu0 %v10497_v4  ;;  %v10504_v11 = vld [vmem:[#allocation5 + $0x90] sm:$0xff]   ;;  %v10505_v12 = vld [vmem:[#allocation5 + $0x58] sm:$0xff]   ;;  %v10509_v16 = vld [vmem:[#allocation5 + $0x60] sm:$0xff]  }
  0x51   :  { %9419 = vmatprep.subr.bf16.mxu1 %v10498_v5  ;;  %v10506_v13 = vld [vmem:[#allocation5 + $0xd8] sm:$0xff]   ;;  %v10510_v17 = vld [vmem:[#allocation5 + $0xe0] sm:$0xff]   ;;  %v10513_v20 = vld [vmem:[#allocation5 + $0x68] sm:$0xff]  }
  0x52   :  { %v10507_v14 = vld [vmem:[#allocation5 + $0x18] sm:$0xff]   ;;  %v10511_v18 = vld [vmem:[#allocation5 + $0x20] sm:$0xff]   ;;  %v10514_v21 = vld [vmem:[#allocation5 + $0xe8] sm:$0xff]  }
  0x53   :  { %9398 = vmatpush3.bf16.msra.mxu0 %v10499_v6  ;;  %v10508_v15 = vld [vmem:[#allocation5 + $0x98] sm:$0xff]   ;;  %v10512_v19 = vld [vmem:[#allocation5 + $0xa0] sm:$0xff]   ;;  %v10515_v22 = vld [vmem:[#allocation5 + $0x28] sm:$0xff]  }
  0x54   :  { %9420 = vmatpush3.bf16.msra.mxu1 %v10500_v7  ;;  %9399 = vmatprep.subr.bf16.mxu0 %v10501_v8  ;;  %v10516_v23 = vld [vmem:[#allocation5 + $0xa8] sm:$0xff]   ;;  %v10517_v24 = vld [vmem:[#allocation5 + $0x70] sm:$0xff]   ;;  %v10521_v28 = vld [vmem:[#allocation5 + $0x78] sm:$0xff]  }
  0x55   :  { %9421 = vmatprep.subr.bf16.mxu1 %v10502_v9  ;;  %v10518_v25 = vld [vmem:[#allocation5 + $0xf0] sm:$0xff]   ;;  %v10522_v29 = vld [vmem:[#allocation5 + $0xf8] sm:$0xff]   ;;  %v74_v32 = vld [vmem:[#allocation2 + $0x8] sm:$0xff] }
  0x56   :  { %v10519_v26 = vld [vmem:[#allocation5 + $0x30] sm:$0xff]   ;;  %v10523_v30 = vld [vmem:[#allocation5 + $0x38] sm:$0xff]   ;;  %v170_v33 = vld [vmem:[#allocation2 + $0x308] sm:$0xff] }
  0x57   :  { %9400 = vmatpush3.bf16.msra.mxu0 %v10503_v10  ;;  %v10520_v27 = vld [vmem:[#allocation5 + $0xb0] sm:$0xff]   ;;  %v10524_v31 = vld [vmem:[#allocation5 + $0xb8] sm:$0xff]   ;;  %v266_v35 = vpack.c.bf16 %v170_v33, %v74_v32  ;;  %v73_v37 = vld [vmem:[#allocation2] sm:$0xff] }
  0x58   :  { %9422 = vmatpush3.bf16.msra.mxu1 %v10504_v11  ;;  %9401 = vmatprep.subr.bf16.mxu0 %v10505_v12  ;;  %v76_v34 = vld [vmem:[#allocation2 + $0x18] sm:$0xff]  ;;  %v169_v38 = vld [vmem:[#allocation2 + $0x300] sm:$0xff]  ;;  %v75_v41 = vld [vmem:[#allocation2 + $0x10] sm:$0xff] }
  0x59   :  { %9423 = vmatprep.subr.bf16.mxu1 %v10506_v13  ;;  %v172_v36 = vld [vmem:[#allocation2 + $0x318] sm:$0xff]  ;;  %v265_v40 = vpack.c.bf16 %v169_v38, %v73_v37  ;;  %v171_v42 = vld [vmem:[#allocation2 + $0x310] sm:$0xff]  ;;  %6544 = vmatprep.mubr.bf16.mxu0 %v266_v35  ;;  %v10525_v44 = vld [vmem:[#allocation5 + $0x140] sm:$0xff]  }
  0x5a   :  { %v268_v39 = vpack.c.bf16 %v172_v36, %v76_v34  ;;  %v267_v43 = vpack.c.bf16 %v171_v42, %v75_v41  ;;  %v10526_v45 = vld [vmem:[#allocation5 + $0x1c0] sm:$0xff]   ;;  %v10529_v48 = vld [vmem:[#allocation5 + $0x148] sm:$0xff]   ;;  %v10533_v52 = vld [vmem:[#allocation5 + $0x150] sm:$0xff]  }
  0x5b   :  { %9402 = vmatpush3.bf16.msra.mxu0 %v10507_v14  ;;  %v10527_v46 = vld [vmem:[#allocation5 + $0x100] sm:$0xff]   ;;  %v10530_v49 = vld [vmem:[#allocation5 + $0x1c8] sm:$0xff]   ;;  %v10534_v53 = vld [vmem:[#allocation5 + $0x1d0] sm:$0xff]  }
  0x5c   :  { %9424 = vmatpush3.bf16.msra.mxu1 %v10508_v15  ;;  %9403 = vmatprep.subr.bf16.mxu0 %v10509_v16  ;;  %v10528_v47 = vld [vmem:[#allocation5 + $0x180] sm:$0xff]   ;;  %v10531_v50 = vld [vmem:[#allocation5 + $0x108] sm:$0xff]   ;;  %v10535_v54 = vld [vmem:[#allocation5 + $0x110] sm:$0xff]  }
  0x5d   :  { %9425 = vmatprep.subr.bf16.mxu1 %v10510_v17  ;;  %6585 = vmatprep.mubr.bf16.mxu1 %v268_v39  ;;  %v10532_v51 = vld [vmem:[#allocation5 + $0x188] sm:$0xff]   ;;  %v10536_v55 = vld [vmem:[#allocation5 + $0x190] sm:$0xff]   ;;  %v10537_v56 = vld [vmem:[#allocation5 + $0x158] sm:$0xff]  }
  0x5e   :  { %v10538_v57 = vld [vmem:[#allocation5 + $0x1d8] sm:$0xff]   ;;  %v10541_v60 = vld [vmem:[#allocation5 + $0x160] sm:$0xff]   ;;  %v10545_v0 = vld [vmem:[#allocation5 + $0x168] sm:$0xff]  }
  0x5f   :  { %9404 = vmatpush3.bf16.msra.mxu0 %v10511_v18  ;;  %v10539_v58 = vld [vmem:[#allocation5 + $0x118] sm:$0xff]   ;;  %v10542_v61 = vld [vmem:[#allocation5 + $0x1e0] sm:$0xff]   ;;  %v10546_v1 = vld [vmem:[#allocation5 + $0x1e8] sm:$0xff]  }
  0x60   :  { %9426 = vmatpush3.bf16.msra.mxu1 %v10512_v19  ;;  %9405 = vmatprep.subr.bf16.mxu0 %v10513_v20  ;;  %v10540_v59 = vld [vmem:[#allocation5 + $0x198] sm:$0xff]   ;;  %v10543_v62 = vld [vmem:[#allocation5 + $0x120] sm:$0xff]   ;;  %v10547_v2 = vld [vmem:[#allocation5 + $0x128] sm:$0xff]  }
  0x61   :  { %9427 = vmatprep.subr.bf16.mxu1 %v10514_v21  ;;  %v10544_v63 = vld [vmem:[#allocation5 + $0x1a0] sm:$0xff]   ;;  %v10548_v3 = vld [vmem:[#allocation5 + $0x1a8] sm:$0xff]   ;;  %v10549_v4 = vld [vmem:[#allocation5 + $0x170] sm:$0xff]  }
  0x62   :  { %v10550_v5 = vld [vmem:[#allocation5 + $0x1f0] sm:$0xff]   ;;  %v10553_v8 = vld [vmem:[#allocation5 + $0x178] sm:$0xff]   ;;  %v78_v12 = vld [vmem:[#allocation2 + $0x28] sm:$0xff] }
  0x63   :  { %9406 = vmatpush3.bf16.msra.mxu0 %v10515_v22  ;;  %v10551_v6 = vld [vmem:[#allocation5 + $0x130] sm:$0xff]   ;;  %v10554_v9 = vld [vmem:[#allocation5 + $0x1f8] sm:$0xff]   ;;  %v174_v13 = vld [vmem:[#allocation2 + $0x328] sm:$0xff] }
  0x64   :  { %9428 = vmatpush3.bf16.msra.mxu1 %v10516_v23  ;;  %9407 = vmatprep.subr.bf16.mxu0 %v10517_v24  ;;  %v10552_v7 = vld [vmem:[#allocation5 + $0x1b0] sm:$0xff]   ;;  %v10555_v10 = vld [vmem:[#allocation5 + $0x138] sm:$0xff]   ;;  %v270_v16 = vpack.c.bf16 %v174_v13, %v78_v12  ;;  %v77_v18 = vld [vmem:[#allocation2 + $0x20] sm:$0xff] }
  0x65   :  { %9429 = vmatprep.subr.bf16.mxu1 %v10518_v25  ;;  %v10556_v11 = vld [vmem:[#allocation5 + $0x1b8] sm:$0xff]   ;;  %v173_v19 = vld [vmem:[#allocation2 + $0x320] sm:$0xff]  ;;  %v79_v20 = vld [vmem:[#allocation2 + $0x30] sm:$0xff] }
  0x66   :  { %v80_v14 = vld [vmem:[#allocation2 + $0x38] sm:$0xff]  ;;  %v269_v21 = vpack.c.bf16 %v173_v19, %v77_v18  ;;  %v175_v22 = vld [vmem:[#allocation2 + $0x330] sm:$0xff]  ;;  %v10557_v24 = vld [vmem:[#allocation5 + $0x240] sm:$0xff]  }
  0x67   :  { %9408 = vmatpush3.bf16.msra.mxu0 %v10519_v26  ;;  %v176_v15 = vld [vmem:[#allocation2 + $0x338] sm:$0xff]  ;;  %v271_v23 = vpack.c.bf16 %v175_v22, %v79_v20  ;;  %v10558_v25 = vld [vmem:[#allocation5 + $0x2c0] sm:$0xff]   ;;  %v10565_v32 = vld [vmem:[#allocation5 + $0x250] sm:$0xff]  }
  0x68   :  { %9430 = vmatpush3.bf16.msra.mxu1 %v10520_v27  ;;  %9409 = vmatprep.subr.bf16.mxu0 %v10521_v28  ;;  %v272_v17 = vpack.c.bf16 %v176_v15, %v80_v14  ;;  %v10559_v26 = vld [vmem:[#allocation5 + $0x200] sm:$0xff]   ;;  %v10561_v28 = vld [vmem:[#allocation5 + $0x248] sm:$0xff]   ;;  %v10566_v33 = vld [vmem:[#allocation5 + $0x2d0] sm:$0xff]  }
  0x69   :  { %9431 = vmatprep.subr.bf16.mxu1 %v10522_v29  ;;  %v10560_v27 = vld [vmem:[#allocation5 + $0x280] sm:$0xff]   ;;  %v10562_v29 = vld [vmem:[#allocation5 + $0x2c8] sm:$0xff]   ;;  %v10567_v34 = vld [vmem:[#allocation5 + $0x210] sm:$0xff]  }
  0x6a   :  { %v10568_v35 = vld [vmem:[#allocation5 + $0x290] sm:$0xff]   ;;  %v10569_v36 = vld [vmem:[#allocation5 + $0x258] sm:$0xff]   ;;  %v10574_v41 = vld [vmem:[#allocation5 + $0x2e0] sm:$0xff]  }
  0x6b   :  { %9410 = vmatpush3.bf16.msra.mxu0 %v10523_v30  ;;  %v10563_v30 = vld [vmem:[#allocation5 + $0x208] sm:$0xff]   ;;  %v10570_v37 = vld [vmem:[#allocation5 + $0x2d8] sm:$0xff]   ;;  %v10575_v42 = vld [vmem:[#allocation5 + $0x220] sm:$0xff]  }
  0x6c   :  { %9432 = vmatpush3.bf16.msra.mxu1 %v10524_v31  ;;  %9439 = vmatprep.subr.bf16.mxu0 %v10525_v44  ;;  %v10564_v31 = vld [vmem:[#allocation5 + $0x288] sm:$0xff]   ;;  %v10571_v38 = vld [vmem:[#allocation5 + $0x218] sm:$0xff]   ;;  %v10597_v12 = vld [vmem:[#allocation5 + $0x350] sm:$0xff]  }
  0x6d   :  { %9461 = vmatprep.subr.bf16.mxu1 %v10526_v45  ;;  %v10572_v39 = vld [vmem:[#allocation5 + $0x298] sm:$0xff]   ;;  %v10577_v44 = vld [vmem:[#allocation5 + $0x268] sm:$0xff]   ;;  %v10598_v13 = vld [vmem:[#allocation5 + $0x3d0] sm:$0xff]  }
  0x6e   :  { %6545 = vmatmul.mubr.bf16.vlgmr.msra.gmra.mrb[0].mxu0 %v265_v40  ;;  %v10573_v40 = vld [vmem:[#allocation5 + $0x260] sm:$0xff]   ;;  %v10578_v45 = vld [vmem:[#allocation5 + $0x2e8] sm:$0xff]   ;;  %v10599_v14 = vld [vmem:[#allocation5 + $0x310] sm:$0xff]  }
  0x6f   :  { %6586 = vmatmul.mubr.bf16.vlgmr.msra.gmra.mrb[0].mxu1 %v267_v43  ;;  %9440 = vmatpush3.bf16.msra.mxu0 %v10527_v46  ;;  %v10576_v43 = vld [vmem:[#allocation5 + $0x2a0] sm:$0xff]   ;;  %v10579_v46 = vld [vmem:[#allocation5 + $0x228] sm:$0xff]   ;;  %v10600_v15 = vld [vmem:[#allocation5 + $0x390] sm:$0xff]  }
  0x70   :  { %9462 = vmatpush3.bf16.msra.mxu1 %v10528_v47  ;;  %9441 = vmatprep.subr.bf16.mxu0 %v10529_v48  ;;  %v10580_v47 = vld [vmem:[#allocation5 + $0x2a8] sm:$0xff]   ;;  %v10581_v48 = vld [vmem:[#allocation5 + $0x270] sm:$0xff]   ;;  %v10603_v18 = vld [vmem:[#allocation5 + $0x318] sm:$0xff]  }
  0x71   :  { %9463 = vmatprep.subr.bf16.mxu1 %v10530_v49  ;;  %6626 = vmatprep.mubr.bf16.mxu0 %v270_v16  ;;  %v10582_v49 = vld [vmem:[#allocation5 + $0x2f0] sm:$0xff]   ;;  %v10601_v16 = vld [vmem:[#allocation5 + $0x358] sm:$0xff]   ;;  %v10605_v20 = vld [vmem:[#allocation5 + $0x360] sm:$0xff]  }
  0x72   :  { %6667 = vmatprep.mubr.bf16.mxu1 %v272_v17  ;;  %v10602_v17 = vld [vmem:[#allocation5 + $0x3d8] sm:$0xff]   ;;  %v10607_v22 = vld [vmem:[#allocation5 + $0x320] sm:$0xff]  }
  0x73   :  { %9442 = vmatpush3.bf16.msra.mxu0 %v10531_v50  ;;  %v10583_v50 = vld [vmem:[#allocation5 + $0x230] sm:$0xff]   ;;  %v10604_v19 = vld [vmem:[#allocation5 + $0x398] sm:$0xff]  }
  0x74   :  { %9464 = vmatpush3.bf16.msra.mxu1 %v10532_v51  ;;  %9443 = vmatprep.subr.bf16.mxu0 %v10533_v52  ;;  %v10584_v51 = vld [vmem:[#allocation5 + $0x2b0] sm:$0xff]   ;;  %v10585_v52 = vld [vmem:[#allocation5 + $0x278] sm:$0xff]  }
  0x75   :  { %9465 = vmatprep.subr.bf16.mxu1 %v10534_v53  ;;  %v10586_v53 = vld [vmem:[#allocation5 + $0x2f8] sm:$0xff]  }
  0x77   :  { %9444 = vmatpush3.bf16.msra.mxu0 %v10535_v54  ;;  %v10587_v54 = vld [vmem:[#allocation5 + $0x238] sm:$0xff]  }
  0x78   :  { %9466 = vmatpush3.bf16.msra.mxu1 %v10536_v55  ;;  %9445 = vmatprep.subr.bf16.mxu0 %v10537_v56  ;;  %v10588_v55 = vld [vmem:[#allocation5 + $0x2b8] sm:$0xff]   ;;  %v82_v56 = vld [vmem:[#allocation2 + $0x48] sm:$0xff] }
  0x79   :  { %9467 = vmatprep.subr.bf16.mxu1 %v10538_v57  ;;  %v178_v57 = vld [vmem:[#allocation2 + $0x348] sm:$0xff] }
  0x7b   :  { %9446 = vmatpush3.bf16.msra.mxu0 %v10539_v58  ;;  %v274_v58 = vpack.c.bf16 %v178_v57, %v82_v56  ;;  %v10629_v56 = vld [vmem:[#allocation5 + $0x450] sm:$0xff]  }
  0x7c   :  { %9468 = vmatpush3.bf16.msra.mxu1 %v10540_v59  ;;  %9447 = vmatprep.subr.bf16.mxu0 %v10541_v60  ;;  %v84_v59 = vld [vmem:[#allocation2 + $0x58] sm:$0xff]  ;;  %v10630_v57 = vld [vmem:[#allocation5 + $0x4d0] sm:$0xff]  }
  0x7d   :  { %9469 = vmatprep.subr.bf16.mxu1 %v10542_v61  ;;  %v180_v60 = vld [vmem:[#allocation2 + $0x358] sm:$0xff]  ;;  %v81_v61 = vld [vmem:[#allocation2 + $0x40] sm:$0xff] }
  0x7f   :  { %9448 = vmatpush3.bf16.msra.mxu0 %v10543_v62  ;;  %v276_v62 = vpack.c.bf16 %v180_v60, %v84_v59  ;;  %v10632_v59 = vld [vmem:[#allocation5 + $0x490] sm:$0xff]   ;;  %v10633_v60 = vld [vmem:[#allocation5 + $0x458] sm:$0xff]  }
  0x80   :  { %9470 = vmatpush3.bf16.msra.mxu1 %v10544_v63  ;;  %9449 = vmatprep.subr.bf16.mxu0 %v10545_v0  ;;  %v177_v63 = vld [vmem:[#allocation2 + $0x340] sm:$0xff]  ;;  %v83_v0 = vld [vmem:[#allocation2 + $0x50] sm:$0xff] }
  0x81   :  { %9471 = vmatprep.subr.bf16.mxu1 %v10546_v1  ;;  %v179_v1 = vld [vmem:[#allocation2 + $0x350] sm:$0xff] }
  0x83   :  { %9450 = vmatpush3.bf16.msra.mxu0 %v10547_v2  ;;  %v273_v2 = vpack.c.bf16 %v177_v63, %v81_v61  ;;  %v10634_v61 = vld [vmem:[#allocation5 + $0x4d8] sm:$0xff]  }
  0x84   :  { %9472 = vmatpush3.bf16.msra.mxu1 %v10548_v3  ;;  %9451 = vmatprep.subr.bf16.mxu0 %v10549_v4  ;;  %v275_v3 = vpack.c.bf16 %v179_v1, %v83_v0  ;;  %v10589_v4 = vld [vmem:[#allocation5 + $0x340] sm:$0xff]   ;;  %v10636_v63 = vld [vmem:[#allocation5 + $0x498] sm:$0xff]  }
  0x85   :  { %9473 = vmatprep.subr.bf16.mxu1 %v10550_v5  ;;  %v10590_v5 = vld [vmem:[#allocation5 + $0x3c0] sm:$0xff]  }
  0x86   :  { %v10637_v0 = vld [vmem:[#allocation5 + $0x460] sm:$0xff]  }
  0x87   :  { %9452 = vmatpush3.bf16.msra.mxu0 %v10551_v6  ;;  %v10591_v6 = vld [vmem:[#allocation5 + $0x300] sm:$0xff]  }
  0x88   :  { %9474 = vmatpush3.bf16.msra.mxu1 %v10552_v7  ;;  %9453 = vmatprep.subr.bf16.mxu0 %v10553_v8  ;;  %v10592_v7 = vld [vmem:[#allocation5 + $0x380] sm:$0xff]   ;;  %v10593_v8 = vld [vmem:[#allocation5 + $0x348] sm:$0xff]  }
  0x89   :  { %9475 = vmatprep.subr.bf16.mxu1 %v10554_v9  ;;  %v10594_v9 = vld [vmem:[#allocation5 + $0x3c8] sm:$0xff]   ;;  %v10638_v1 = vld [vmem:[#allocation5 + $0x4e0] sm:$0xff]  }
  0x8b   :  { %9454 = vmatpush3.bf16.msra.mxu0 %v10555_v10  ;;  %v10595_v10 = vld [vmem:[#allocation5 + $0x308] sm:$0xff]  }
  0x8c   :  { %9476 = vmatpush3.bf16.msra.mxu1 %v10556_v11  ;;  %9483 = vmatprep.subr.bf16.mxu0 %v10557_v24  ;;  %v10596_v11 = vld [vmem:[#allocation5 + $0x388] sm:$0xff]  }
  0x8d   :  { %9505 = vmatprep.subr.bf16.mxu1 %v10558_v25  ;;  %v10609_v24 = vld [vmem:[#allocation5 + $0x368] sm:$0xff]  }
  0x8e   :  { %6627 = vmatmul.mubr.bf16.vlgmr.msra.gmra.mrb[4].mxu0 %v269_v21  ;;  %v10606_v21 = vld [vmem:[#allocation5 + $0x3e0] sm:$0xff]   ;;  %v10610_v25 = vld [vmem:[#allocation5 + $0x3e8] sm:$0xff]  }
  0x8f   :  { %6668 = vmatmul.mubr.bf16.vlgmr.msra.gmra.mrb[4].mxu1 %v271_v23  ;;  %9484 = vmatpush3.bf16.msra.mxu0 %v10559_v26  ;;  %v10608_v23 = vld [vmem:[#allocation5 + $0x3a0] sm:$0xff]   ;;  %v10611_v26 = vld [vmem:[#allocation5 + $0x328] sm:$0xff]  }
  0x90   :  { %9506 = vmatpush3.bf16.msra.mxu1 %v10560_v27  ;;  %9485 = vmatprep.subr.bf16.mxu0 %v10561_v28  ;;  %v10612_v27 = vld [vmem:[#allocation5 + $0x3a8] sm:$0xff]   ;;  %v10613_v28 = vld [vmem:[#allocation5 + $0x370] sm:$0xff]  }
  0x91   :  { %9507 = vmatprep.subr.bf16.mxu1 %v10562_v29  ;;  %6708 = vmatprep.mubr.bf16.mxu0 %v274_v58  ;;  %v10614_v29 = vld [vmem:[#allocation5 + $0x3f0] sm:$0xff]  }
  0x92   :  { %6749 = vmatprep.mubr.bf16.mxu1 %v276_v62  ;;  %v10631_v58 = vld [vmem:[#allocation5 + $0x410] sm:$0xff]   ;;  %v10635_v62 = vld [vmem:[#allocation5 + $0x418] sm:$0xff]  }
  0x93   :  { %9486 = vmatpush3.bf16.msra.mxu0 %v10563_v30  ;;  %v10615_v30 = vld [vmem:[#allocation5 + $0x330] sm:$0xff]  }
  0x94   :  { %9508 = vmatpush3.bf16.msra.mxu1 %v10564_v31  ;;  %9487 = vmatprep.subr.bf16.mxu0 %v10565_v32  ;;  %v10616_v31 = vld [vmem:[#allocation5 + $0x3b0] sm:$0xff]   ;;  %v10617_v32 = vld [vmem:[#allocation5 + $0x378] sm:$0xff]  }
  0x95   :  { %9509 = vmatprep.subr.bf16.mxu1 %v10566_v33  ;;  %v10618_v33 = vld [vmem:[#allocation5 + $0x3f8] sm:$0xff]  }
  0x97   :  { %9488 = vmatpush3.bf16.msra.mxu0 %v10567_v34  ;;  %v10619_v34 = vld [vmem:[#allocation5 + $0x338] sm:$0xff]  }
  0x98   :  { %9510 = vmatpush3.bf16.msra.mxu1 %v10568_v35  ;;  %9489 = vmatprep.subr.bf16.mxu0 %v10569_v36  ;;  %v10620_v35 = vld [vmem:[#allocation5 + $0x3b8] sm:$0xff]   ;;  %v86_v36 = vld [vmem:[#allocation2 + $0x68] sm:$0xff] }
  0x99   :  { %9511 = vmatprep.subr.bf16.mxu1 %v10570_v37  ;;  %v182_v37 = vld [vmem:[#allocation2 + $0x368] sm:$0xff] }
  0x9b   :  { %9490 = vmatpush3.bf16.msra.mxu0 %v10571_v38  ;;  %v88_v38 = vld [vmem:[#allocation2 + $0x78] sm:$0xff] }
  0x9c   :  { %9512 = vmatpush3.bf16.msra.mxu1 %v10572_v39  ;;  %9491 = vmatprep.subr.bf16.mxu0 %v10573_v40  ;;  %v278_v39 = vpack.c.bf16 %v182_v37, %v86_v36  ;;  %v184_v40 = vld [vmem:[#allocation2 + $0x378] sm:$0xff]  ;;  %v10661_v36 = vld [vmem:[#allocation5 + $0x550] sm:$0xff]  }
  0x9d   :  { %9513 = vmatprep.subr.bf16.mxu1 %v10574_v41  ;;  %v85_v41 = vld [vmem:[#allocation2 + $0x60] sm:$0xff]  ;;  %v10662_v37 = vld [vmem:[#allocation5 + $0x5d0] sm:$0xff]  }
  0x9f   :  { %9492 = vmatpush3.bf16.msra.mxu0 %v10575_v42  ;;  %v181_v42 = vld [vmem:[#allocation2 + $0x360] sm:$0xff] }
  0xa0   :  { %9514 = vmatpush3.bf16.msra.mxu1 %v10576_v43  ;;  %9493 = vmatprep.subr.bf16.mxu0 %v10577_v44  ;;  %v280_v43 = vpack.c.bf16 %v184_v40, %v88_v38  ;;  %v277_v44 = vpack.c.bf16 %v181_v42, %v85_v41  ;;  %v10663_v38 = vld [vmem:[#allocation5 + $0x510] sm:$0xff]   ;;  %v10665_v40 = vld [vmem:[#allocation5 + $0x558] sm:$0xff]  }
  0xa1   :  { %9515 = vmatprep.subr.bf16.mxu1 %v10578_v45  ;;  %v87_v45 = vld [vmem:[#allocation2 + $0x70] sm:$0xff]  ;;  %v10666_v41 = vld [vmem:[#allocation5 + $0x5d8] sm:$0xff]  }
  0xa2   :  { %v10667_v42 = vld [vmem:[#allocation5 + $0x518] sm:$0xff]  }
  0xa3   :  { %9494 = vmatpush3.bf16.msra.mxu0 %v10579_v46  ;;  %v183_v46 = vld [vmem:[#allocation2 + $0x370] sm:$0xff] }
  0xa4   :  { %9516 = vmatpush3.bf16.msra.mxu1 %v10580_v47  ;;  %9495 = vmatprep.subr.bf16.mxu0 %v10581_v48  ;;  %v279_v47 = vpack.c.bf16 %v183_v46, %v87_v45  ;;  %v10621_v48 = vld [vmem:[#allocation5 + $0x440] sm:$0xff]  }
  0xa5   :  { %9517 = vmatprep.subr.bf16.mxu1 %v10582_v49  ;;  %v10622_v49 = vld [vmem:[#allocation5 + $0x4c0] sm:$0xff]  }
  0xa6   :  { %v10670_v45 = vld [vmem:[#allocation5 + $0x5e0] sm:$0xff]  }
  0xa7   :  { %9496 = vmatpush3.bf16.msra.mxu0 %v10583_v50  ;;  %v10623_v50 = vld [vmem:[#allocation5 + $0x400] sm:$0xff]  }
  0xa8   :  { %9518 = vmatpush3.bf16.msra.mxu1 %v10584_v51  ;;  %9497 = vmatprep.subr.bf16.mxu0 %v10585_v52  ;;  %v10624_v51 = vld [vmem:[#allocation5 + $0x480] sm:$0xff]   ;;  %v10625_v52 = vld [vmem:[#allocation5 + $0x448] sm:$0xff]  }
  0xa9   :  { %9519 = vmatprep.subr.bf16.mxu1 %v10586_v53  ;;  %v10626_v53 = vld [vmem:[#allocation5 + $0x4c8] sm:$0xff]   ;;  %v10671_v46 = vld [vmem:[#allocation5 + $0x520] sm:$0xff]  }
  0xab   :  { %9498 = vmatpush3.bf16.msra.mxu0 %v10587_v54  ;;  %v10627_v54 = vld [vmem:[#allocation5 + $0x408] sm:$0xff]  }
  0xac   :  { %9520 = vmatpush3.bf16.msra.mxu1 %v10588_v55  ;;  %9527 = vmatprep.subr.bf16.mxu0 %v10589_v4  ;;  %v10628_v55 = vld [vmem:[#allocation5 + $0x488] sm:$0xff]  }
  0xad   :  { %9549 = vmatprep.subr.bf16.mxu1 %v10590_v5  ;;  %v10641_v4 = vld [vmem:[#allocation5 + $0x468] sm:$0xff]  }
  0xae   :  { %6709 = vmatmul.mubr.bf16.vlgmr.msra.gmra.mrb[8].mxu0 %v273_v2  ;;  %v10639_v2 = vld [vmem:[#allocation5 + $0x420] sm:$0xff]   ;;  %v10642_v5 = vld [vmem:[#allocation5 + $0x4e8] sm:$0xff]  }
  0xaf   :  { %6750 = vmatmul.mubr.bf16.vlgmr.msra.gmra.mrb[8].mxu1 %v275_v3  ;;  %9528 = vmatpush3.bf16.msra.mxu0 %v10591_v6  ;;  %v10640_v3 = vld [vmem:[#allocation5 + $0x4a0] sm:$0xff]   ;;  %v10643_v6 = vld [vmem:[#allocation5 + $0x428] sm:$0xff]  }
  0xb0   :  { %9550 = vmatpush3.bf16.msra.mxu1 %v10592_v7  ;;  %9529 = vmatprep.subr.bf16.mxu0 %v10593_v8  ;;  %v10644_v7 = vld [vmem:[#allocation5 + $0x4a8] sm:$0xff]   ;;  %v10645_v8 = vld [vmem:[#allocation5 + $0x470] sm:$0xff]  }
  0xb1   :  { %9551 = vmatprep.subr.bf16.mxu1 %v10594_v9  ;;  %6790 = vmatprep.mubr.bf16.mxu0 %v278_v39  ;;  %v10646_v9 = vld [vmem:[#allocation5 + $0x4f0] sm:$0xff]  }
  0xb2   :  { %6831 = vmatprep.mubr.bf16.mxu1 %v280_v43  ;;  %v10664_v39 = vld [vmem:[#allocation5 + $0x590] sm:$0xff]   ;;  %v10668_v43 = vld [vmem:[#allocation5 + $0x598] sm:$0xff]  }
  0xb3   :  { %9530 = vmatpush3.bf16.msra.mxu0 %v10595_v10  ;;  %v10647_v10 = vld [vmem:[#allocation5 + $0x430] sm:$0xff]  }
  0xb4   :  { %9552 = vmatpush3.bf16.msra.mxu1 %v10596_v11  ;;  %9531 = vmatprep.subr.bf16.mxu0 %v10597_v12  ;;  %v10648_v11 = vld [vmem:[#allocation5 + $0x4b0] sm:$0xff]   ;;  %v10649_v12 = vld [vmem:[#allocation5 + $0x478] sm:$0xff]  }
  0xb5   :  { %9553 = vmatprep.subr.bf16.mxu1 %v10598_v13  ;;  %v10650_v13 = vld [vmem:[#allocation5 + $0x4f8] sm:$0xff]  }
  0xb7   :  { %9532 = vmatpush3.bf16.msra.mxu0 %v10599_v14  ;;  %v10651_v14 = vld [vmem:[#allocation5 + $0x438] sm:$0xff]  }
  0xb8   :  { %9554 = vmatpush3.bf16.msra.mxu1 %v10600_v15  ;;  %9533 = vmatprep.subr.bf16.mxu0 %v10601_v16  ;;  %v10652_v15 = vld [vmem:[#allocation5 + $0x4b8] sm:$0xff]   ;;  %v90_v16 = vld [vmem:[#allocation2 + $0x88] sm:$0xff] }
  0xb9   :  { %9555 = vmatprep.subr.bf16.mxu1 %v10602_v17  ;;  %v186_v17 = vld [vmem:[#allocation2 + $0x388] sm:$0xff] }
  0xbb   :  { %9534 = vmatpush3.bf16.msra.mxu0 %v10603_v18  ;;  %v92_v18 = vld [vmem:[#allocation2 + $0x98] sm:$0xff] }
  0xbc   :  { %9556 = vmatpush3.bf16.msra.mxu1 %v10604_v19  ;;  %9535 = vmatprep.subr.bf16.mxu0 %v10605_v20  ;;  %v188_v19 = vld [vmem:[#allocation2 + $0x398] sm:$0xff]  ;;  %v282_v20 = vpack.c.bf16 %v186_v17, %v90_v16  ;;  %v10693_v16 = vld [vmem:[#allocation5 + $0x650] sm:$0xff]  }
  0xbd   :  { %9557 = vmatprep.subr.bf16.mxu1 %v10606_v21  ;;  %v284_v21 = vpack.c.bf16 %v188_v19, %v92_v18  ;;  %v10694_v17 = vld [vmem:[#allocation5 + $0x6d0] sm:$0xff]  }
  0xbe   :  { %v10695_v18 = vld [vmem:[#allocation5 + $0x610] sm:$0xff]  }
  0xbf   :  { %9536 = vmatpush3.bf16.msra.mxu0 %v10607_v22  ;;  %v89_v22 = vld [vmem:[#allocation2 + $0x80] sm:$0xff]  ;;  %v10696_v19 = vld [vmem:[#allocation5 + $0x690] sm:$0xff]  }
  0xc0   :  { %9558 = vmatpush3.bf16.msra.mxu1 %v10608_v23  ;;  %9537 = vmatprep.subr.bf16.mxu0 %v10609_v24  ;;  %v185_v23 = vld [vmem:[#allocation2 + $0x380] sm:$0xff]  ;;  %v91_v24 = vld [vmem:[#allocation2 + $0x90] sm:$0xff] }
  0xc1   :  { %9559 = vmatprep.subr.bf16.mxu1 %v10610_v25  ;;  %v281_v25 = vpack.c.bf16 %v185_v23, %v89_v22  ;;  %v10699_v22 = vld [vmem:[#allocation5 + $0x618] sm:$0xff]  }
  0xc2   :  { %v10700_v23 = vld [vmem:[#allocation5 + $0x698] sm:$0xff]  }
  0xc3   :  { %9538 = vmatpush3.bf16.msra.mxu0 %v10611_v26  ;;  %v187_v26 = vld [vmem:[#allocation2 + $0x390] sm:$0xff] }
  0xc4   :  { %9560 = vmatpush3.bf16.msra.mxu1 %v10612_v27  ;;  %9539 = vmatprep.subr.bf16.mxu0 %v10613_v28  ;;  %v283_v27 = vpack.c.bf16 %v187_v26, %v91_v24  ;;  %v10653_v28 = vld [vmem:[#allocation5 + $0x540] sm:$0xff]  }
  0xc5   :  { %9561 = vmatprep.subr.bf16.mxu1 %v10614_v29  ;;  %v10654_v29 = vld [vmem:[#allocation5 + $0x5c0] sm:$0xff]  }
  0xc6   :  { %v10701_v24 = vld [vmem:[#allocation5 + $0x660] sm:$0xff]  }
  0xc7   :  { %9540 = vmatpush3.bf16.msra.mxu0 %v10615_v30  ;;  %v10655_v30 = vld [vmem:[#allocation5 + $0x500] sm:$0xff]  }
  0xc8   :  { %9562 = vmatpush3.bf16.msra.mxu1 %v10616_v31  ;;  %9541 = vmatprep.subr.bf16.mxu0 %v10617_v32  ;;  %v10656_v31 = vld [vmem:[#allocation5 + $0x580] sm:$0xff]   ;;  %v10657_v32 = vld [vmem:[#allocation5 + $0x548] sm:$0xff]  }
  0xc9   :  { %9563 = vmatprep.subr.bf16.mxu1 %v10618_v33  ;;  %v10658_v33 = vld [vmem:[#allocation5 + $0x5c8] sm:$0xff]   ;;  %v10703_v26 = vld [vmem:[#allocation5 + $0x620] sm:$0xff]  }
  0xcb   :  { %9542 = vmatpush3.bf16.msra.mxu0 %v10619_v34  ;;  %v10659_v34 = vld [vmem:[#allocation5 + $0x508] sm:$0xff]  }
  0xcc   :  { %9564 = vmatpush3.bf16.msra.mxu1 %v10620_v35  ;;  %9571 = vmatprep.subr.bf16.mxu0 %v10621_v48  ;;  %v10660_v35 = vld [vmem:[#allocation5 + $0x588] sm:$0xff]  }
  0xcd   :  { %9593 = vmatprep.subr.bf16.mxu1 %v10622_v49  ;;  %v10673_v48 = vld [vmem:[#allocation5 + $0x568] sm:$0xff]  }
  0xce   :  { %6791 = vmatmul.mubr.bf16.vlgmr.msra.gmra.mrb[12].mxu0 %v277_v44  ;;  %v10669_v44 = vld [vmem:[#allocation5 + $0x560] sm:$0xff]   ;;  %v10674_v49 = vld [vmem:[#allocation5 + $0x5e8] sm:$0xff]  }
  0xcf   :  { %6832 = vmatmul.mubr.bf16.vlgmr.msra.gmra.mrb[12].mxu1 %v279_v47  ;;  %9572 = vmatpush3.bf16.msra.mxu0 %v10623_v50  ;;  %v10672_v47 = vld [vmem:[#allocation5 + $0x5a0] sm:$0xff]   ;;  %v10675_v50 = vld [vmem:[#allocation5 + $0x528] sm:$0xff]  }
  0xd0   :  { %9594 = vmatpush3.bf16.msra.mxu1 %v10624_v51  ;;  %9573 = vmatprep.subr.bf16.mxu0 %v10625_v52  ;;  %v10676_v51 = vld [vmem:[#allocation5 + $0x5a8] sm:$0xff]   ;;  %v10677_v52 = vld [vmem:[#allocation5 + $0x570] sm:$0xff]  }
  0xd1   :  { %9595 = vmatprep.subr.bf16.mxu1 %v10626_v53  ;;  %6872 = vmatprep.mubr.bf16.mxu0 %v282_v20  ;;  %v10678_v53 = vld [vmem:[#allocation5 + $0x5f0] sm:$0xff]   ;;  %v10697_v20 = vld [vmem:[#allocation5 + $0x658] sm:$0xff]  }
  0xd2   :  { %6913 = vmatprep.mubr.bf16.mxu1 %v284_v21  ;;  %v10698_v21 = vld [vmem:[#allocation5 + $0x6d8] sm:$0xff]  }
  0xd3   :  { %9574 = vmatpush3.bf16.msra.mxu0 %v10627_v54  ;;  %v10679_v54 = vld [vmem:[#allocation5 + $0x530] sm:$0xff]  }
  0xd4   :  { %9596 = vmatpush3.bf16.msra.mxu1 %v10628_v55  ;;  %9575 = vmatprep.subr.bf16.mxu0 %v10629_v56  ;;  %v10680_v55 = vld [vmem:[#allocation5 + $0x5b0] sm:$0xff]   ;;  %v10681_v56 = vld [vmem:[#allocation5 + $0x578] sm:$0xff]  }
  0xd5   :  { %9597 = vmatprep.subr.bf16.mxu1 %v10630_v57  ;;  %v10682_v57 = vld [vmem:[#allocation5 + $0x5f8] sm:$0xff]  }
  0xd7   :  { %9576 = vmatpush3.bf16.msra.mxu0 %v10631_v58  ;;  %v10683_v58 = vld [vmem:[#allocation5 + $0x538] sm:$0xff]  }
  0xd8   :  { %9598 = vmatpush3.bf16.msra.mxu1 %v10632_v59  ;;  %9577 = vmatprep.subr.bf16.mxu0 %v10633_v60  ;;  %v10684_v59 = vld [vmem:[#allocation5 + $0x5b8] sm:$0xff]   ;;  %v94_v60 = vld [vmem:[#allocation2 + $0xa8] sm:$0xff] }
  0xd9   :  { %9599 = vmatprep.subr.bf16.mxu1 %v10634_v61  ;;  %v190_v61 = vld [vmem:[#allocation2 + $0x3a8] sm:$0xff] }
  0xdb   :  { %9578 = vmatpush3.bf16.msra.mxu0 %v10635_v62  ;;  %v286_v62 = vpack.c.bf16 %v190_v61, %v94_v60  ;;  %v10723_v60 = vld [vmem:[#allocation5 + $0x708] sm:$0xff]  }
  0xdc   :  { %9600 = vmatpush3.bf16.msra.mxu1 %v10636_v63  ;;  %9579 = vmatprep.subr.bf16.mxu0 %v10637_v0  ;;  %v96_v63 = vld [vmem:[#allocation2 + $0xb8] sm:$0xff] }
  0xdd   :  { %9601 = vmatprep.subr.bf16.mxu1 %v10638_v1  ;;  %v192_v0 = vld [vmem:[#allocation2 + $0x3b8] sm:$0xff]  ;;  %v93_v1 = vld [vmem:[#allocation2 + $0xa0] sm:$0xff] }
  0xdf   :  { %9580 = vmatpush3.bf16.msra.mxu0 %v10639_v2  ;;  %v288_v2 = vpack.c.bf16 %v192_v0, %v96_v63 }
  0xe0   :  { %9602 = vmatpush3.bf16.msra.mxu1 %v10640_v3  ;;  %9581 = vmatprep.subr.bf16.mxu0 %v10641_v4  ;;  %v189_v3 = vld [vmem:[#allocation2 + $0x3a0] sm:$0xff]  ;;  %v95_v4 = vld [vmem:[#allocation2 + $0xb0] sm:$0xff] }
  0xe1   :  { %9603 = vmatprep.subr.bf16.mxu1 %v10642_v5  ;;  %v191_v5 = vld [vmem:[#allocation2 + $0x3b0] sm:$0xff] }
  0xe3   :  { %9582 = vmatpush3.bf16.msra.mxu0 %v10643_v6  ;;  %v285_v6 = vpack.c.bf16 %v189_v3, %v93_v1  ;;  %v10725_v1 = vld [vmem:[#allocation5 + $0x750] sm:$0xff]  }
  0xe4   :  { %9604 = vmatpush3.bf16.msra.mxu1 %v10644_v7  ;;  %9583 = vmatprep.subr.bf16.mxu0 %v10645_v8  ;;  %v287_v7 = vpack.c.bf16 %v191_v5, %v95_v4  ;;  %v10685_v8 = vld [vmem:[#allocation5 + $0x640] sm:$0xff]   ;;  %v10726_v4 = vld [vmem:[#allocation5 + $0x7d0] sm:$0xff]  }
  0xe5   :  { %9605 = vmatprep.subr.bf16.mxu1 %v10646_v9  ;;  %v10686_v9 = vld [vmem:[#allocation5 + $0x6c0] sm:$0xff]  }
  0xe7   :  { %9584 = vmatpush3.bf16.msra.mxu0 %v10647_v10  ;;  %v10687_v10 = vld [vmem:[#allocation5 + $0x600] sm:$0xff]  }
  0xe8   :  { %9606 = vmatpush3.bf16.msra.mxu1 %v10648_v11  ;;  %9585 = vmatprep.subr.bf16.mxu0 %v10649_v12  ;;  %v10688_v11 = vld [vmem:[#allocation5 + $0x680] sm:$0xff]   ;;  %v10689_v12 = vld [vmem:[#allocation5 + $0x648] sm:$0xff]  }
  0xe9   :  { %9607 = vmatprep.subr.bf16.mxu1 %v10650_v13  ;;  %v10690_v13 = vld [vmem:[#allocation5 + $0x6c8] sm:$0xff]  }
  0xeb   :  { %9586 = vmatpush3.bf16.msra.mxu0 %v10651_v14  ;;  %v10691_v14 = vld [vmem:[#allocation5 + $0x608] sm:$0xff]  }
  0xec   :  { %9608 = vmatpush3.bf16.msra.mxu1 %v10652_v15  ;;  %9615 = vmatprep.subr.bf16.mxu0 %v10653_v28  ;;  %v10692_v15 = vld [vmem:[#allocation5 + $0x688] sm:$0xff]  }
  0xed   :  { %9637 = vmatprep.subr.bf16.mxu1 %v10654_v29  ;;  %v10705_v28 = vld [vmem:[#allocation5 + $0x668] sm:$0xff]  }
  0xee   :  { %6873 = vmatmul.mubr.bf16.vlgmr.msra.gmra.mrb[16].mxu0 %v281_v25  ;;  %v10702_v25 = vld [vmem:[#allocation5 + $0x6e0] sm:$0xff]   ;;  %v10706_v29 = vld [vmem:[#allocation5 + $0x6e8] sm:$0xff]  }
  0xef   :  { %6914 = vmatmul.mubr.bf16.vlgmr.msra.gmra.mrb[16].mxu1 %v283_v27  ;;  %9616 = vmatpush3.bf16.msra.mxu0 %v10655_v30  ;;  %v10704_v27 = vld [vmem:[#allocation5 + $0x6a0] sm:$0xff]   ;;  %v10707_v30 = vld [vmem:[#allocation5 + $0x628] sm:$0xff]  }
  0xf0   :  { %9638 = vmatpush3.bf16.msra.mxu1 %v10656_v31  ;;  %9617 = vmatprep.subr.bf16.mxu0 %v10657_v32  ;;  %v10708_v31 = vld [vmem:[#allocation5 + $0x6a8] sm:$0xff]   ;;  %v10709_v32 = vld [vmem:[#allocation5 + $0x670] sm:$0xff]  }
  0xf1   :  { %9639 = vmatprep.subr.bf16.mxu1 %v10658_v33  ;;  %6954 = vmatprep.mubr.bf16.mxu0 %v286_v62  ;;  %v10710_v33 = vld [vmem:[#allocation5 + $0x6f0] sm:$0xff]   ;;  %v10724_v62 = vld [vmem:[#allocation5 + $0x788] sm:$0xff]  }
  0xf2   :  { %6995 = vmatprep.mubr.bf16.mxu1 %v288_v2 }
  0xf3   :  { %9618 = vmatpush3.bf16.msra.mxu0 %v10659_v34  ;;  %v10711_v34 = vld [vmem:[#allocation5 + $0x630] sm:$0xff]  }
  0xf4   :  { %9640 = vmatpush3.bf16.msra.mxu1 %v10660_v35  ;;  %9619 = vmatprep.subr.bf16.mxu0 %v10661_v36  ;;  %v10712_v35 = vld [vmem:[#allocation5 + $0x6b0] sm:$0xff]   ;;  %v10713_v36 = vld [vmem:[#allocation5 + $0x678] sm:$0xff]  }
  0xf5   :  { %9641 = vmatprep.subr.bf16.mxu1 %v10662_v37  ;;  %v10714_v37 = vld [vmem:[#allocation5 + $0x6f8] sm:$0xff]  }
  0xf7   :  { %9620 = vmatpush3.bf16.msra.mxu0 %v10663_v38  ;;  %v10715_v38 = vld [vmem:[#allocation5 + $0x638] sm:$0xff]  }
  0xf8   :  { %9642 = vmatpush3.bf16.msra.mxu1 %v10664_v39  ;;  %9621 = vmatprep.subr.bf16.mxu0 %v10665_v40  ;;  %v10716_v39 = vld [vmem:[#allocation5 + $0x6b8] sm:$0xff]   ;;  %v98_v40 = vld [vmem:[#allocation2 + $0xc8] sm:$0xff] }
  0xf9   :  { %9643 = vmatprep.subr.bf16.mxu1 %v10666_v41  ;;  %v194_v41 = vld [vmem:[#allocation2 + $0x3c8] sm:$0xff] }
  0xfb   :  { %9622 = vmatpush3.bf16.msra.mxu0 %v10667_v42  ;;  %v100_v42 = vld [vmem:[#allocation2 + $0xd8] sm:$0xff] }
  0xfc   :  { %9644 = vmatpush3.bf16.msra.mxu1 %v10668_v43  ;;  %9623 = vmatprep.subr.bf16.mxu0 %v10669_v44  ;;  %v290_v43 = vpack.c.bf16 %v194_v41, %v98_v40  ;;  %v196_v44 = vld [vmem:[#allocation2 + $0x3d8] sm:$0xff] }
  0xfd   :  { %9645 = vmatprep.subr.bf16.mxu1 %v10670_v45  ;;  %v97_v45 = vld [vmem:[#allocation2 + $0xc0] sm:$0xff]  ;;  %v200_v41 = vld [vmem:[#allocation2 + $0x3f8] sm:$0xff] }
  0xff   :  { %9624 = vmatpush3.bf16.msra.mxu0 %v10671_v46  ;;  %v193_v46 = vld [vmem:[#allocation2 + $0x3c0] sm:$0xff] }
 0x100   :  { %9646 = vmatpush3.bf16.msra.mxu1 %v10672_v47  ;;  %9625 = vmatprep.subr.bf16.mxu0 %v10673_v48  ;;  %v292_v47 = vpack.c.bf16 %v196_v44, %v100_v42  ;;  %v289_v48 = vpack.c.bf16 %v193_v46, %v97_v45  ;;  %v101_v42 = vld [vmem:[#allocation2 + $0xe0] sm:$0xff]  ;;  %v103_v46 = vld [vmem:[#allocation2 + $0xf0] sm:$0xff] }
 0x101   :  { %9647 = vmatprep.subr.bf16.mxu1 %v10674_v49  ;;  %v99_v49 = vld [vmem:[#allocation2 + $0xd0] sm:$0xff] }
 0x103   :  { %9626 = vmatpush3.bf16.msra.mxu0 %v10675_v50  ;;  %v195_v50 = vld [vmem:[#allocation2 + $0x3d0] sm:$0xff] }
 0x104   :  { %9648 = vmatpush3.bf16.msra.mxu1 %v10676_v51  ;;  %9627 = vmatprep.subr.bf16.mxu0 %v10677_v52  ;;  %v291_v51 = vpack.c.bf16 %v195_v50, %v99_v49  ;;  %v10717_v52 = vld [vmem:[#allocation5 + $0x740] sm:$0xff]  }
 0x105   :  { %9649 = vmatprep.subr.bf16.mxu1 %v10678_v53  ;;  %v10718_v53 = vld [vmem:[#allocation5 + $0x7c0] sm:$0xff]  }
 0x106   :  { %v10749_v49 = vld [vmem:[#allocation5 + $0x840] sm:$0xff]  }
 0x107   :  { %9628 = vmatpush3.bf16.msra.mxu0 %v10679_v54  ;;  %v10719_v54 = vld [vmem:[#allocation5 + $0x700] sm:$0xff]  }
 0x108   :  { %9650 = vmatpush3.bf16.msra.mxu1 %v10680_v55  ;;  %9629 = vmatprep.subr.bf16.mxu0 %v10681_v56  ;;  %v10720_v55 = vld [vmem:[#allocation5 + $0x780] sm:$0xff]   ;;  %v10721_v56 = vld [vmem:[#allocation5 + $0x748] sm:$0xff]  }
 0x109   :  { %9651 = vmatprep.subr.bf16.mxu1 %v10682_v57  ;;  %v10750_v50 = vld [vmem:[#allocation5 + $0x8c0] sm:$0xff]  }
 0x10b   :  { %9630 = vmatpush3.bf16.msra.mxu0 %v10683_v58  ;;  %v10722_v58 = vld [vmem:[#allocation5 + $0x7c8] sm:$0xff]  }
 0x10c   :  { %9652 = vmatpush3.bf16.msra.mxu1 %v10684_v59  ;;  %9659 = vmatprep.subr.bf16.mxu0 %v10685_v8  ;;  %v10728_v8 = vld [vmem:[#allocation5 + $0x790] sm:$0xff]  }
 0x10d   :  { %9681 = vmatprep.subr.bf16.mxu1 %v10686_v9 }
 0x10e   :  { %6955 = vmatmul.mubr.bf16.vlgmr.msra.gmra.mrb[20].mxu0 %v285_v6  ;;  %v10727_v6 = vld [vmem:[#allocation5 + $0x710] sm:$0xff]  }
 0x10f   :  { %6996 = vmatmul.mubr.bf16.vlgmr.msra.gmra.mrb[20].mxu1 %v287_v7  ;;  %9660 = vmatpush3.bf16.msra.mxu0 %v10687_v10 }
 0x110   :  { %9682 = vmatpush3.bf16.msra.mxu1 %v10688_v11  ;;  %9661 = vmatprep.subr.bf16.mxu0 %v10689_v12  ;;  %v10729_v11 = vld [vmem:[#allocation5 + $0x758] sm:$0xff]  }
 0x111   :  { %9683 = vmatprep.subr.bf16.mxu1 %v10690_v13  ;;  %7036 = vmatprep.mubr.bf16.mxu0 %v290_v43  ;;  %v10730_v13 = vld [vmem:[#allocation5 + $0x7d8] sm:$0xff]   ;;  %v197_v43 = vld [vmem:[#allocation2 + $0x3e0] sm:$0xff] }
 0x112   :  { %7077 = vmatprep.mubr.bf16.mxu1 %v292_v47  ;;  %v293_v45 = vpack.c.bf16 %v197_v43, %v101_v42  ;;  %v199_v47 = vld [vmem:[#allocation2 + $0x3f0] sm:$0xff] }
 0x113   :  { %9662 = vmatpush3.bf16.msra.mxu0 %v10691_v14  ;;  %v10731_v14 = vld [vmem:[#allocation5 + $0x718] sm:$0xff]   ;;  %v203_v43 = vld [vmem:[#allocation2 + $0x410] sm:$0xff] }
 0x114   :  { %9684 = vmatpush3.bf16.msra.mxu1 %v10692_v15  ;;  %9663 = vmatprep.subr.bf16.mxu0 %v10693_v16  ;;  %v10732_v15 = vld [vmem:[#allocation5 + $0x798] sm:$0xff]   ;;  %v10733_v16 = vld [vmem:[#allocation5 + $0x760] sm:$0xff]  }
 0x115   :  { %9685 = vmatprep.subr.bf16.mxu1 %v10694_v17  ;;  %v10734_v17 = vld [vmem:[#allocation5 + $0x7e0] sm:$0xff]  }
 0x117   :  { %9664 = vmatpush3.bf16.msra.mxu0 %v10695_v18  ;;  %v10735_v18 = vld [vmem:[#allocation5 + $0x720] sm:$0xff]  }
 0x118   :  { %9686 = vmatpush3.bf16.msra.mxu1 %v10696_v19  ;;  %9665 = vmatprep.subr.bf16.mxu0 %v10697_v20  ;;  %v10736_v19 = vld [vmem:[#allocation5 + $0x7a0] sm:$0xff]  }
 0x119   :  { %9687 = vmatprep.subr.bf16.mxu1 %v10698_v21  ;;  %v8617_v20 = vld [vmem:[#allocation7] ss:$0 sm:$0xff] }
 0x11b   :  { %9666 = vmatpush3.bf16.msra.mxu0 %v10699_v22  ;;  %v10737_v22 = vld [vmem:[#allocation5 + $0x768] sm:$0xff]  }
 0x11c   :  { %9688 = vmatpush3.bf16.msra.mxu1 %v10700_v23  ;;  %9667 = vmatprep.subr.bf16.mxu0 %v10701_v24  ;;  %v10738_v24 = vld [vmem:[#allocation5 + $0x7e8] sm:$0xff]  }
 0x11d   :  { %9689 = vmatprep.subr.bf16.mxu1 %v10702_v25 }
 0x11f   :  { %9668 = vmatpush3.bf16.msra.mxu0 %v10703_v26  ;;  %v10739_v26 = vld [vmem:[#allocation5 + $0x728] sm:$0xff]  }
 0x120   :  { %9690 = vmatpush3.bf16.msra.mxu1 %v10704_v27  ;;  %9669 = vmatprep.subr.bf16.mxu0 %v10705_v28  ;;  %v10740_v28 = vld [vmem:[#allocation5 + $0x7a8] sm:$0xff]  }
 0x121   :  { %9691 = vmatprep.subr.bf16.mxu1 %v10706_v29  ;;  %v10741_v29 = vld [vmem:[#allocation5 + $0x770] sm:$0xff]  }
 0x123   :  { %9670 = vmatpush3.bf16.msra.mxu0 %v10707_v30  ;;  %v10742_v30 = vld [vmem:[#allocation5 + $0x7f0] sm:$0xff]  }
 0x124   :  { %9692 = vmatpush3.bf16.msra.mxu1 %v10708_v31  ;;  %9671 = vmatprep.subr.bf16.mxu0 %v10709_v32  ;;  %v10743_v31 = vld [vmem:[#allocation5 + $0x730] sm:$0xff]  }
 0x125   :  { %9693 = vmatprep.subr.bf16.mxu1 %v10710_v33  ;;  %v10744_v32 = vld [vmem:[#allocation5 + $0x7b0] sm:$0xff]   ;;  %v10745_v33 = vld [vmem:[#allocation5 + $0x778] sm:$0xff]  }
 0x127   :  { %9672 = vmatpush3.bf16.msra.mxu0 %v10711_v34  ;;  %v10746_v34 = vld [vmem:[#allocation5 + $0x7f8] sm:$0xff]  }
 0x128   :  { %9694 = vmatpush3.bf16.msra.mxu1 %v10712_v35  ;;  %9673 = vmatprep.subr.bf16.mxu0 %v10713_v36  ;;  %v10747_v35 = vld [vmem:[#allocation5 + $0x738] sm:$0xff]  }
 0x129   :  { %9695 = vmatprep.subr.bf16.mxu1 %v10714_v37  ;;  %v10748_v36 = vld [vmem:[#allocation5 + $0x7b8] sm:$0xff]   ;;  %v102_v37 = vld [vmem:[#allocation2 + $0xe8] sm:$0xff] }
 0x12b   :  { %9674 = vmatpush3.bf16.msra.mxu0 %v10715_v38  ;;  %v198_v38 = vld [vmem:[#allocation2 + $0x3e8] sm:$0xff] }
 0x12c   :  { %9696 = vmatpush3.bf16.msra.mxu1 %v10716_v39  ;;  %9703 = vmatprep.subr.bf16.mxu0 %v10717_v52  ;;  %v104_v39 = vld [vmem:[#allocation2 + $0xf8] sm:$0xff]  ;;  %v294_v40 = vpack.c.bf16 %v198_v38, %v102_v37  ;;  %v10752_v52 = vld [vmem:[#allocation5 + $0x880] sm:$0xff]  }
 0x12d   :  { %9725 = vmatprep.subr.bf16.mxu1 %v10718_v53  ;;  %v296_v44 = vpack.c.bf16 %v200_v41, %v104_v39  ;;  %v10753_v53 = vld [vmem:[#allocation5 + $0x848] sm:$0xff]   ;;  %v105_v39 = vld [vmem:[#allocation2 + $0x100] sm:$0xff]  ;;  %v107_v41 = vld [vmem:[#allocation2 + $0x110] sm:$0xff] }
 0x12e   :  { %7037 = vmatmul.mubr.bf16.vlgmr.msra.gmra.mrb[24].mxu0 %v289_v48  ;;  %v295_v48 = vpack.c.bf16 %v199_v47, %v103_v46  ;;  %v10782_v46 = vld [vmem:[#allocation5 + $0x9c0] sm:$0xff]  }
 0x12f   :  { %7078 = vmatmul.mubr.bf16.vlgmr.msra.gmra.mrb[24].mxu1 %v291_v51  ;;  %9704 = vmatpush3.bf16.msra.mxu0 %v10719_v54  ;;  %v10751_v51 = vld [vmem:[#allocation5 + $0x800] sm:$0xff]  }
 0x130   :  { %9726 = vmatpush3.bf16.msra.mxu1 %v10720_v55  ;;  %9705 = vmatprep.subr.bf16.mxu0 %v10721_v56  ;;  %v10754_v55 = vld [vmem:[#allocation5 + $0x8c8] sm:$0xff]   ;;  %v10783_v47 = vld [vmem:[#allocation5 + $0x900] sm:$0xff]  }
 0x131   :  { %9727 = vmatprep.subr.bf16.mxu1 %v10722_v58  ;;  %7118 = vmatprep.mubr.bf16.mxu0 %v294_v40  ;;  %v201_v40 = vld [vmem:[#allocation2 + $0x400] sm:$0xff] }
 0x132   :  { %7159 = vmatprep.mubr.bf16.mxu1 %v296_v44  ;;  %v297_v42 = vpack.c.bf16 %v201_v40, %v105_v39  ;;  %v299_v44 = vpack.c.bf16 %v203_v43, %v107_v41  ;;  %v10813_v41 = vld [vmem:[#allocation5 + $0xa40] sm:$0xff]  }
 0x133   :  { %9706 = vmatpush3.bf16.msra.mxu0 %v10723_v60  ;;  %v10815_v43 = vld [vmem:[#allocation5 + $0xa00] sm:$0xff]  }
 0x134   :  { %9728 = vmatpush3.bf16.msra.mxu1 %v10724_v62  ;;  %9707 = vmatprep.subr.bf16.mxu0 %v10725_v1  ;;  %v10757_v62 = vld [vmem:[#allocation5 + $0x850] sm:$0xff]  }
 0x135   :  { %9729 = vmatprep.subr.bf16.mxu1 %v10726_v4  ;;  %v10758_v1 = vld [vmem:[#allocation5 + $0x8d0] sm:$0xff]  }
 0x136   :  { %v10759_v4 = vld [vmem:[#allocation5 + $0x810] sm:$0xff]  }
 0x137   :  { %9708 = vmatpush3.bf16.msra.mxu0 %v10727_v6  ;;  %v10760_v6 = vld [vmem:[#allocation5 + $0x890] sm:$0xff]  }
 0x138   :  { %9730 = vmatpush3.bf16.msra.mxu1 %v10728_v8  ;;  %9709 = vmatprep.subr.bf16.mxu0 %v10729_v11 }
 0x139   :  { %9731 = vmatprep.subr.bf16.mxu1 %v10730_v13 }
 0x13b   :  { %9710 = vmatpush3.bf16.msra.mxu0 %v10731_v14  ;;  %v10763_v14 = vld [vmem:[#allocation5 + $0x818] sm:$0xff]  }
 0x13c   :  { %9732 = vmatpush3.bf16.msra.mxu1 %v10732_v15  ;;  %9711 = vmatprep.subr.bf16.mxu0 %v10733_v16  ;;  %v10764_v15 = vld [vmem:[#allocation5 + $0x898] sm:$0xff]  }
 0x13d   :  { %9733 = vmatprep.subr.bf16.mxu1 %v10734_v17  ;;  %v10765_v17 = vld [vmem:[#allocation5 + $0x860] sm:$0xff]  }
 0x13f   :  { %9712 = vmatpush3.bf16.msra.mxu0 %v10735_v18  ;;  %v10766_v18 = vld [vmem:[#allocation5 + $0x8e0] sm:$0xff]  }
 0x140   :  { %9734 = vmatpush3.bf16.msra.mxu1 %v10736_v19  ;;  %9713 = vmatprep.subr.bf16.mxu0 %v10737_v22  ;;  %v10767_v19 = vld [vmem:[#allocation5 + $0x820] sm:$0xff]   ;;  %v10770_v22 = vld [vmem:[#allocation5 + $0x8e8] sm:$0xff]  }
 0x141   :  { %v9411_v57 = vpop.f32.mrb[0].mxu0  ;;  %9735 = vmatprep.subr.bf16.mxu1 %v10738_v24  ;;  %v10772_v24 = vld [vmem:[#allocation5 + $0x8a8] sm:$0xff]  }
 0x142   :  { %v9433_v59 = vpop.f32.mrb[0].mxu1  ;;  %v9412_v61 = vpop.f32.mrb[1].mxu0 }
 0x143   :  { %v9413_v63 = vadd.f32 %v9412_v61, %v9411_v57  ;;  %v9434_v0 = vpop.f32.mrb[1].mxu1  ;;  %v9414_v3 = vpop.f32.mrb[2].mxu0  ;;  %9714 = vmatpush3.bf16.msra.mxu0 %v10739_v26  ;;  %v10755_v57 = vld [vmem:[#allocation5 + $0x808] sm:$0xff]   ;;  %v10774_v26 = vld [vmem:[#allocation5 + $0x8f0] sm:$0xff]  }
 0x144   :  { %v9435_v2 = vadd.f32 %v9434_v0, %v9433_v59  ;;  %v9436_v5 = vpop.f32.mrb[2].mxu1  ;;  %v9415_v7 = vpop.f32.mrb[3].mxu0  ;;  %9736 = vmatpush3.bf16.msra.mxu1 %v10740_v28  ;;  %9715 = vmatprep.subr.bf16.mxu0 %v10741_v29  ;;  %v10756_v59 = vld [vmem:[#allocation5 + $0x888] sm:$0xff]   ;;  %v10776_v28 = vld [vmem:[#allocation5 + $0x8b0] sm:$0xff]   ;;  %v10777_v29 = vld [vmem:[#allocation5 + $0x878] sm:$0xff]  }
 0x145   :  { %v9416_v9 = vadd.f32 %v9415_v7, %v9414_v3  ;;  %v9437_v10 = vpop.f32.mrb[3].mxu1  ;;  %v6547_v21 = vadd.f32 %v9413_v63, %v8617_v20  ;;  %9737 = vmatprep.subr.bf16.mxu1 %v10742_v30  ;;  %v10778_v30 = vld [vmem:[#allocation5 + $0x8f8] sm:$0xff]  }
 0x146   :  { %v9438_v12 = vadd.f32 %v9437_v10, %v9436_v5  ;;  %v10761_v10 = vld [vmem:[#allocation5 + $0x858] sm:$0xff]  }
 0x147   :  { %v6550_v23 = vadd.f32 %v9416_v9, %v8617_v20  ;;  %v11478_v25 = vadd.f32 %v9435_v2, %v6547_v21  ;;  %9716 = vmatpush3.bf16.msra.mxu0 %v10743_v31  ;;  %v10768_v20 = vld [vmem:[#allocation5 + $0x8a0] sm:$0xff]   ;;  %v10769_v21 = vld [vmem:[#allocation5 + $0x868] sm:$0xff]   ;;  %v10779_v31 = vld [vmem:[#allocation5 + $0x838] sm:$0xff]  }
 0x148   :  { %9738 = vmatpush3.bf16.msra.mxu1 %v10744_v32  ;;  %9717 = vmatprep.subr.bf16.mxu0 %v10745_v33  ;;  %v10780_v32 = vld [vmem:[#allocation5 + $0x8b8] sm:$0xff]   ;;  %v106_v33 = vld [vmem:[#allocation2 + $0x108] sm:$0xff] }
 0x149   :  { %v11480_v27 = vadd.f32 %v9438_v12, %v6550_v23  ;;  %9739 = vmatprep.subr.bf16.mxu1 %v10746_v34  ;;  %v10762_v12 = vld [vmem:[#allocation5 + $0x8d8] sm:$0xff]   ;;  %v10771_v23 = vld [vmem:[#allocation5 + $0x828] sm:$0xff]  }
 0x14a   :  { %v202_v34 = vld [vmem:[#allocation2 + $0x408] sm:$0xff] }
 0x14b   :  { %9718 = vmatpush3.bf16.msra.mxu0 %v10747_v35  ;;  %v108_v35 = vld [vmem:[#allocation2 + $0x118] sm:$0xff]  ;;  %v298_v37 = vpack.c.bf16 %v202_v34, %v106_v33  ;;  %v109_v34 = vld [vmem:[#allocation2 + $0x120] sm:$0xff] }
 0x14c   :  { %9740 = vmatpush3.bf16.msra.mxu1 %v10748_v36  ;;  %9747 = vmatprep.subr.bf16.mxu0 %v10749_v49  ;;  %v204_v36 = vld [vmem:[#allocation2 + $0x418] sm:$0xff]  ;;  %v10785_v49 = vld [vmem:[#allocation5 + $0x948] sm:$0xff]  }
 0x14d   :  { %9769 = vmatprep.subr.bf16.mxu1 %v10750_v50  ;;  %v300_v38 = vpack.c.bf16 %v204_v36, %v108_v35  ;;  %v208_v33 = vld [vmem:[#allocation2 + $0x438] sm:$0xff]  ;;  %v205_v36 = vld [vmem:[#allocation2 + $0x420] sm:$0xff] }
 0x14e   :  { %7119 = vmatmul.mubr.bf16.vlgmr.msra.gmra.mrb[28].mxu0 %v293_v45  ;;  %v10781_v45 = vld [vmem:[#allocation5 + $0x940] sm:$0xff]   ;;  %v301_v39 = vpack.c.bf16 %v205_v36, %v109_v34  ;;  %v115_v34 = vld [vmem:[#allocation2 + $0x150] sm:$0xff] }
 0x14f   :  { %7160 = vmatmul.mubr.bf16.vlgmr.msra.gmra.mrb[28].mxu1 %v295_v48  ;;  %9748 = vmatpush3.bf16.msra.mxu0 %v10751_v51  ;;  %v10784_v48 = vld [vmem:[#allocation5 + $0x980] sm:$0xff]   ;;  %v10786_v51 = vld [vmem:[#allocation5 + $0x9c8] sm:$0xff]  }
 0x150   :  { %9770 = vmatpush3.bf16.msra.mxu1 %v10752_v52  ;;  %9749 = vmatprep.subr.bf16.mxu0 %v10753_v53  ;;  %v10787_v53 = vld [vmem:[#allocation5 + $0x908] sm:$0xff]  }
 0x151   :  { %9771 = vmatprep.subr.bf16.mxu1 %v10754_v55  ;;  %7200 = vmatprep.mubr.bf16.mxu0 %v298_v37  ;;  %v10788_v55 = vld [vmem:[#allocation5 + $0x988] sm:$0xff]   ;;  %v111_v37 = vld [vmem:[#allocation2 + $0x130] sm:$0xff] }
 0x152   :  { %7241 = vmatprep.mubr.bf16.mxu1 %v300_v38  ;;  %v207_v38 = vld [vmem:[#allocation2 + $0x430] sm:$0xff] }
 0x153   :  { %9750 = vmatpush3.bf16.msra.mxu0 %v10755_v57  ;;  %v303_v40 = vpack.c.bf16 %v207_v38, %v111_v37  ;;  %v10845_v37 = vld [vmem:[#allocation5 + $0xb40] sm:$0xff]  }
 0x154   :  { %9772 = vmatpush3.bf16.msra.mxu1 %v10756_v59  ;;  %9751 = vmatprep.subr.bf16.mxu0 %v10757_v62  ;;  %v10846_v38 = vld [vmem:[#allocation5 + $0xbc0] sm:$0xff]  }
 0x155   :  { %9773 = vmatprep.subr.bf16.mxu1 %v10758_v1 }
 0x157   :  { %9752 = vmatpush3.bf16.msra.mxu0 %v10759_v4 }
 0x158   :  { %9774 = vmatpush3.bf16.msra.mxu1 %v10760_v6  ;;  %9753 = vmatprep.subr.bf16.mxu0 %v10761_v10  ;;  %v10793_v6 = vld [vmem:[#allocation5 + $0x958] sm:$0xff]  }
 0x159   :  { %9775 = vmatprep.subr.bf16.mxu1 %v10762_v12 }
 0x15b   :  { %9754 = vmatpush3.bf16.msra.mxu0 %v10763_v14  ;;  %v10798_v14 = vld [vmem:[#allocation5 + $0x9e0] sm:$0xff]  }
 0x15c   :  { %9776 = vmatpush3.bf16.msra.mxu1 %v10764_v15  ;;  %9755 = vmatprep.subr.bf16.mxu0 %v10765_v17  ;;  %v10799_v15 = vld [vmem:[#allocation5 + $0x920] sm:$0xff]  }
 0x15d   :  { %9777 = vmatprep.subr.bf16.mxu1 %v10766_v18  ;;  %v10800_v17 = vld [vmem:[#allocation5 + $0x9a0] sm:$0xff]   ;;  %v10801_v18 = vld [vmem:[#allocation5 + $0x968] sm:$0xff]  }
 0x15f   :  { %9756 = vmatpush3.bf16.msra.mxu0 %v10767_v19  ;;  %v10802_v19 = vld [vmem:[#allocation5 + $0x9e8] sm:$0xff]  }
 0x160   :  { %9778 = vmatpush3.bf16.msra.mxu1 %v10768_v20  ;;  %9757 = vmatprep.subr.bf16.mxu0 %v10769_v21  ;;  %v10804_v20 = vld [vmem:[#allocation5 + $0x9a8] sm:$0xff]   ;;  %v10805_v21 = vld [vmem:[#allocation5 + $0x970] sm:$0xff]  }
 0x161   :  { %v9455_v54 = vpop.f32.mrb[4].mxu0  ;;  %9779 = vmatprep.subr.bf16.mxu1 %v10770_v22  ;;  %v10806_v22 = vld [vmem:[#allocation5 + $0x9f0] sm:$0xff]  }
 0x162   :  { %v9477_v56 = vpop.f32.mrb[4].mxu1  ;;  %v9456_v58 = vpop.f32.mrb[5].mxu0 }
 0x163   :  { %v9457_v60 = vadd.f32 %v9456_v58, %v9455_v54  ;;  %v9478_v61 = vpop.f32.mrb[5].mxu1  ;;  %v9458_v0 = vpop.f32.mrb[6].mxu0  ;;  %9758 = vmatpush3.bf16.msra.mxu0 %v10771_v23  ;;  %v10789_v58 = vld [vmem:[#allocation5 + $0x950] sm:$0xff]  }
 0x164   :  { %v9479_v63 = vadd.f32 %v9478_v61, %v9477_v56  ;;  %v9480_v3 = vpop.f32.mrb[6].mxu1  ;;  %v9459_v5 = vpop.f32.mrb[7].mxu0  ;;  %9780 = vmatpush3.bf16.msra.mxu1 %v10772_v24  ;;  %v10790_v61 = vld [vmem:[#allocation5 + $0x9d0] sm:$0xff]  }
 0x165   :  { %v6629_v2 = vadd.f32 %v9457_v60, %v11478_v25  ;;  %v9460_v8 = vadd.f32 %v9459_v5, %v9458_v0  ;;  %v9481_v9 = vpop.f32.mrb[7].mxu1  ;;  %v10773_v25 = vld [vmem:[#allocation5 + $0x870] sm:$0xff]   ;;  %9781 = vmatprep.subr.bf16.mxu1 %v10774_v26  ;;  %v10810_v26 = vld [vmem:[#allocation5 + $0x9f8] sm:$0xff]  }
 0x166   :  { %v9482_v11 = vadd.f32 %v9481_v9, %v9480_v3  ;;  %9759 = vmatprep.subr.bf16.mxu0 %v10773_v25  ;;  %v10791_v0 = vld [vmem:[#allocation5 + $0x910] sm:$0xff]   ;;  %v10794_v9 = vld [vmem:[#allocation5 + $0x9d8] sm:$0xff]  }
 0x167   :  { %v11483_v7 = vadd.f32 %v9479_v63, %v6629_v2  ;;  %v6632_v13 = vadd.f32 %v9460_v8, %v11480_v27  ;;  %v10775_v27 = vld [vmem:[#allocation5 + $0x830] sm:$0xff]   ;;  %v10809_v25 = vld [vmem:[#allocation5 + $0x978] sm:$0xff]  }
 0x168   :  { %9760 = vmatpush3.bf16.msra.mxu0 %v10775_v27  ;;  %9782 = vmatpush3.bf16.msra.mxu1 %v10776_v28  ;;  %v10792_v2 = vld [vmem:[#allocation5 + $0x990] sm:$0xff]   ;;  %v10811_v27 = vld [vmem:[#allocation5 + $0x938] sm:$0xff]  }
 0x169   :  { %v11486_v16 = vadd.f32 %v9482_v11, %v6632_v13  ;;  %9761 = vmatprep.subr.bf16.mxu0 %v10777_v29  ;;  %9783 = vmatprep.subr.bf16.mxu1 %v10778_v30  ;;  %v10795_v11 = vld [vmem:[#allocation5 + $0x918] sm:$0xff]   ;;  %v10797_v13 = vld [vmem:[#allocation5 + $0x960] sm:$0xff]   ;;  %v10807_v23 = vld [vmem:[#allocation5 + $0x930] sm:$0xff]  }
 0x16a   :  { %v10808_v24 = vld [vmem:[#allocation5 + $0x9b0] sm:$0xff]   ;;  %v10812_v28 = vld [vmem:[#allocation5 + $0x9b8] sm:$0xff]   ;;  %v110_v29 = vld [vmem:[#allocation2 + $0x128] sm:$0xff] }
 0x16b   :  { %v206_v30 = vld [vmem:[#allocation2 + $0x428] sm:$0xff] }
 0x16c   :  { %9762 = vmatpush3.bf16.msra.mxu0 %v10779_v31  ;;  %9784 = vmatpush3.bf16.msra.mxu1 %v10780_v32  ;;  %v302_v31 = vpack.c.bf16 %v206_v30, %v110_v29  ;;  %v112_v32 = vld [vmem:[#allocation2 + $0x138] sm:$0xff]  ;;  %v113_v30 = vld [vmem:[#allocation2 + $0x140] sm:$0xff] }
 0x16d   :  { %9791 = vmatprep.subr.bf16.mxu0 %v10781_v45  ;;  %9813 = vmatprep.subr.bf16.mxu1 %v10782_v46  ;;  %v304_v35 = vpack.c.bf16 %v208_v33, %v112_v32  ;;  %v10817_v45 = vld [vmem:[#allocation5 + $0xa48] sm:$0xff]   ;;  %v212_v29 = vld [vmem:[#allocation2 + $0x458] sm:$0xff] }
 0x16f   :  { %7201 = vmatmul.mubr.bf16.vlgmr.msra.gmra.mrb[32].mxu0 %v297_v42  ;;  %7242 = vmatmul.mubr.bf16.vlgmr.msra.gmra.mrb[32].mxu1 %v299_v44  ;;  %v10814_v42 = vld [vmem:[#allocation5 + $0xac0] sm:$0xff]  }
 0x170   :  { %9792 = vmatpush3.bf16.msra.mxu0 %v10783_v47  ;;  %9814 = vmatpush3.bf16.msra.mxu1 %v10784_v48  ;;  %v10816_v44 = vld [vmem:[#allocation5 + $0xa80] sm:$0xff]   ;;  %v10818_v47 = vld [vmem:[#allocation5 + $0xac8] sm:$0xff]  }
 0x171   :  { %9793 = vmatprep.subr.bf16.mxu0 %v10785_v49  ;;  %9815 = vmatprep.subr.bf16.mxu1 %v10786_v51  ;;  %v10819_v49 = vld [vmem:[#allocation5 + $0xa08] sm:$0xff]  }
 0x172   :  { %7282 = vmatprep.mubr.bf16.mxu0 %v302_v31  ;;  %7323 = vmatprep.mubr.bf16.mxu1 %v304_v35  ;;  %v10820_v51 = vld [vmem:[#allocation5 + $0xa88] sm:$0xff]   ;;  %v209_v31 = vld [vmem:[#allocation2 + $0x440] sm:$0xff]  ;;  %v211_v35 = vld [vmem:[#allocation2 + $0x450] sm:$0xff] }
 0x173   :  { %v305_v33 = vpack.c.bf16 %v209_v31, %v113_v30  ;;  %v307_v36 = vpack.c.bf16 %v211_v35, %v115_v34  ;;  %v215_v31 = vld [vmem:[#allocation2 + $0x470] sm:$0xff]  ;;  %v10878_v34 = vld [vmem:[#allocation5 + $0xcc0] sm:$0xff]  }
 0x174   :  { %9794 = vmatpush3.bf16.msra.mxu0 %v10787_v53  ;;  %9816 = vmatpush3.bf16.msra.mxu1 %v10788_v55  ;;  %v10879_v35 = vld [vmem:[#allocation5 + $0xc00] sm:$0xff]  }
 0x175   :  { %9795 = vmatprep.subr.bf16.mxu0 %v10789_v58  ;;  %9817 = vmatprep.subr.bf16.mxu1 %v10790_v61 }
 0x178   :  { %9796 = vmatpush3.bf16.msra.mxu0 %v10791_v0  ;;  %9818 = vmatpush3.bf16.msra.mxu1 %v10792_v2  ;;  %v10825_v2 = vld [vmem:[#allocation5 + $0xa58] sm:$0xff]  }
 0x179   :  { %9797 = vmatprep.subr.bf16.mxu0 %v10793_v6  ;;  %9819 = vmatprep.subr.bf16.mxu1 %v10794_v9 }
 0x17c   :  { %9798 = vmatpush3.bf16.msra.mxu0 %v10795_v11  ;;  %v10830_v11 = vld [vmem:[#allocation5 + $0xae0] sm:$0xff]  }
 0x17d   :  { %9799 = vmatprep.subr.bf16.mxu0 %v10797_v13  ;;  %v10832_v13 = vld [vmem:[#allocation5 + $0xaa0] sm:$0xff]  }
 0x180   :  { %9800 = vmatpush3.bf16.msra.mxu0 %v10799_v15  ;;  %v10834_v15 = vld [vmem:[#allocation5 + $0xae8] sm:$0xff]  }
 0x181   :  { %v9499_v50 = vpop.f32.mrb[8].mxu0  ;;  %9801 = vmatprep.subr.bf16.mxu0 %v10801_v18  ;;  %v10837_v18 = vld [vmem:[#allocation5 + $0xa70] sm:$0xff]  }
 0x182   :  { %v9521_v52 = vpop.f32.mrb[8].mxu1  ;;  %v9500_v54 = vpop.f32.mrb[9].mxu0 }
 0x183   :  { %v9501_v56 = vadd.f32 %v9500_v54, %v9499_v50  ;;  %v9522_v57 = vpop.f32.mrb[9].mxu1  ;;  %v9502_v60 = vpop.f32.mrb[10].mxu0  ;;  %v10821_v54 = vld [vmem:[#allocation5 + $0xa50] sm:$0xff]  }
 0x184   :  { %v9523_v59 = vadd.f32 %v9522_v57, %v9521_v52  ;;  %v9524_v63 = vpop.f32.mrb[10].mxu1  ;;  %v9503_v1 = vpop.f32.mrb[11].mxu0  ;;  %v10822_v57 = vld [vmem:[#allocation5 + $0xad0] sm:$0xff]  }
 0x185   :  { %v6711_v62 = vadd.f32 %v9501_v56, %v11483_v7  ;;  %v9504_v4 = vadd.f32 %v9503_v1, %v9502_v60  ;;  %v9525_v5 = vpop.f32.mrb[11].mxu1  ;;  %v10796_v7 = vld [vmem:[#allocation5 + $0x998] sm:$0xff]   ;;  %v10823_v60 = vld [vmem:[#allocation5 + $0xa10] sm:$0xff]  }
 0x186   :  { %v9526_v8 = vadd.f32 %v9525_v5, %v9524_v63  ;;  %9820 = vmatpush3.bf16.msra.mxu1 %v10796_v7  ;;  %v10826_v5 = vld [vmem:[#allocation5 + $0xad8] sm:$0xff]   ;;  %v10831_v7 = vld [vmem:[#allocation5 + $0xa20] sm:$0xff]  }
 0x187   :  { %v11489_v3 = vadd.f32 %v9523_v59, %v6711_v62  ;;  %v6714_v10 = vadd.f32 %v9504_v4, %v11486_v16  ;;  %9821 = vmatprep.subr.bf16.mxu1 %v10798_v14  ;;  %v10803_v16 = vld [vmem:[#allocation5 + $0x928] sm:$0xff]   ;;  %v10824_v62 = vld [vmem:[#allocation5 + $0xa90] sm:$0xff]  }
 0x188   :  { %9802 = vmatpush3.bf16.msra.mxu0 %v10803_v16  ;;  %v10833_v14 = vld [vmem:[#allocation5 + $0xa68] sm:$0xff]   ;;  %v10839_v16 = vld [vmem:[#allocation5 + $0xa30] sm:$0xff]  }
 0x189   :  { %v11492_v12 = vadd.f32 %v9526_v8, %v6714_v10  ;;  %9803 = vmatprep.subr.bf16.mxu0 %v10805_v21  ;;  %v10827_v8 = vld [vmem:[#allocation5 + $0xa18] sm:$0xff]   ;;  %v10829_v10 = vld [vmem:[#allocation5 + $0xa60] sm:$0xff]  }
 0x18a   :  { %9822 = vmatpush3.bf16.msra.mxu1 %v10800_v17  ;;  %v10836_v17 = vld [vmem:[#allocation5 + $0xaa8] sm:$0xff]   ;;  %v10841_v21 = vld [vmem:[#allocation5 + $0xa78] sm:$0xff]  }
 0x18b   :  { %9823 = vmatprep.subr.bf16.mxu1 %v10802_v19  ;;  %v10838_v19 = vld [vmem:[#allocation5 + $0xaf0] sm:$0xff]  }
 0x18c   :  { %9804 = vmatpush3.bf16.msra.mxu0 %v10807_v23  ;;  %v10843_v23 = vld [vmem:[#allocation5 + $0xa38] sm:$0xff]  }
 0x18d   :  { %9805 = vmatprep.subr.bf16.mxu0 %v10809_v25  ;;  %v114_v25 = vld [vmem:[#allocation2 + $0x148] sm:$0xff] }
 0x18e   :  { %9824 = vmatpush3.bf16.msra.mxu1 %v10804_v20  ;;  %v10840_v20 = vld [vmem:[#allocation5 + $0xab0] sm:$0xff]  }
 0x18f   :  { %9825 = vmatprep.subr.bf16.mxu1 %v10806_v22  ;;  %v10842_v22 = vld [vmem:[#allocation5 + $0xaf8] sm:$0xff]  }
 0x190   :  { %9806 = vmatpush3.bf16.msra.mxu0 %v10811_v27  ;;  %v116_v27 = vld [vmem:[#allocation2 + $0x158] sm:$0xff] }
 0x191   :  { %9835 = vmatprep.subr.bf16.mxu0 %v10813_v41  ;;  %v308_v32 = vpack.c.bf16 %v212_v29, %v116_v27  ;;  %v10849_v41 = vld [vmem:[#allocation5 + $0xb48] sm:$0xff]   ;;  %v117_v27 = vld [vmem:[#allocation2 + $0x160] sm:$0xff]  ;;  %v119_v29 = vld [vmem:[#allocation2 + $0x170] sm:$0xff] }
 0x192   :  { %9826 = vmatpush3.bf16.msra.mxu1 %v10808_v24  ;;  %v10844_v24 = vld [vmem:[#allocation5 + $0xab8] sm:$0xff]  }
 0x193   :  { %9827 = vmatprep.subr.bf16.mxu1 %v10810_v26  ;;  %7283 = vmatmul.mubr.bf16.vlgmr.msra.gmra.mrb[36].mxu0 %v301_v39  ;;  %v210_v26 = vld [vmem:[#allocation2 + $0x448] sm:$0xff]  ;;  %v10847_v39 = vld [vmem:[#allocation5 + $0xb00] sm:$0xff]  }
 0x194   :  { %9836 = vmatpush3.bf16.msra.mxu0 %v10815_v43  ;;  %v10850_v43 = vld [vmem:[#allocation5 + $0xbc8] sm:$0xff]  }
 0x195   :  { %9837 = vmatprep.subr.bf16.mxu0 %v10817_v45  ;;  %v10851_v45 = vld [vmem:[#allocation5 + $0xb08] sm:$0xff]  }
 0x196   :  { %9828 = vmatpush3.bf16.msra.mxu1 %v10812_v28  ;;  %v306_v28 = vpack.c.bf16 %v210_v26, %v114_v25 }
 0x197   :  { %9857 = vmatprep.subr.bf16.mxu1 %v10814_v42 }
 0x198   :  { %9838 = vmatpush3.bf16.msra.mxu0 %v10819_v49  ;;  %7364 = vmatprep.mubr.bf16.mxu0 %v306_v28  ;;  %v213_v28 = vld [vmem:[#allocation2 + $0x460] sm:$0xff] }
 0x199   :  { %7324 = vmatmul.mubr.bf16.vlgmr.msra.gmra.mrb[36].mxu1 %v303_v40  ;;  %9839 = vmatprep.subr.bf16.mxu0 %v10821_v54  ;;  %v10848_v40 = vld [vmem:[#allocation5 + $0xb80] sm:$0xff]   ;;  %v309_v30 = vpack.c.bf16 %v213_v28, %v117_v27 }
 0x19a   :  { %9858 = vmatpush3.bf16.msra.mxu1 %v10816_v44  ;;  %7405 = vmatprep.mubr.bf16.mxu1 %v308_v32  ;;  %v311_v32 = vpack.c.bf16 %v215_v31, %v119_v29  ;;  %v10909_v29 = vld [vmem:[#allocation5 + $0xd40] sm:$0xff]  }
 0x19b   :  { %9859 = vmatprep.subr.bf16.mxu1 %v10818_v47  ;;  %v10852_v47 = vld [vmem:[#allocation5 + $0xb88] sm:$0xff]   ;;  %v10911_v31 = vld [vmem:[#allocation5 + $0xd00] sm:$0xff]  }
 0x19c   :  { %9840 = vmatpush3.bf16.msra.mxu0 %v10823_v60 }
 0x19d   :  { %9841 = vmatprep.subr.bf16.mxu0 %v10825_v2 }
 0x19e   :  { %9860 = vmatpush3.bf16.msra.mxu1 %v10820_v51 }
 0x19f   :  { %9861 = vmatprep.subr.bf16.mxu1 %v10822_v57 }
 0x1a0   :  { %9842 = vmatpush3.bf16.msra.mxu0 %v10827_v8  ;;  %v10862_v8 = vld [vmem:[#allocation5 + $0xbe0] sm:$0xff]  }
 0x1a1   :  { %v9543_v46 = vpop.f32.mrb[12].mxu0  ;;  %9843 = vmatprep.subr.bf16.mxu0 %v10829_v10  ;;  %v10864_v10 = vld [vmem:[#allocation5 + $0xba0] sm:$0xff]  }
 0x1a2   :  { %v9565_v48 = vpop.f32.mrb[12].mxu1  ;;  %v9544_v50 = vpop.f32.mrb[13].mxu0  ;;  %9862 = vmatpush3.bf16.msra.mxu1 %v10824_v62  ;;  %v10857_v62 = vld [vmem:[#allocation5 + $0xb58] sm:$0xff]  }
 0x1a3   :  { %v9545_v52 = vadd.f32 %v9544_v50, %v9543_v46  ;;  %v9566_v53 = vpop.f32.mrb[13].mxu1  ;;  %v9546_v56 = vpop.f32.mrb[14].mxu0  ;;  %9863 = vmatprep.subr.bf16.mxu1 %v10826_v5  ;;  %v10853_v50 = vld [vmem:[#allocation5 + $0xb50] sm:$0xff]  }
 0x1a4   :  { %v9567_v55 = vadd.f32 %v9566_v53, %v9565_v48  ;;  %v9568_v59 = vpop.f32.mrb[14].mxu1  ;;  %v9547_v61 = vpop.f32.mrb[15].mxu0  ;;  %9844 = vmatpush3.bf16.msra.mxu0 %v10831_v7  ;;  %v10854_v53 = vld [vmem:[#allocation5 + $0xbd0] sm:$0xff]   ;;  %v10866_v7 = vld [vmem:[#allocation5 + $0xbe8] sm:$0xff]  }
 0x1a5   :  { %v6793_v58 = vadd.f32 %v9545_v52, %v11489_v3  ;;  %v9548_v0 = vadd.f32 %v9547_v61, %v9546_v56  ;;  %v9569_v1 = vpop.f32.mrb[15].mxu1  ;;  %v10828_v3 = vld [vmem:[#allocation5 + $0xa98] sm:$0xff]   ;;  %9845 = vmatprep.subr.bf16.mxu0 %v10833_v14  ;;  %v10855_v56 = vld [vmem:[#allocation5 + $0xb10] sm:$0xff]  }
 0x1a6   :  { %v9570_v4 = vadd.f32 %v9569_v1, %v9568_v59  ;;  %9864 = vmatpush3.bf16.msra.mxu1 %v10828_v3  ;;  %v10858_v1 = vld [vmem:[#allocation5 + $0xbd8] sm:$0xff]   ;;  %v10863_v3 = vld [vmem:[#allocation5 + $0xb20] sm:$0xff]   ;;  %v10869_v14 = vld [vmem:[#allocation5 + $0xb70] sm:$0xff]  }
 0x1a7   :  { %v11495_v63 = vadd.f32 %v9567_v55, %v6793_v58  ;;  %v6796_v6 = vadd.f32 %v9548_v0, %v11492_v12  ;;  %9865 = vmatprep.subr.bf16.mxu1 %v10830_v11  ;;  %v10835_v12 = vld [vmem:[#allocation5 + $0xa28] sm:$0xff]   ;;  %v10856_v58 = vld [vmem:[#allocation5 + $0xb90] sm:$0xff]  }
 0x1a8   :  { %9846 = vmatpush3.bf16.msra.mxu0 %v10835_v12  ;;  %v10865_v11 = vld [vmem:[#allocation5 + $0xb68] sm:$0xff]   ;;  %v10871_v12 = vld [vmem:[#allocation5 + $0xb30] sm:$0xff]  }
 0x1a9   :  { %v11498_v9 = vadd.f32 %v9570_v4, %v6796_v6  ;;  %9847 = vmatprep.subr.bf16.mxu0 %v10837_v18  ;;  %v10859_v4 = vld [vmem:[#allocation5 + $0xb18] sm:$0xff]   ;;  %v10861_v6 = vld [vmem:[#allocation5 + $0xb60] sm:$0xff]  }
 0x1aa   :  { %9866 = vmatpush3.bf16.msra.mxu1 %v10832_v13  ;;  %v10868_v13 = vld [vmem:[#allocation5 + $0xba8] sm:$0xff]   ;;  %v10873_v18 = vld [vmem:[#allocation5 + $0xb78] sm:$0xff]  }
 0x1ab   :  { %9867 = vmatprep.subr.bf16.mxu1 %v10834_v15  ;;  %v10870_v15 = vld [vmem:[#allocation5 + $0xbf0] sm:$0xff]  }
 0x1ac   :  { %9848 = vmatpush3.bf16.msra.mxu0 %v10839_v16  ;;  %v10875_v16 = vld [vmem:[#allocation5 + $0xb38] sm:$0xff]  }
 0x1ad   :  { %9849 = vmatprep.subr.bf16.mxu0 %v10841_v21  ;;  %v118_v21 = vld [vmem:[#allocation2 + $0x168] sm:$0xff] }
 0x1ae   :  { %9868 = vmatpush3.bf16.msra.mxu1 %v10836_v17  ;;  %v10872_v17 = vld [vmem:[#allocation5 + $0xbb0] sm:$0xff]  }
 0x1af   :  { %9869 = vmatprep.subr.bf16.mxu1 %v10838_v19  ;;  %v10874_v19 = vld [vmem:[#allocation5 + $0xbf8] sm:$0xff]  }
 0x1b0   :  { %9850 = vmatpush3.bf16.msra.mxu0 %v10843_v23  ;;  %v120_v23 = vld [vmem:[#allocation2 + $0x178] sm:$0xff] }
 0x1b1   :  { %9879 = vmatprep.subr.bf16.mxu0 %v10845_v37  ;;  %v10881_v37 = vld [vmem:[#allocation5 + $0xc48] sm:$0xff]  }
 0x1b2   :  { %9870 = vmatpush3.bf16.msra.mxu1 %v10840_v20  ;;  %v10876_v20 = vld [vmem:[#allocation5 + $0xbb8] sm:$0xff]  }
 0x1b3   :  { %9871 = vmatprep.subr.bf16.mxu1 %v10842_v22  ;;  %7365 = vmatmul.mubr.bf16.vlgmr.msra.gmra.mrb[40].mxu0 %v305_v33  ;;  %v214_v22 = vld [vmem:[#allocation2 + $0x468] sm:$0xff]  ;;  %v10877_v33 = vld [vmem:[#allocation5 + $0xc40] sm:$0xff]  }
 0x1b4   :  { %9880 = vmatpush3.bf16.msra.mxu0 %v10847_v39  ;;  %v310_v25 = vpack.c.bf16 %v214_v22, %v118_v21  ;;  %v10882_v39 = vld [vmem:[#allocation5 + $0xcc8] sm:$0xff]   ;;  %v220_v21 = vld [vmem:[#allocation2 + $0x498] sm:$0xff]  ;;  %v121_v22 = vld [vmem:[#allocation2 + $0x180] sm:$0xff] }
 0x1b5   :  { %9881 = vmatprep.subr.bf16.mxu0 %v10849_v41  ;;  %v10883_v41 = vld [vmem:[#allocation5 + $0xc08] sm:$0xff]  }
 0x1b6   :  { %9872 = vmatpush3.bf16.msra.mxu1 %v10844_v24  ;;  %v216_v24 = vld [vmem:[#allocation2 + $0x478] sm:$0xff]  ;;  %7446 = vmatprep.mubr.bf16.mxu0 %v310_v25  ;;  %v123_v25 = vld [vmem:[#allocation2 + $0x190] sm:$0xff] }
 0x1b7   :  { %9901 = vmatprep.subr.bf16.mxu1 %v10846_v38  ;;  %v312_v26 = vpack.c.bf16 %v216_v24, %v120_v23  ;;  %v217_v24 = vld [vmem:[#allocation2 + $0x480] sm:$0xff] }
 0x1b8   :  { %9882 = vmatpush3.bf16.msra.mxu0 %v10851_v45  ;;  %v313_v27 = vpack.c.bf16 %v217_v24, %v121_v22  ;;  %v127_v22 = vld [vmem:[#allocation2 + $0x1b0] sm:$0xff] }
 0x1b9   :  { %7406 = vmatmul.mubr.bf16.vlgmr.msra.gmra.mrb[40].mxu1 %v307_v36  ;;  %9883 = vmatprep.subr.bf16.mxu0 %v10853_v50  ;;  %v10880_v36 = vld [vmem:[#allocation5 + $0xc80] sm:$0xff]  }
 0x1ba   :  { %9902 = vmatpush3.bf16.msra.mxu1 %v10848_v40  ;;  %7487 = vmatprep.mubr.bf16.mxu1 %v312_v26  ;;  %v219_v26 = vld [vmem:[#allocation2 + $0x490] sm:$0xff] }
 0x1bb   :  { %9903 = vmatprep.subr.bf16.mxu1 %v10850_v43  ;;  %v10884_v43 = vld [vmem:[#allocation5 + $0xc88] sm:$0xff]   ;;  %v315_v28 = vpack.c.bf16 %v219_v26, %v123_v25  ;;  %v10941_v25 = vld [vmem:[#allocation5 + $0xe40] sm:$0xff]  }
 0x1bc   :  { %9884 = vmatpush3.bf16.msra.mxu0 %v10855_v56  ;;  %v10942_v26 = vld [vmem:[#allocation5 + $0xec0] sm:$0xff]  }
 0x1bd   :  { %9885 = vmatprep.subr.bf16.mxu0 %v10857_v62 }
 0x1be   :  { %9904 = vmatpush3.bf16.msra.mxu1 %v10852_v47 }
 0x1bf   :  { %9905 = vmatprep.subr.bf16.mxu1 %v10854_v53 }
 0x1c0   :  { %9886 = vmatpush3.bf16.msra.mxu0 %v10859_v4  ;;  %v10894_v4 = vld [vmem:[#allocation5 + $0xce0] sm:$0xff]  }
 0x1c1   :  { %v9587_v42 = vpop.f32.mrb[16].mxu0  ;;  %9887 = vmatprep.subr.bf16.mxu0 %v10861_v6  ;;  %v10896_v6 = vld [vmem:[#allocation5 + $0xca0] sm:$0xff]  }
 0x1c2   :  { %v9609_v44 = vpop.f32.mrb[16].mxu1  ;;  %v9588_v46 = vpop.f32.mrb[17].mxu0  ;;  %9906 = vmatpush3.bf16.msra.mxu1 %v10856_v58  ;;  %v10889_v58 = vld [vmem:[#allocation5 + $0xc58] sm:$0xff]  }
 0x1c3   :  { %v9589_v48 = vadd.f32 %v9588_v46, %v9587_v42  ;;  %v9610_v49 = vpop.f32.mrb[17].mxu1  ;;  %v9590_v52 = vpop.f32.mrb[18].mxu0  ;;  %9907 = vmatprep.subr.bf16.mxu1 %v10858_v1  ;;  %v10885_v46 = vld [vmem:[#allocation5 + $0xc50] sm:$0xff]  }
 0x1c4   :  { %v9611_v51 = vadd.f32 %v9610_v49, %v9609_v44  ;;  %v9612_v55 = vpop.f32.mrb[18].mxu1  ;;  %v9591_v57 = vpop.f32.mrb[19].mxu0  ;;  %9888 = vmatpush3.bf16.msra.mxu0 %v10863_v3  ;;  %v10886_v49 = vld [vmem:[#allocation5 + $0xcd0] sm:$0xff]   ;;  %v10898_v3 = vld [vmem:[#allocation5 + $0xce8] sm:$0xff]  }
 0x1c5   :  { %v6875_v54 = vadd.f32 %v9589_v48, %v11495_v63  ;;  %v9592_v60 = vadd.f32 %v9591_v57, %v9590_v52  ;;  %v9613_v61 = vpop.f32.mrb[19].mxu1  ;;  %v10860_v63 = vld [vmem:[#allocation5 + $0xb98] sm:$0xff]   ;;  %9889 = vmatprep.subr.bf16.mxu0 %v10865_v11  ;;  %v10887_v52 = vld [vmem:[#allocation5 + $0xc10] sm:$0xff]  }
 0x1c6   :  { %v9614_v0 = vadd.f32 %v9613_v61, %v9612_v55  ;;  %9908 = vmatpush3.bf16.msra.mxu1 %v10860_v63  ;;  %v10890_v61 = vld [vmem:[#allocation5 + $0xcd8] sm:$0xff]   ;;  %v10895_v63 = vld [vmem:[#allocation5 + $0xc20] sm:$0xff]   ;;  %v10901_v11 = vld [vmem:[#allocation5 + $0xc70] sm:$0xff]  }
 0x1c7   :  { %v11501_v59 = vadd.f32 %v9611_v51, %v6875_v54  ;;  %v6878_v2 = vadd.f32 %v9592_v60, %v11498_v9  ;;  %9909 = vmatprep.subr.bf16.mxu1 %v10862_v8  ;;  %v10867_v9 = vld [vmem:[#allocation5 + $0xb28] sm:$0xff]   ;;  %v10888_v54 = vld [vmem:[#allocation5 + $0xc90] sm:$0xff]  }
 0x1c8   :  { %9890 = vmatpush3.bf16.msra.mxu0 %v10867_v9  ;;  %v10897_v8 = vld [vmem:[#allocation5 + $0xc68] sm:$0xff]   ;;  %v10903_v9 = vld [vmem:[#allocation5 + $0xc30] sm:$0xff]  }
 0x1c9   :  { %v11504_v5 = vadd.f32 %v9614_v0, %v6878_v2  ;;  %9891 = vmatprep.subr.bf16.mxu0 %v10869_v14  ;;  %v10891_v0 = vld [vmem:[#allocation5 + $0xc18] sm:$0xff]   ;;  %v10893_v2 = vld [vmem:[#allocation5 + $0xc60] sm:$0xff]  }
 0x1ca   :  { %9910 = vmatpush3.bf16.msra.mxu1 %v10864_v10  ;;  %v10900_v10 = vld [vmem:[#allocation5 + $0xca8] sm:$0xff]   ;;  %v10905_v14 = vld [vmem:[#allocation5 + $0xc78] sm:$0xff]  }
 0x1cb   :  { %9911 = vmatprep.subr.bf16.mxu1 %v10866_v7  ;;  %v10902_v7 = vld [vmem:[#allocation5 + $0xcf0] sm:$0xff]  }
 0x1cc   :  { %9892 = vmatpush3.bf16.msra.mxu0 %v10871_v12  ;;  %v10907_v12 = vld [vmem:[#allocation5 + $0xc38] sm:$0xff]  }
 0x1cd   :  { %9893 = vmatprep.subr.bf16.mxu0 %v10873_v18  ;;  %v122_v18 = vld [vmem:[#allocation2 + $0x188] sm:$0xff] }
 0x1ce   :  { %9912 = vmatpush3.bf16.msra.mxu1 %v10868_v13  ;;  %v10904_v13 = vld [vmem:[#allocation5 + $0xcb0] sm:$0xff]  }
 0x1cf   :  { %9913 = vmatprep.subr.bf16.mxu1 %v10870_v15  ;;  %v10906_v15 = vld [vmem:[#allocation5 + $0xcf8] sm:$0xff]  }
 0x1d0   :  { %9894 = vmatpush3.bf16.msra.mxu0 %v10875_v16 }
 0x1d1   :  { %9923 = vmatprep.subr.bf16.mxu0 %v10877_v33  ;;  %v10913_v33 = vld [vmem:[#allocation5 + $0xd48] sm:$0xff]  }
 0x1d2   :  { %9914 = vmatpush3.bf16.msra.mxu1 %v10872_v17  ;;  %v10908_v17 = vld [vmem:[#allocation5 + $0xcb8] sm:$0xff]  }
 0x1d3   :  { %9915 = vmatprep.subr.bf16.mxu1 %v10874_v19  ;;  %7447 = vmatmul.mubr.bf16.vlgmr.msra.gmra.mrb[44].mxu0 %v309_v30  ;;  %v218_v19 = vld [vmem:[#allocation2 + $0x488] sm:$0xff]  ;;  %v10910_v30 = vld [vmem:[#allocation5 + $0xdc0] sm:$0xff]  }
 0x1d4   :  { %9924 = vmatpush3.bf16.msra.mxu0 %v10879_v35  ;;  %v314_v16 = vpack.c.bf16 %v218_v19, %v122_v18  ;;  %v10914_v35 = vld [vmem:[#allocation5 + $0xdc8] sm:$0xff]   ;;  %v224_v18 = vld [vmem:[#allocation2 + $0x4b8] sm:$0xff]  ;;  %v125_v19 = vld [vmem:[#allocation2 + $0x1a0] sm:$0xff] }
 0x1d5   :  { %9925 = vmatprep.subr.bf16.mxu0 %v10881_v37  ;;  %v10915_v37 = vld [vmem:[#allocation5 + $0xd08] sm:$0xff]  }
 0x1d6   :  { %9916 = vmatpush3.bf16.msra.mxu1 %v10876_v20  ;;  %v124_v20 = vld [vmem:[#allocation2 + $0x198] sm:$0xff]  ;;  %7528 = vmatprep.mubr.bf16.mxu0 %v314_v16  ;;  %v221_v16 = vld [vmem:[#allocation2 + $0x4a0] sm:$0xff] }
 0x1d7   :  { %9945 = vmatprep.subr.bf16.mxu1 %v10878_v34  ;;  %v316_v23 = vpack.c.bf16 %v220_v21, %v124_v20  ;;  %v317_v21 = vpack.c.bf16 %v221_v16, %v125_v19  ;;  %v227_v16 = vld [vmem:[#allocation2 + $0x4d0] sm:$0xff] }
 0x1d8   :  { %9926 = vmatpush3.bf16.msra.mxu0 %v10883_v41 }
 0x1d9   :  { %7488 = vmatmul.mubr.bf16.vlgmr.msra.gmra.mrb[44].mxu1 %v311_v32  ;;  %9927 = vmatprep.subr.bf16.mxu0 %v10885_v46  ;;  %v10912_v32 = vld [vmem:[#allocation5 + $0xd80] sm:$0xff]  }
 0x1da   :  { %9946 = vmatpush3.bf16.msra.mxu1 %v10880_v36  ;;  %7569 = vmatprep.mubr.bf16.mxu1 %v316_v23  ;;  %v223_v23 = vld [vmem:[#allocation2 + $0x4b0] sm:$0xff] }
 0x1db   :  { %9947 = vmatprep.subr.bf16.mxu1 %v10882_v39  ;;  %v10916_v39 = vld [vmem:[#allocation5 + $0xd88] sm:$0xff]   ;;  %v319_v24 = vpack.c.bf16 %v223_v23, %v127_v22  ;;  %v10974_v22 = vld [vmem:[#allocation5 + $0xfc0] sm:$0xff]  }
 0x1dc   :  { %9928 = vmatpush3.bf16.msra.mxu0 %v10887_v52  ;;  %v10975_v23 = vld [vmem:[#allocation5 + $0xf00] sm:$0xff]  }
 0x1dd   :  { %9929 = vmatprep.subr.bf16.mxu0 %v10889_v58 }
 0x1de   :  { %9948 = vmatpush3.bf16.msra.mxu1 %v10884_v43 }
 0x1df   :  { %9949 = vmatprep.subr.bf16.mxu1 %v10886_v49 }
 0x1e0   :  { %9930 = vmatpush3.bf16.msra.mxu0 %v10891_v0  ;;  %v10926_v0 = vld [vmem:[#allocation5 + $0xde0] sm:$0xff]  }
 0x1e1   :  { %v9631_v38 = vpop.f32.mrb[20].mxu0  ;;  %9931 = vmatprep.subr.bf16.mxu0 %v10893_v2  ;;  %v10928_v2 = vld [vmem:[#allocation5 + $0xda0] sm:$0xff]  }
 0x1e2   :  { %v9653_v40 = vpop.f32.mrb[20].mxu1  ;;  %v9632_v42 = vpop.f32.mrb[21].mxu0  ;;  %9950 = vmatpush3.bf16.msra.mxu1 %v10888_v54  ;;  %v10921_v54 = vld [vmem:[#allocation5 + $0xd58] sm:$0xff]  }
 0x1e3   :  { %v9633_v44 = vadd.f32 %v9632_v42, %v9631_v38  ;;  %v9654_v45 = vpop.f32.mrb[21].mxu1  ;;  %v9634_v48 = vpop.f32.mrb[22].mxu0  ;;  %9951 = vmatprep.subr.bf16.mxu1 %v10890_v61  ;;  %v10917_v42 = vld [vmem:[#allocation5 + $0xd50] sm:$0xff]  }
 0x1e4   :  { %v9655_v47 = vadd.f32 %v9654_v45, %v9653_v40  ;;  %v9656_v51 = vpop.f32.mrb[22].mxu1  ;;  %v9635_v53 = vpop.f32.mrb[23].mxu0  ;;  %9932 = vmatpush3.bf16.msra.mxu0 %v10895_v63  ;;  %v10918_v45 = vld [vmem:[#allocation5 + $0xdd0] sm:$0xff]   ;;  %v10930_v63 = vld [vmem:[#allocation5 + $0xde8] sm:$0xff]  }
 0x1e5   :  { %v6957_v50 = vadd.f32 %v9633_v44, %v11501_v59  ;;  %v9636_v56 = vadd.f32 %v9635_v53, %v9634_v48  ;;  %v9657_v57 = vpop.f32.mrb[23].mxu1  ;;  %v10892_v59 = vld [vmem:[#allocation5 + $0xc98] sm:$0xff]   ;;  %9933 = vmatprep.subr.bf16.mxu0 %v10897_v8  ;;  %v10919_v48 = vld [vmem:[#allocation5 + $0xd10] sm:$0xff]  }
 0x1e6   :  { %v9658_v60 = vadd.f32 %v9657_v57, %v9656_v51  ;;  %9952 = vmatpush3.bf16.msra.mxu1 %v10892_v59  ;;  %v10922_v57 = vld [vmem:[#allocation5 + $0xdd8] sm:$0xff]   ;;  %v10927_v59 = vld [vmem:[#allocation5 + $0xd20] sm:$0xff]   ;;  %v10933_v8 = vld [vmem:[#allocation5 + $0xd70] sm:$0xff]  }
 0x1e7   :  { %v11507_v55 = vadd.f32 %v9655_v47, %v6957_v50  ;;  %v6960_v62 = vadd.f32 %v9636_v56, %v11504_v5  ;;  %9953 = vmatprep.subr.bf16.mxu1 %v10894_v4  ;;  %v10899_v5 = vld [vmem:[#allocation5 + $0xc28] sm:$0xff]   ;;  %v10920_v50 = vld [vmem:[#allocation5 + $0xd90] sm:$0xff]  }
 0x1e8   :  { %9934 = vmatpush3.bf16.msra.mxu0 %v10899_v5  ;;  %v10929_v4 = vld [vmem:[#allocation5 + $0xd68] sm:$0xff]   ;;  %v10935_v5 = vld [vmem:[#allocation5 + $0xd30] sm:$0xff]  }
 0x1e9   :  { %v11510_v1 = vadd.f32 %v9658_v60, %v6960_v62  ;;  %9935 = vmatprep.subr.bf16.mxu0 %v10901_v11  ;;  %v10923_v60 = vld [vmem:[#allocation5 + $0xd18] sm:$0xff]   ;;  %v10925_v62 = vld [vmem:[#allocation5 + $0xd60] sm:$0xff]  }
 0x1ea   :  { %9954 = vmatpush3.bf16.msra.mxu1 %v10896_v6  ;;  %v10932_v6 = vld [vmem:[#allocation5 + $0xda8] sm:$0xff]   ;;  %v10937_v11 = vld [vmem:[#allocation5 + $0xd78] sm:$0xff]  }
 0x1eb   :  { %9955 = vmatprep.subr.bf16.mxu1 %v10898_v3  ;;  %v10934_v3 = vld [vmem:[#allocation5 + $0xdf0] sm:$0xff]  }
 0x1ec   :  { %9936 = vmatpush3.bf16.msra.mxu0 %v10903_v9  ;;  %v10939_v9 = vld [vmem:[#allocation5 + $0xd38] sm:$0xff]  }
 0x1ed   :  { %9937 = vmatprep.subr.bf16.mxu0 %v10905_v14  ;;  %v126_v14 = vld [vmem:[#allocation2 + $0x1a8] sm:$0xff] }
 0x1ee   :  { %9956 = vmatpush3.bf16.msra.mxu1 %v10900_v10  ;;  %v10936_v10 = vld [vmem:[#allocation5 + $0xdb0] sm:$0xff]  }
 0x1ef   :  { %9957 = vmatprep.subr.bf16.mxu1 %v10902_v7  ;;  %v10938_v7 = vld [vmem:[#allocation5 + $0xdf8] sm:$0xff]  }
 0x1f0   :  { %9938 = vmatpush3.bf16.msra.mxu0 %v10907_v12  ;;  %v128_v12 = vld [vmem:[#allocation2 + $0x1b8] sm:$0xff] }
 0x1f1   :  { %9967 = vmatprep.subr.bf16.mxu0 %v10909_v29  ;;  %v320_v20 = vpack.c.bf16 %v224_v18, %v128_v12  ;;  %v10945_v29 = vld [vmem:[#allocation5 + $0xe48] sm:$0xff]   ;;  %v129_v12 = vld [vmem:[#allocation2 + $0x1c0] sm:$0xff]  ;;  %v131_v18 = vld [vmem:[#allocation2 + $0x1d0] sm:$0xff] }
 0x1f2   :  { %9958 = vmatpush3.bf16.msra.mxu1 %v10904_v13  ;;  %v10940_v13 = vld [vmem:[#allocation5 + $0xdb8] sm:$0xff]  }
 0x1f3   :  { %9959 = vmatprep.subr.bf16.mxu1 %v10906_v15  ;;  %7529 = vmatmul.mubr.bf16.vlgmr.msra.gmra.mrb[48].mxu0 %v313_v27  ;;  %v222_v15 = vld [vmem:[#allocation2 + $0x4a8] sm:$0xff]  ;;  %v10943_v27 = vld [vmem:[#allocation5 + $0xe00] sm:$0xff]  }
 0x1f4   :  { %9968 = vmatpush3.bf16.msra.mxu0 %v10911_v31  ;;  %v10946_v31 = vld [vmem:[#allocation5 + $0xec8] sm:$0xff]  }
 0x1f5   :  { %9969 = vmatprep.subr.bf16.mxu0 %v10913_v33  ;;  %v10947_v33 = vld [vmem:[#allocation5 + $0xe08] sm:$0xff]  }
 0x1f6   :  { %9960 = vmatpush3.bf16.msra.mxu1 %v10908_v17  ;;  %v318_v17 = vpack.c.bf16 %v222_v15, %v126_v14 }
 0x1f7   :  { %9989 = vmatprep.subr.bf16.mxu1 %v10910_v30 }
 0x1f8   :  { %9970 = vmatpush3.bf16.msra.mxu0 %v10915_v37  ;;  %7610 = vmatprep.mubr.bf16.mxu0 %v318_v17  ;;  %v225_v17 = vld [vmem:[#allocation2 + $0x4c0] sm:$0xff] }
 0x1f9   :  { %7570 = vmatmul.mubr.bf16.vlgmr.msra.gmra.mrb[48].mxu1 %v315_v28  ;;  %9971 = vmatprep.subr.bf16.mxu0 %v10917_v42  ;;  %v10944_v28 = vld [vmem:[#allocation5 + $0xe80] sm:$0xff]   ;;  %v321_v19 = vpack.c.bf16 %v225_v17, %v129_v12 }
 0x1fa   :  { %9990 = vmatpush3.bf16.msra.mxu1 %v10912_v32  ;;  %7651 = vmatprep.mubr.bf16.mxu1 %v320_v20  ;;  %v323_v20 = vpack.c.bf16 %v227_v16, %v131_v18  ;;  %v11005_v18 = vld [vmem:[#allocation5 + $0x1040] sm:$0xff]  }
 0x1fb   :  { %9991 = vmatprep.subr.bf16.mxu1 %v10914_v35  ;;  %v10948_v35 = vld [vmem:[#allocation5 + $0xe88] sm:$0xff]   ;;  %v11007_v16 = vld [vmem:[#allocation5 + $0x1000] sm:$0xff]  }
 0x1fc   :  { %9972 = vmatpush3.bf16.msra.mxu0 %v10919_v48 }
 0x1fd   :  { %9973 = vmatprep.subr.bf16.mxu0 %v10921_v54 }
 0x1fe   :  { %9992 = vmatpush3.bf16.msra.mxu1 %v10916_v39 }
 0x1ff   :  { %9993 = vmatprep.subr.bf16.mxu1 %v10918_v45 }
 0x200   :  { %9974 = vmatpush3.bf16.msra.mxu0 %v10923_v60  ;;  %v10958_v60 = vld [vmem:[#allocation5 + $0xee0] sm:$0xff]  }
 0x201   :  { %v9675_v34 = vpop.f32.mrb[24].mxu0  ;;  %9975 = vmatprep.subr.bf16.mxu0 %v10925_v62  ;;  %v10960_v62 = vld [vmem:[#allocation5 + $0xea0] sm:$0xff]  }
 0x202   :  { %v9697_v36 = vpop.f32.mrb[24].mxu1  ;;  %v9676_v38 = vpop.f32.mrb[25].mxu0  ;;  %9994 = vmatpush3.bf16.msra.mxu1 %v10920_v50  ;;  %v10953_v50 = vld [vmem:[#allocation5 + $0xe58] sm:$0xff]  }
 0x203   :  { %v9677_v40 = vadd.f32 %v9676_v38, %v9675_v34  ;;  %v9698_v41 = vpop.f32.mrb[25].mxu1  ;;  %v9678_v44 = vpop.f32.mrb[26].mxu0  ;;  %9995 = vmatprep.subr.bf16.mxu1 %v10922_v57  ;;  %v10949_v38 = vld [vmem:[#allocation5 + $0xe50] sm:$0xff]  }
 0x204   :  { %v9699_v43 = vadd.f32 %v9698_v41, %v9697_v36  ;;  %v9700_v47 = vpop.f32.mrb[26].mxu1  ;;  %v9679_v49 = vpop.f32.mrb[27].mxu0  ;;  %9976 = vmatpush3.bf16.msra.mxu0 %v10927_v59  ;;  %v10950_v41 = vld [vmem:[#allocation5 + $0xed0] sm:$0xff]   ;;  %v10962_v59 = vld [vmem:[#allocation5 + $0xee8] sm:$0xff]  }
 0x205   :  { %v7039_v46 = vadd.f32 %v9677_v40, %v11507_v55  ;;  %v9680_v52 = vadd.f32 %v9679_v49, %v9678_v44  ;;  %v9701_v53 = vpop.f32.mrb[27].mxu1  ;;  %v10924_v55 = vld [vmem:[#allocation5 + $0xd98] sm:$0xff]   ;;  %9977 = vmatprep.subr.bf16.mxu0 %v10929_v4  ;;  %v10951_v44 = vld [vmem:[#allocation5 + $0xe10] sm:$0xff]  }
 0x206   :  { %v9702_v56 = vadd.f32 %v9701_v53, %v9700_v47  ;;  %9996 = vmatpush3.bf16.msra.mxu1 %v10924_v55  ;;  %v10954_v53 = vld [vmem:[#allocation5 + $0xed8] sm:$0xff]   ;;  %v10959_v55 = vld [vmem:[#allocation5 + $0xe20] sm:$0xff]   ;;  %v10965_v4 = vld [vmem:[#allocation5 + $0xe70] sm:$0xff]  }
 0x207   :  { %v11513_v51 = vadd.f32 %v9699_v43, %v7039_v46  ;;  %v7042_v58 = vadd.f32 %v9680_v52, %v11510_v1  ;;  %9997 = vmatprep.subr.bf16.mxu1 %v10926_v0  ;;  %v10931_v1 = vld [vmem:[#allocation5 + $0xd28] sm:$0xff]   ;;  %v10952_v46 = vld [vmem:[#allocation5 + $0xe90] sm:$0xff]  }
 0x208   :  { %9978 = vmatpush3.bf16.msra.mxu0 %v10931_v1  ;;  %v10961_v0 = vld [vmem:[#allocation5 + $0xe68] sm:$0xff]   ;;  %v10967_v1 = vld [vmem:[#allocation5 + $0xe30] sm:$0xff]  }
 0x209   :  { %v11516_v61 = vadd.f32 %v9702_v56, %v7042_v58  ;;  %9979 = vmatprep.subr.bf16.mxu0 %v10933_v8  ;;  %v10955_v56 = vld [vmem:[#allocation5 + $0xe18] sm:$0xff]   ;;  %v10957_v58 = vld [vmem:[#allocation5 + $0xe60] sm:$0xff]  }
 0x20a   :  { %9998 = vmatpush3.bf16.msra.mxu1 %v10928_v2  ;;  %v10964_v2 = vld [vmem:[#allocation5 + $0xea8] sm:$0xff]   ;;  %v10969_v8 = vld [vmem:[#allocation5 + $0xe78] sm:$0xff]  }
 0x20b   :  { %9999 = vmatprep.subr.bf16.mxu1 %v10930_v63  ;;  %v10966_v63 = vld [vmem:[#allocation5 + $0xef0] sm:$0xff]  }
 0x20c   :  { %9980 = vmatpush3.bf16.msra.mxu0 %v10935_v5  ;;  %v10971_v5 = vld [vmem:[#allocation5 + $0xe38] sm:$0xff]  }
 0x20d   :  { %9981 = vmatprep.subr.bf16.mxu0 %v10937_v11  ;;  %v130_v11 = vld [vmem:[#allocation2 + $0x1c8] sm:$0xff] }
 0x20e   :  { %10000 = vmatpush3.bf16.msra.mxu1 %v10932_v6  ;;  %v10968_v6 = vld [vmem:[#allocation5 + $0xeb0] sm:$0xff]  }
 0x20f   :  { %10001 = vmatprep.subr.bf16.mxu1 %v10934_v3  ;;  %v10970_v3 = vld [vmem:[#allocation5 + $0xef8] sm:$0xff]  }
 0x210   :  { %9982 = vmatpush3.bf16.msra.mxu0 %v10939_v9  ;;  %v132_v9 = vld [vmem:[#allocation2 + $0x1d8] sm:$0xff] }
 0x211   :  { %10011 = vmatprep.subr.bf16.mxu0 %v10941_v25  ;;  %v10977_v25 = vld [vmem:[#allocation5 + $0xf48] sm:$0xff]  }
 0x212   :  { %10002 = vmatpush3.bf16.msra.mxu1 %v10936_v10  ;;  %v10972_v10 = vld [vmem:[#allocation5 + $0xeb8] sm:$0xff]  }
 0x213   :  { %10003 = vmatprep.subr.bf16.mxu1 %v10938_v7  ;;  %7611 = vmatmul.mubr.bf16.vlgmr.msra.gmra.mrb[52].mxu0 %v317_v21  ;;  %v226_v7 = vld [vmem:[#allocation2 + $0x4c8] sm:$0xff]  ;;  %v10973_v21 = vld [vmem:[#allocation5 + $0xf40] sm:$0xff]  }
 0x214   :  { %10012 = vmatpush3.bf16.msra.mxu0 %v10943_v27  ;;  %v322_v14 = vpack.c.bf16 %v226_v7, %v130_v11  ;;  %v10978_v27 = vld [vmem:[#allocation5 + $0xfc8] sm:$0xff]   ;;  %v232_v11 = vld [vmem:[#allocation2 + $0x4f8] sm:$0xff]  ;;  %v133_v7 = vld [vmem:[#allocation2 + $0x1e0] sm:$0xff] }
 0x215   :  { %10013 = vmatprep.subr.bf16.mxu0 %v10945_v29  ;;  %v10979_v29 = vld [vmem:[#allocation5 + $0xf08] sm:$0xff]  }
 0x216   :  { %10004 = vmatpush3.bf16.msra.mxu1 %v10940_v13  ;;  %v228_v13 = vld [vmem:[#allocation2 + $0x4d8] sm:$0xff]  ;;  %7692 = vmatprep.mubr.bf16.mxu0 %v322_v14  ;;  %v135_v14 = vld [vmem:[#allocation2 + $0x1f0] sm:$0xff] }
 0x217   :  { %10033 = vmatprep.subr.bf16.mxu1 %v10942_v26  ;;  %v324_v15 = vpack.c.bf16 %v228_v13, %v132_v9  ;;  %v229_v13 = vld [vmem:[#allocation2 + $0x4e0] sm:$0xff] }
 0x218   :  { %10014 = vmatpush3.bf16.msra.mxu0 %v10947_v33  ;;  %v325_v12 = vpack.c.bf16 %v229_v13, %v133_v7  ;;  %v139_v7 = vld [vmem:[#allocation2 + $0x210] sm:$0xff] }
 0x219   :  { %7652 = vmatmul.mubr.bf16.vlgmr.msra.gmra.mrb[52].mxu1 %v319_v24  ;;  %10015 = vmatprep.subr.bf16.mxu0 %v10949_v38  ;;  %v10976_v24 = vld [vmem:[#allocation5 + $0xf80] sm:$0xff]  }
 0x21a   :  { %10034 = vmatpush3.bf16.msra.mxu1 %v10944_v28  ;;  %7733 = vmatprep.mubr.bf16.mxu1 %v324_v15  ;;  %v231_v15 = vld [vmem:[#allocation2 + $0x4f0] sm:$0xff] }
 0x21b   :  { %10035 = vmatprep.subr.bf16.mxu1 %v10946_v31  ;;  %v10980_v31 = vld [vmem:[#allocation5 + $0xf88] sm:$0xff]   ;;  %v327_v17 = vpack.c.bf16 %v231_v15, %v135_v14  ;;  %v11037_v14 = vld [vmem:[#allocation5 + $0x1140] sm:$0xff]  }
 0x21c   :  { %10016 = vmatpush3.bf16.msra.mxu0 %v10951_v44  ;;  %v11038_v15 = vld [vmem:[#allocation5 + $0x11c0] sm:$0xff]  }
 0x21d   :  { %10017 = vmatprep.subr.bf16.mxu0 %v10953_v50 }
 0x21e   :  { %10036 = vmatpush3.bf16.msra.mxu1 %v10948_v35 }
 0x21f   :  { %10037 = vmatprep.subr.bf16.mxu1 %v10950_v41 }
 0x220   :  { %10018 = vmatpush3.bf16.msra.mxu0 %v10955_v56  ;;  %v10990_v56 = vld [vmem:[#allocation5 + $0xfe0] sm:$0xff]  }
 0x221   :  { %v9719_v30 = vpop.f32.mrb[28].mxu0  ;;  %10019 = vmatprep.subr.bf16.mxu0 %v10957_v58  ;;  %v10992_v58 = vld [vmem:[#allocation5 + $0xfa0] sm:$0xff]  }
 0x222   :  { %v9741_v32 = vpop.f32.mrb[28].mxu1  ;;  %v9720_v34 = vpop.f32.mrb[29].mxu0  ;;  %10038 = vmatpush3.bf16.msra.mxu1 %v10952_v46  ;;  %v10985_v46 = vld [vmem:[#allocation5 + $0xf58] sm:$0xff]  }
 0x223   :  { %v9721_v36 = vadd.f32 %v9720_v34, %v9719_v30  ;;  %v9742_v37 = vpop.f32.mrb[29].mxu1  ;;  %v9722_v40 = vpop.f32.mrb[30].mxu0  ;;  %10039 = vmatprep.subr.bf16.mxu1 %v10954_v53  ;;  %v10981_v34 = vld [vmem:[#allocation5 + $0xf50] sm:$0xff]  }
 0x224   :  { %v9743_v39 = vadd.f32 %v9742_v37, %v9741_v32  ;;  %v9744_v43 = vpop.f32.mrb[30].mxu1  ;;  %v9723_v45 = vpop.f32.mrb[31].mxu0  ;;  %10020 = vmatpush3.bf16.msra.mxu0 %v10959_v55  ;;  %v10982_v37 = vld [vmem:[#allocation5 + $0xfd0] sm:$0xff]   ;;  %v10994_v55 = vld [vmem:[#allocation5 + $0xfe8] sm:$0xff]  }
 0x225   :  { %v7121_v42 = vadd.f32 %v9721_v36, %v11513_v51  ;;  %v9724_v48 = vadd.f32 %v9723_v45, %v9722_v40  ;;  %v9745_v49 = vpop.f32.mrb[31].mxu1  ;;  %v10956_v51 = vld [vmem:[#allocation5 + $0xe98] sm:$0xff]   ;;  %10021 = vmatprep.subr.bf16.mxu0 %v10961_v0  ;;  %v10983_v40 = vld [vmem:[#allocation5 + $0xf10] sm:$0xff]  }
 0x226   :  { %v9746_v52 = vadd.f32 %v9745_v49, %v9744_v43  ;;  %10040 = vmatpush3.bf16.msra.mxu1 %v10956_v51  ;;  %v10986_v49 = vld [vmem:[#allocation5 + $0xfd8] sm:$0xff]   ;;  %v10991_v51 = vld [vmem:[#allocation5 + $0xf20] sm:$0xff]   ;;  %v10997_v0 = vld [vmem:[#allocation5 + $0xf70] sm:$0xff]  }
 0x227   :  { %v11519_v47 = vadd.f32 %v9743_v39, %v7121_v42  ;;  %v7124_v54 = vadd.f32 %v9724_v48, %v11516_v61  ;;  %10041 = vmatprep.subr.bf16.mxu1 %v10958_v60  ;;  %v10963_v61 = vld [vmem:[#allocation5 + $0xe28] sm:$0xff]   ;;  %v10984_v42 = vld [vmem:[#allocation5 + $0xf90] sm:$0xff]  }
 0x228   :  { %10022 = vmatpush3.bf16.msra.mxu0 %v10963_v61  ;;  %v10993_v60 = vld [vmem:[#allocation5 + $0xf68] sm:$0xff]   ;;  %v10999_v61 = vld [vmem:[#allocation5 + $0xf30] sm:$0xff]  }
 0x229   :  { %v11522_v57 = vadd.f32 %v9746_v52, %v7124_v54  ;;  %10023 = vmatprep.subr.bf16.mxu0 %v10965_v4  ;;  %v10987_v52 = vld [vmem:[#allocation5 + $0xf18] sm:$0xff]   ;;  %v10989_v54 = vld [vmem:[#allocation5 + $0xf60] sm:$0xff]  }
 0x22a   :  { %10042 = vmatpush3.bf16.msra.mxu1 %v10960_v62  ;;  %v10996_v62 = vld [vmem:[#allocation5 + $0xfa8] sm:$0xff]   ;;  %v11001_v4 = vld [vmem:[#allocation5 + $0xf78] sm:$0xff]  }
 0x22b   :  { %10043 = vmatprep.subr.bf16.mxu1 %v10962_v59  ;;  %v10998_v59 = vld [vmem:[#allocation5 + $0xff0] sm:$0xff]  }
 0x22c   :  { %10024 = vmatpush3.bf16.msra.mxu0 %v10967_v1  ;;  %v11003_v1 = vld [vmem:[#allocation5 + $0xf38] sm:$0xff]  }
 0x22d   :  { %10025 = vmatprep.subr.bf16.mxu0 %v10969_v8  ;;  %v134_v8 = vld [vmem:[#allocation2 + $0x1e8] sm:$0xff] }
 0x22e   :  { %10044 = vmatpush3.bf16.msra.mxu1 %v10964_v2  ;;  %v11000_v2 = vld [vmem:[#allocation5 + $0xfb0] sm:$0xff]  }
 0x22f   :  { %10045 = vmatprep.subr.bf16.mxu1 %v10966_v63  ;;  %v11002_v63 = vld [vmem:[#allocation5 + $0xff8] sm:$0xff]  }
 0x230   :  { %10026 = vmatpush3.bf16.msra.mxu0 %v10971_v5 }
 0x231   :  { %10055 = vmatprep.subr.bf16.mxu0 %v10973_v21  ;;  %v11009_v21 = vld [vmem:[#allocation5 + $0x1048] sm:$0xff]  }
 0x232   :  { %10046 = vmatpush3.bf16.msra.mxu1 %v10968_v6  ;;  %v11004_v6 = vld [vmem:[#allocation5 + $0xfb8] sm:$0xff]  }
 0x233   :  { %10047 = vmatprep.subr.bf16.mxu1 %v10970_v3  ;;  %7693 = vmatmul.mubr.bf16.vlgmr.msra.gmra.mrb[56].mxu0 %v321_v19  ;;  %v230_v3 = vld [vmem:[#allocation2 + $0x4e8] sm:$0xff]  ;;  %v11006_v19 = vld [vmem:[#allocation5 + $0x10c0] sm:$0xff]  }
 0x234   :  { %10056 = vmatpush3.bf16.msra.mxu0 %v10975_v23  ;;  %v326_v5 = vpack.c.bf16 %v230_v3, %v134_v8  ;;  %v236_v8 = vld [vmem:[#allocation2 + $0x518] sm:$0xff]  ;;  %v137_v3 = vld [vmem:[#allocation2 + $0x200] sm:$0xff] }
 0x235   :  { %10057 = vmatprep.subr.bf16.mxu0 %v10977_v25 }
 0x236   :  { %10048 = vmatpush3.bf16.msra.mxu1 %v10972_v10  ;;  %v136_v10 = vld [vmem:[#allocation2 + $0x1f8] sm:$0xff]  ;;  %7774 = vmatprep.mubr.bf16.mxu0 %v326_v5  ;;  %v233_v5 = vld [vmem:[#allocation2 + $0x500] sm:$0xff] }
 0x237   :  { %10077 = vmatprep.subr.bf16.mxu1 %v10974_v22  ;;  %v328_v9 = vpack.c.bf16 %v232_v11, %v136_v10  ;;  %v11010_v22 = vld [vmem:[#allocation5 + $0x10c8] sm:$0xff]   ;;  %v329_v11 = vpack.c.bf16 %v233_v5, %v137_v3  ;;  %v239_v5 = vld [vmem:[#allocation2 + $0x530] sm:$0xff] }
 0x238   :  { %10058 = vmatpush3.bf16.msra.mxu0 %v10979_v29 }
 0x239   :  { %7734 = vmatmul.mubr.bf16.vlgmr.msra.gmra.mrb[56].mxu1 %v323_v20  ;;  %10059 = vmatprep.subr.bf16.mxu0 %v10981_v34  ;;  %v11008_v20 = vld [vmem:[#allocation5 + $0x1080] sm:$0xff]   ;;  %v11015_v34 = vld [vmem:[#allocation5 + $0x1010] sm:$0xff]  }
 0x23a   :  { %10078 = vmatpush3.bf16.msra.mxu1 %v10976_v24  ;;  %7815 = vmatprep.mubr.bf16.mxu1 %v328_v9  ;;  %v11011_v24 = vld [vmem:[#allocation5 + $0x1008] sm:$0xff]   ;;  %v235_v9 = vld [vmem:[#allocation2 + $0x510] sm:$0xff] }
 0x23b   :  { %10079 = vmatprep.subr.bf16.mxu1 %v10978_v27  ;;  %v331_v13 = vpack.c.bf16 %v235_v9, %v139_v7  ;;  %v11070_v7 = vld [vmem:[#allocation5 + $0x12c0] sm:$0xff]  }
 0x23c   :  { %10060 = vmatpush3.bf16.msra.mxu0 %v10983_v40  ;;  %v11071_v9 = vld [vmem:[#allocation5 + $0x1200] sm:$0xff]  }
 0x23d   :  { %10061 = vmatprep.subr.bf16.mxu0 %v10985_v46  ;;  %v11019_v46 = vld [vmem:[#allocation5 + $0x1018] sm:$0xff]  }
 0x23e   :  { %10080 = vmatpush3.bf16.msra.mxu1 %v10980_v31  ;;  %v11014_v31 = vld [vmem:[#allocation5 + $0x10d0] sm:$0xff]  }
 0x23f   :  { %10081 = vmatprep.subr.bf16.mxu1 %v10982_v37  ;;  %v11016_v37 = vld [vmem:[#allocation5 + $0x1090] sm:$0xff]  }
 0x240   :  { %10062 = vmatpush3.bf16.msra.mxu0 %v10987_v52  ;;  %v11022_v52 = vld [vmem:[#allocation5 + $0x10e0] sm:$0xff]  }
 0x241   :  { %10063 = vmatprep.subr.bf16.mxu0 %v10989_v54  ;;  %v11024_v54 = vld [vmem:[#allocation5 + $0x10a0] sm:$0xff]  }
 0x242   :  { %v9763_v26 = vpop.f32.mrb[32].mxu0  ;;  %v9785_v28 = vpop.f32.mrb[32].mxu1  ;;  %10082 = vmatpush3.bf16.msra.mxu1 %v10984_v42 }
 0x243   :  { %v9764_v30 = vpop.f32.mrb[33].mxu0  ;;  %v9786_v33 = vpop.f32.mrb[33].mxu1  ;;  %10083 = vmatprep.subr.bf16.mxu1 %v10986_v49  ;;  %v11020_v49 = vld [vmem:[#allocation5 + $0x1098] sm:$0xff]  }
 0x244   :  { %v9765_v32 = vadd.f32 %v9764_v30, %v9763_v26  ;;  %v9787_v35 = vadd.f32 %v9786_v33, %v9785_v28  ;;  %v9766_v36 = vpop.f32.mrb[34].mxu0  ;;  %v9788_v39 = vpop.f32.mrb[34].mxu1  ;;  %10064 = vmatpush3.bf16.msra.mxu0 %v10991_v51  ;;  %v11012_v26 = vld [vmem:[#allocation5 + $0x1088] sm:$0xff]   ;;  %v11013_v28 = vld [vmem:[#allocation5 + $0x1050] sm:$0xff]  }
 0x245   :  { %v9767_v41 = vpop.f32.mrb[35].mxu0  ;;  %v9789_v45 = vpop.f32.mrb[35].mxu1  ;;  %10065 = vmatprep.subr.bf16.mxu0 %v10993_v60  ;;  %v11026_v51 = vld [vmem:[#allocation5 + $0x10e8] sm:$0xff]   ;;  %v11029_v60 = vld [vmem:[#allocation5 + $0x1070] sm:$0xff]  }
 0x246   :  { %v7203_v38 = vadd.f32 %v9765_v32, %v11519_v47  ;;  %v9768_v44 = vadd.f32 %v9767_v41, %v9766_v36  ;;  %v9790_v48 = vadd.f32 %v9789_v45, %v9788_v39  ;;  %v10988_v47 = vld [vmem:[#allocation5 + $0xf98] sm:$0xff]  }
 0x247   :  { %10084 = vmatpush3.bf16.msra.mxu1 %v10988_v47  ;;  %v11017_v39 = vld [vmem:[#allocation5 + $0x1058] sm:$0xff]   ;;  %v11023_v47 = vld [vmem:[#allocation5 + $0x1020] sm:$0xff]  }
 0x248   :  { %v11525_v43 = vadd.f32 %v9787_v35, %v7203_v38  ;;  %v7206_v50 = vadd.f32 %v9768_v44, %v11522_v57  ;;  %10085 = vmatprep.subr.bf16.mxu1 %v10990_v56  ;;  %v10995_v57 = vld [vmem:[#allocation5 + $0xf28] sm:$0xff]   ;;  %v11018_v44 = vld [vmem:[#allocation5 + $0x10d8] sm:$0xff]  }
 0x249   :  { %10066 = vmatpush3.bf16.msra.mxu0 %v10995_v57  ;;  %v11025_v56 = vld [vmem:[#allocation5 + $0x1068] sm:$0xff]   ;;  %v11031_v57 = vld [vmem:[#allocation5 + $0x1030] sm:$0xff]  }
 0x24a   :  { %v11528_v53 = vadd.f32 %v9790_v48, %v7206_v50  ;;  %10067 = vmatprep.subr.bf16.mxu0 %v10997_v0  ;;  %v11033_v0 = vld [vmem:[#allocation5 + $0x1078] sm:$0xff]  }
 0x24b   :  { %10086 = vmatpush3.bf16.msra.mxu1 %v10992_v58  ;;  %v11027_v58 = vld [vmem:[#allocation5 + $0x1028] sm:$0xff]  }
 0x24c   :  { %10087 = vmatprep.subr.bf16.mxu1 %v10994_v55  ;;  %v11030_v55 = vld [vmem:[#allocation5 + $0x10f0] sm:$0xff]  }
 0x24d   :  { %10068 = vmatpush3.bf16.msra.mxu0 %v10999_v61  ;;  %v11035_v61 = vld [vmem:[#allocation5 + $0x1038] sm:$0xff]  }
 0x24e   :  { %10069 = vmatprep.subr.bf16.mxu0 %v11001_v4  ;;  %v138_v4 = vld [vmem:[#allocation2 + $0x208] sm:$0xff] }
 0x24f   :  { %10088 = vmatpush3.bf16.msra.mxu1 %v10996_v62  ;;  %v11032_v62 = vld [vmem:[#allocation5 + $0x10b0] sm:$0xff]  }
 0x250   :  { %10089 = vmatprep.subr.bf16.mxu1 %v10998_v59  ;;  %v11034_v59 = vld [vmem:[#allocation5 + $0x10f8] sm:$0xff]  }
 0x251   :  { %10070 = vmatpush3.bf16.msra.mxu0 %v11003_v1  ;;  %v140_v1 = vld [vmem:[#allocation2 + $0x218] sm:$0xff] }
 0x252   :  { %10099 = vmatprep.subr.bf16.mxu0 %v11005_v18  ;;  %v332_v10 = vpack.c.bf16 %v236_v8, %v140_v1  ;;  %v11041_v18 = vld [vmem:[#allocation5 + $0x1148] sm:$0xff]   ;;  %v141_v1 = vld [vmem:[#allocation2 + $0x220] sm:$0xff]  ;;  %v143_v8 = vld [vmem:[#allocation2 + $0x230] sm:$0xff] }
 0x253   :  { %10090 = vmatpush3.bf16.msra.mxu1 %v11000_v2  ;;  %v11036_v2 = vld [vmem:[#allocation5 + $0x10b8] sm:$0xff]  }
 0x254   :  { %10091 = vmatprep.subr.bf16.mxu1 %v11002_v63  ;;  %7775 = vmatmul.mubr.bf16.vlgmr.msra.gmra.mrb[60].mxu0 %v325_v12  ;;  %v234_v63 = vld [vmem:[#allocation2 + $0x508] sm:$0xff]  ;;  %v11039_v12 = vld [vmem:[#allocation5 + $0x1100] sm:$0xff]  }
 0x255   :  { %10100 = vmatpush3.bf16.msra.mxu0 %v11007_v16  ;;  %v11042_v16 = vld [vmem:[#allocation5 + $0x11c8] sm:$0xff]  }
 0x256   :  { %10101 = vmatprep.subr.bf16.mxu0 %v11009_v21  ;;  %v11043_v21 = vld [vmem:[#allocation5 + $0x1108] sm:$0xff]  }
 0x257   :  { %10092 = vmatpush3.bf16.msra.mxu1 %v11004_v6  ;;  %v330_v6 = vpack.c.bf16 %v234_v63, %v138_v4 }
 0x258   :  { %10121 = vmatprep.subr.bf16.mxu1 %v11006_v19 }
 0x259   :  { %10102 = vmatpush3.bf16.msra.mxu0 %v11011_v24  ;;  %7856 = vmatprep.mubr.bf16.mxu0 %v330_v6  ;;  %v237_v6 = vld [vmem:[#allocation2 + $0x520] sm:$0xff] }
 0x25a   :  { %7816 = vmatmul.mubr.bf16.vlgmr.msra.gmra.mrb[60].mxu1 %v327_v17  ;;  %10103 = vmatprep.subr.bf16.mxu0 %v11013_v28  ;;  %v11040_v17 = vld [vmem:[#allocation5 + $0x1180] sm:$0xff]   ;;  %v333_v3 = vpack.c.bf16 %v237_v6, %v141_v1 }
 0x25b   :  { %10122 = vmatpush3.bf16.msra.mxu1 %v11008_v20  ;;  %7897 = vmatprep.mubr.bf16.mxu1 %v332_v10  ;;  %v335_v10 = vpack.c.bf16 %v239_v5, %v143_v8  ;;  %v11101_v8 = vld [vmem:[#allocation5 + $0x1340] sm:$0xff]  }
 0x25c   :  { %10123 = vmatprep.subr.bf16.mxu1 %v11010_v22  ;;  %v11103_v5 = vld [vmem:[#allocation5 + $0x1300] sm:$0xff]  }
 0x25d   :  { %10104 = vmatpush3.bf16.msra.mxu0 %v11015_v34  ;;  %v11048_v34 = vld [vmem:[#allocation5 + $0x1190] sm:$0xff]  }
 0x25e   :  { %10105 = vmatprep.subr.bf16.mxu0 %v11017_v39 }
 0x25f   :  { %10124 = vmatpush3.bf16.msra.mxu1 %v11012_v26  ;;  %v11045_v26 = vld [vmem:[#allocation5 + $0x1150] sm:$0xff]  }
 0x260   :  { %10125 = vmatprep.subr.bf16.mxu1 %v11014_v31 }
 0x261   :  { %10106 = vmatpush3.bf16.msra.mxu0 %v11019_v46  ;;  %v11053_v46 = vld [vmem:[#allocation5 + $0x1160] sm:$0xff]  }
 0x263   :  { %10126 = vmatpush3.bf16.msra.mxu1 %v11016_v37 }
 0x264   :  { %10127 = vmatprep.subr.bf16.mxu1 %v11018_v44  ;;  %v11051_v44 = vld [vmem:[#allocation5 + $0x1118] sm:$0xff]  }
 0x266   :  { %v9807_v23 = vpop.f32.mrb[36].mxu0 }
 0x267   :  { %v9808_v27 = vpop.f32.mrb[37].mxu0  ;;  %10128 = vmatpush3.bf16.msra.mxu1 %v11020_v49  ;;  %v11055_v49 = vld [vmem:[#allocation5 + $0x1120] sm:$0xff]  }
 0x268   :  { %v9809_v29 = vadd.f32 %v9808_v27, %v9807_v23  ;;  %v9810_v33 = vpop.f32.mrb[38].mxu0  ;;  %10129 = vmatprep.subr.bf16.mxu1 %v11022_v52  ;;  %v11044_v23 = vld [vmem:[#allocation5 + $0x1188] sm:$0xff]  }
 0x269   :  { %v9811_v38 = vpop.f32.mrb[39].mxu0  ;;  %v11057_v52 = vld [vmem:[#allocation5 + $0x1168] sm:$0xff]  }
 0x26a   :  { %v7285_v35 = vadd.f32 %v9809_v29, %v11525_v43  ;;  %v9812_v41 = vadd.f32 %v9811_v38, %v9810_v33  ;;  %v11021_v43 = vld [vmem:[#allocation5 + $0x1060] sm:$0xff]   ;;  %v11046_v29 = vld [vmem:[#allocation5 + $0x11d0] sm:$0xff]   ;;  %v11049_v38 = vld [vmem:[#allocation5 + $0x1158] sm:$0xff]  }
 0x26b   :  { %10107 = vmatprep.subr.bf16.mxu0 %v11021_v43  ;;  %10130 = vmatpush3.bf16.msra.mxu1 %v11024_v54  ;;  %v11056_v43 = vld [vmem:[#allocation5 + $0x11a0] sm:$0xff]   ;;  %v11060_v54 = vld [vmem:[#allocation5 + $0x11a8] sm:$0xff]  }
 0x26c   :  { %v9829_v25 = vpop.f32.mrb[36].mxu1  ;;  %v7288_v48 = vadd.f32 %v9812_v41, %v11528_v53  ;;  %10108 = vmatpush3.bf16.msra.mxu0 %v11023_v47  ;;  %10131 = vmatprep.subr.bf16.mxu1 %v11026_v51  ;;  %v11028_v53 = vld [vmem:[#allocation5 + $0x10a8] sm:$0xff]   ;;  %v11050_v41 = vld [vmem:[#allocation5 + $0x11d8] sm:$0xff]   ;;  %v11062_v51 = vld [vmem:[#allocation5 + $0x11f0] sm:$0xff]  }
 0x26d   :  { %v9830_v30 = vpop.f32.mrb[37].mxu1  ;;  %10109 = vmatprep.subr.bf16.mxu0 %v11025_v56  ;;  %v11058_v47 = vld [vmem:[#allocation5 + $0x11e8] sm:$0xff]   ;;  %v11061_v56 = vld [vmem:[#allocation5 + $0x1170] sm:$0xff]  }
 0x26e   :  { %v9831_v32 = vadd.f32 %v9830_v30, %v9829_v25  ;;  %v9832_v36 = vpop.f32.mrb[38].mxu1 }
 0x26f   :  { %v9833_v42 = vpop.f32.mrb[39].mxu1  ;;  %10132 = vmatpush3.bf16.msra.mxu1 %v11028_v53  ;;  %v11064_v53 = vld [vmem:[#allocation5 + $0x11b0] sm:$0xff]  }
 0x270   :  { %v11531_v40 = vadd.f32 %v9831_v32, %v7285_v35  ;;  %v9834_v45 = vadd.f32 %v9833_v42, %v9832_v36  ;;  %10110 = vmatpush3.bf16.msra.mxu0 %v11027_v58  ;;  %10133 = vmatprep.subr.bf16.mxu1 %v11030_v55  ;;  %v11047_v32 = vld [vmem:[#allocation5 + $0x1110] sm:$0xff]   ;;  %v11066_v55 = vld [vmem:[#allocation5 + $0x11f8] sm:$0xff]  }
 0x271   :  { %10111 = vmatprep.subr.bf16.mxu0 %v11029_v60  ;;  %v11063_v58 = vld [vmem:[#allocation5 + $0x1130] sm:$0xff]   ;;  %v11065_v60 = vld [vmem:[#allocation5 + $0x1178] sm:$0xff]  }
 0x272   :  { %v11534_v50 = vadd.f32 %v9834_v45, %v7288_v48  ;;  %v11054_v48 = vld [vmem:[#allocation5 + $0x11e0] sm:$0xff]  }
 0x273   :  { %10134 = vmatpush3.bf16.msra.mxu1 %v11032_v62  ;;  %v11068_v62 = vld [vmem:[#allocation5 + $0x11b8] sm:$0xff]  }
 0x274   :  { %10112 = vmatpush3.bf16.msra.mxu0 %v11031_v57  ;;  %10135 = vmatprep.subr.bf16.mxu1 %v11034_v59  ;;  %v11067_v57 = vld [vmem:[#allocation5 + $0x1138] sm:$0xff]   ;;  %v238_v59 = vld [vmem:[#allocation2 + $0x528] sm:$0xff] }
 0x275   :  { %10113 = vmatprep.subr.bf16.mxu0 %v11033_v0  ;;  %v142_v0 = vld [vmem:[#allocation2 + $0x228] sm:$0xff] }
 0x276   :  { %v334_v4 = vpack.c.bf16 %v238_v59, %v142_v0  ;;  %v244_v0 = vld [vmem:[#allocation2 + $0x558] sm:$0xff]  ;;  %v145_v59 = vld [vmem:[#allocation2 + $0x240] sm:$0xff] }
 0x277   :  { %10136 = vmatpush3.bf16.msra.mxu1 %v11036_v2  ;;  %v240_v2 = vld [vmem:[#allocation2 + $0x538] sm:$0xff] }
 0x278   :  { %10114 = vmatpush3.bf16.msra.mxu0 %v11035_v61  ;;  %10165 = vmatprep.subr.bf16.mxu1 %v11038_v15  ;;  %v144_v61 = vld [vmem:[#allocation2 + $0x238] sm:$0xff] }
 0x279   :  { %10143 = vmatprep.subr.bf16.mxu0 %v11037_v14  ;;  %v336_v63 = vpack.c.bf16 %v240_v2, %v144_v61  ;;  %v11073_v14 = vld [vmem:[#allocation5 + $0x1248] sm:$0xff]   ;;  %v241_v2 = vld [vmem:[#allocation2 + $0x540] sm:$0xff] }
 0x27a   :  { %7898 = vmatmul.mubr.bf16.vlgmr.msra.gmra.mrb[64].mxu1 %v331_v13  ;;  %v11072_v13 = vld [vmem:[#allocation5 + $0x1280] sm:$0xff]   ;;  %v337_v1 = vpack.c.bf16 %v241_v2, %v145_v59  ;;  %v151_v59 = vld [vmem:[#allocation2 + $0x270] sm:$0xff] }
 0x27b   :  { %7857 = vmatmul.mubr.bf16.vlgmr.msra.gmra.mrb[64].mxu0 %v329_v11  ;;  %10166 = vmatpush3.bf16.msra.mxu1 %v11040_v17  ;;  %v11069_v11 = vld [vmem:[#allocation5 + $0x1240] sm:$0xff]  }
 0x27c   :  { %10144 = vmatpush3.bf16.msra.mxu0 %v11039_v12  ;;  %10167 = vmatprep.subr.bf16.mxu1 %v11042_v16  ;;  %v11074_v12 = vld [vmem:[#allocation5 + $0x12c8] sm:$0xff]  }
 0x27d   :  { %10145 = vmatprep.subr.bf16.mxu0 %v11041_v18  ;;  %7938 = vmatprep.mubr.bf16.mxu0 %v334_v4  ;;  %v11075_v18 = vld [vmem:[#allocation5 + $0x1208] sm:$0xff]   ;;  %v147_v4 = vld [vmem:[#allocation2 + $0x250] sm:$0xff] }
 0x27e   :  { %7979 = vmatprep.mubr.bf16.mxu1 %v336_v63  ;;  %v11076_v16 = vld [vmem:[#allocation5 + $0x1288] sm:$0xff]   ;;  %v243_v63 = vld [vmem:[#allocation2 + $0x550] sm:$0xff] }
 0x27f   :  { %10168 = vmatpush3.bf16.msra.mxu1 %v11044_v23  ;;  %v339_v6 = vpack.c.bf16 %v243_v63, %v147_v4  ;;  %v11133_v4 = vld [vmem:[#allocation5 + $0x1440] sm:$0xff]  }
 0x280   :  { %10146 = vmatpush3.bf16.msra.mxu0 %v11043_v21  ;;  %10169 = vmatprep.subr.bf16.mxu1 %v11046_v29  ;;  %v11134_v63 = vld [vmem:[#allocation5 + $0x14c0] sm:$0xff]  }
 0x281   :  { %10147 = vmatprep.subr.bf16.mxu0 %v11045_v26 }
 0x283   :  { %10170 = vmatpush3.bf16.msra.mxu1 %v11048_v34  ;;  %v11081_v34 = vld [vmem:[#allocation5 + $0x1258] sm:$0xff]  }
 0x284   :  { %10148 = vmatpush3.bf16.msra.mxu0 %v11047_v32  ;;  %10171 = vmatprep.subr.bf16.mxu1 %v11050_v41 }
 0x285   :  { %10149 = vmatprep.subr.bf16.mxu0 %v11049_v38 }
 0x286   :  { %v9851_v19 = vpop.f32.mrb[40].mxu0 }
 0x287   :  { %v9852_v22 = vpop.f32.mrb[41].mxu0 }
 0x288   :  { %v9853_v24 = vadd.f32 %v9852_v22, %v9851_v19  ;;  %v9854_v28 = vpop.f32.mrb[42].mxu0  ;;  %10150 = vmatpush3.bf16.msra.mxu0 %v11051_v44  ;;  %v11077_v22 = vld [vmem:[#allocation5 + $0x1250] sm:$0xff]   ;;  %v11086_v44 = vld [vmem:[#allocation5 + $0x12e0] sm:$0xff]  }
 0x289   :  { %v9855_v33 = vpop.f32.mrb[43].mxu0  ;;  %10151 = vmatprep.subr.bf16.mxu0 %v11053_v46  ;;  %v11088_v46 = vld [vmem:[#allocation5 + $0x12a0] sm:$0xff]  }
 0x28a   :  { %v7367_v30 = vadd.f32 %v9853_v24, %v11531_v40  ;;  %v9856_v36 = vadd.f32 %v9855_v33, %v9854_v28  ;;  %v11052_v40 = vld [vmem:[#allocation5 + $0x1198] sm:$0xff]   ;;  %v11079_v28 = vld [vmem:[#allocation5 + $0x1210] sm:$0xff]  }
 0x28b   :  { %10172 = vmatpush3.bf16.msra.mxu1 %v11052_v40  ;;  %v11087_v40 = vld [vmem:[#allocation5 + $0x1220] sm:$0xff]  }
 0x28c   :  { %v9873_v20 = vpop.f32.mrb[40].mxu1  ;;  %v7370_v42 = vadd.f32 %v9856_v36, %v11534_v50  ;;  %10173 = vmatprep.subr.bf16.mxu1 %v11054_v48  ;;  %10152 = vmatpush3.bf16.msra.mxu0 %v11055_v49  ;;  %v11059_v50 = vld [vmem:[#allocation5 + $0x1128] sm:$0xff]  }
 0x28d   :  { %v9874_v25 = vpop.f32.mrb[41].mxu1  ;;  %10153 = vmatprep.subr.bf16.mxu0 %v11057_v52  ;;  %v11089_v48 = vld [vmem:[#allocation5 + $0x1268] sm:$0xff]   ;;  %v11093_v52 = vld [vmem:[#allocation5 + $0x1270] sm:$0xff]  }
 0x28e   :  { %v9875_v27 = vadd.f32 %v9874_v25, %v9873_v20  ;;  %v9876_v31 = vpop.f32.mrb[42].mxu1  ;;  %v11078_v25 = vld [vmem:[#allocation5 + $0x12d0] sm:$0xff]   ;;  %v11090_v49 = vld [vmem:[#allocation5 + $0x12e8] sm:$0xff]  }
 0x28f   :  { %v9877_v37 = vpop.f32.mrb[43].mxu1  ;;  %10174 = vmatpush3.bf16.msra.mxu1 %v11056_v43  ;;  %v11092_v43 = vld [vmem:[#allocation5 + $0x12a8] sm:$0xff]  }
 0x290   :  { %v11537_v35 = vadd.f32 %v9875_v27, %v7367_v30  ;;  %v9878_v39 = vadd.f32 %v9877_v37, %v9876_v31  ;;  %10175 = vmatprep.subr.bf16.mxu1 %v11058_v47  ;;  %10154 = vmatpush3.bf16.msra.mxu0 %v11059_v50  ;;  %v11080_v30 = vld [vmem:[#allocation5 + $0x1290] sm:$0xff]   ;;  %v11082_v37 = vld [vmem:[#allocation5 + $0x12d8] sm:$0xff]  }
 0x291   :  { %10155 = vmatprep.subr.bf16.mxu0 %v11061_v56  ;;  %v11094_v47 = vld [vmem:[#allocation5 + $0x12f0] sm:$0xff]   ;;  %v11097_v56 = vld [vmem:[#allocation5 + $0x1278] sm:$0xff]  }
 0x292   :  { %v11540_v45 = vadd.f32 %v9878_v39, %v7370_v42  ;;  %v11083_v39 = vld [vmem:[#allocation5 + $0x1218] sm:$0xff]   ;;  %v11085_v42 = vld [vmem:[#allocation5 + $0x1260] sm:$0xff]   ;;  %v11095_v50 = vld [vmem:[#allocation5 + $0x1230] sm:$0xff]  }
 0x293   :  { %10176 = vmatpush3.bf16.msra.mxu1 %v11060_v54  ;;  %v11096_v54 = vld [vmem:[#allocation5 + $0x12b0] sm:$0xff]  }
 0x294   :  { %10177 = vmatprep.subr.bf16.mxu1 %v11062_v51  ;;  %10156 = vmatpush3.bf16.msra.mxu0 %v11063_v58  ;;  %v11098_v51 = vld [vmem:[#allocation5 + $0x12f8] sm:$0xff]  }
 0x295   :  { %10157 = vmatprep.subr.bf16.mxu0 %v11065_v60  ;;  %v11099_v58 = vld [vmem:[#allocation5 + $0x1238] sm:$0xff]   ;;  %v146_v60 = vld [vmem:[#allocation2 + $0x248] sm:$0xff] }
 0x297   :  { %10178 = vmatpush3.bf16.msra.mxu1 %v11064_v53  ;;  %v11100_v53 = vld [vmem:[#allocation5 + $0x12b8] sm:$0xff]  }
 0x298   :  { %10179 = vmatprep.subr.bf16.mxu1 %v11066_v55  ;;  %10158 = vmatpush3.bf16.msra.mxu0 %v11067_v57  ;;  %v242_v55 = vld [vmem:[#allocation2 + $0x548] sm:$0xff] }
 0x299   :  { %10187 = vmatprep.subr.bf16.mxu0 %v11069_v11  ;;  %v338_v57 = vpack.c.bf16 %v242_v55, %v146_v60  ;;  %v11105_v11 = vld [vmem:[#allocation5 + $0x1348] sm:$0xff]   ;;  %v248_v60 = vld [vmem:[#allocation2 + $0x578] sm:$0xff]  ;;  %v149_v55 = vld [vmem:[#allocation2 + $0x260] sm:$0xff] }
 0x29b   :  { %10180 = vmatpush3.bf16.msra.mxu1 %v11068_v62  ;;  %7939 = vmatmul.mubr.bf16.vlgmr.msra.gmra.mrb[68].mxu0 %v333_v3  ;;  %v148_v62 = vld [vmem:[#allocation2 + $0x258] sm:$0xff]  ;;  %v11102_v3 = vld [vmem:[#allocation5 + $0x13c0] sm:$0xff]  }
 0x29c   :  { %10209 = vmatprep.subr.bf16.mxu1 %v11070_v7  ;;  %10188 = vmatpush3.bf16.msra.mxu0 %v11071_v9  ;;  %v340_v61 = vpack.c.bf16 %v244_v0, %v148_v62  ;;  %v11106_v7 = vld [vmem:[#allocation5 + $0x13c8] sm:$0xff]  }
 0x29d   :  { %10189 = vmatprep.subr.bf16.mxu0 %v11073_v14  ;;  %8020 = vmatprep.mubr.bf16.mxu0 %v338_v57  ;;  %v245_v57 = vld [vmem:[#allocation2 + $0x560] sm:$0xff] }
 0x29e   :  { %7980 = vmatmul.mubr.bf16.vlgmr.msra.gmra.mrb[68].mxu1 %v335_v10  ;;  %v11104_v10 = vld [vmem:[#allocation5 + $0x1380] sm:$0xff]   ;;  %v341_v0 = vpack.c.bf16 %v245_v57, %v149_v55  ;;  %v251_v57 = vld [vmem:[#allocation2 + $0x590] sm:$0xff] }
 0x29f   :  { %10210 = vmatpush3.bf16.msra.mxu1 %v11072_v13  ;;  %8061 = vmatprep.mubr.bf16.mxu1 %v340_v61  ;;  %v11107_v13 = vld [vmem:[#allocation5 + $0x1308] sm:$0xff]   ;;  %v247_v61 = vld [vmem:[#allocation2 + $0x570] sm:$0xff] }
 0x2a0   :  { %10211 = vmatprep.subr.bf16.mxu1 %v11074_v12  ;;  %10190 = vmatpush3.bf16.msra.mxu0 %v11075_v18  ;;  %v343_v2 = vpack.c.bf16 %v247_v61, %v151_v59  ;;  %v11166_v59 = vld [vmem:[#allocation5 + $0x15c0] sm:$0xff]  }
 0x2a1   :  { %10191 = vmatprep.subr.bf16.mxu0 %v11077_v22  ;;  %v11111_v22 = vld [vmem:[#allocation5 + $0x1310] sm:$0xff]   ;;  %v11167_v61 = vld [vmem:[#allocation5 + $0x1500] sm:$0xff]  }
 0x2a3   :  { %10212 = vmatpush3.bf16.msra.mxu1 %v11076_v16  ;;  %v11110_v16 = vld [vmem:[#allocation5 + $0x13d0] sm:$0xff]  }
 0x2a4   :  { %10213 = vmatprep.subr.bf16.mxu1 %v11078_v25  ;;  %10192 = vmatpush3.bf16.msra.mxu0 %v11079_v28  ;;  %v11112_v25 = vld [vmem:[#allocation5 + $0x1390] sm:$0xff]  }
 0x2a5   :  { %10193 = vmatprep.subr.bf16.mxu0 %v11081_v34  ;;  %v11115_v34 = vld [vmem:[#allocation5 + $0x1318] sm:$0xff]  }
 0x2a6   :  { %v9895_v15 = vpop.f32.mrb[44].mxu0 }
 0x2a7   :  { %v9896_v19 = vpop.f32.mrb[45].mxu0  ;;  %10214 = vmatpush3.bf16.msra.mxu1 %v11080_v30 }
 0x2a8   :  { %v9897_v20 = vadd.f32 %v9896_v19, %v9895_v15  ;;  %v9898_v24 = vpop.f32.mrb[46].mxu0  ;;  %10215 = vmatprep.subr.bf16.mxu1 %v11082_v37  ;;  %10194 = vmatpush3.bf16.msra.mxu0 %v11083_v39  ;;  %v11108_v15 = vld [vmem:[#allocation5 + $0x1388] sm:$0xff]   ;;  %v11116_v37 = vld [vmem:[#allocation5 + $0x1398] sm:$0xff]   ;;  %v11118_v39 = vld [vmem:[#allocation5 + $0x13e0] sm:$0xff]  }
 0x2a9   :  { %v9899_v29 = vpop.f32.mrb[47].mxu0  ;;  %10195 = vmatprep.subr.bf16.mxu0 %v11085_v42  ;;  %v11120_v42 = vld [vmem:[#allocation5 + $0x13a0] sm:$0xff]  }
 0x2aa   :  { %v7449_v26 = vadd.f32 %v9897_v20, %v11537_v35  ;;  %v9900_v32 = vadd.f32 %v9899_v29, %v9898_v24  ;;  %v11084_v35 = vld [vmem:[#allocation5 + $0x1298] sm:$0xff]  }
 0x2ab   :  { %10216 = vmatpush3.bf16.msra.mxu1 %v11084_v35  ;;  %v11119_v35 = vld [vmem:[#allocation5 + $0x1320] sm:$0xff]  }
 0x2ac   :  { %v9917_v17 = vpop.f32.mrb[44].mxu1  ;;  %v7452_v38 = vadd.f32 %v9900_v32, %v11540_v45  ;;  %10217 = vmatprep.subr.bf16.mxu1 %v11086_v44  ;;  %10196 = vmatpush3.bf16.msra.mxu0 %v11087_v40  ;;  %v11091_v45 = vld [vmem:[#allocation5 + $0x1228] sm:$0xff]   ;;  %v11114_v32 = vld [vmem:[#allocation5 + $0x13d8] sm:$0xff]  }
 0x2ad   :  { %v9918_v21 = vpop.f32.mrb[45].mxu1  ;;  %10197 = vmatprep.subr.bf16.mxu0 %v11089_v48  ;;  %v11121_v44 = vld [vmem:[#allocation5 + $0x1368] sm:$0xff]   ;;  %v11125_v48 = vld [vmem:[#allocation5 + $0x1370] sm:$0xff]  }
 0x2ae   :  { %v9919_v23 = vadd.f32 %v9918_v21, %v9917_v17  ;;  %v9920_v27 = vpop.f32.mrb[46].mxu1  ;;  %v11109_v17 = vld [vmem:[#allocation5 + $0x1350] sm:$0xff]   ;;  %v11122_v40 = vld [vmem:[#allocation5 + $0x13e8] sm:$0xff]  }
 0x2af   :  { %v9921_v33 = vpop.f32.mrb[47].mxu1  ;;  %10218 = vmatpush3.bf16.msra.mxu1 %v11088_v46  ;;  %v11123_v46 = vld [vmem:[#allocation5 + $0x1328] sm:$0xff]  }
 0x2b0   :  { %v11543_v31 = vadd.f32 %v9919_v23, %v7449_v26  ;;  %v9922_v36 = vadd.f32 %v9921_v33, %v9920_v27  ;;  %10219 = vmatprep.subr.bf16.mxu1 %v11090_v49  ;;  %10198 = vmatpush3.bf16.msra.mxu0 %v11091_v45  ;;  %v11113_v27 = vld [vmem:[#allocation5 + $0x1358] sm:$0xff]   ;;  %v11126_v49 = vld [vmem:[#allocation5 + $0x13f0] sm:$0xff]  }
 0x2b1   :  { %10199 = vmatprep.subr.bf16.mxu0 %v11093_v52  ;;  %v11127_v45 = vld [vmem:[#allocation5 + $0x1330] sm:$0xff]   ;;  %v11129_v52 = vld [vmem:[#allocation5 + $0x1378] sm:$0xff]  }
 0x2b2   :  { %v11546_v41 = vadd.f32 %v9922_v36, %v7452_v38 }
 0x2b3   :  { %10220 = vmatpush3.bf16.msra.mxu1 %v11092_v43  ;;  %v11128_v43 = vld [vmem:[#allocation5 + $0x13b0] sm:$0xff]  }
 0x2b4   :  { %10221 = vmatprep.subr.bf16.mxu1 %v11094_v47  ;;  %10200 = vmatpush3.bf16.msra.mxu0 %v11095_v50  ;;  %v11130_v47 = vld [vmem:[#allocation5 + $0x13f8] sm:$0xff]  }
 0x2b5   :  { %10201 = vmatprep.subr.bf16.mxu0 %v11097_v56  ;;  %v11131_v50 = vld [vmem:[#allocation5 + $0x1338] sm:$0xff]   ;;  %v150_v56 = vld [vmem:[#allocation2 + $0x268] sm:$0xff] }
 0x2b7   :  { %10222 = vmatpush3.bf16.msra.mxu1 %v11096_v54  ;;  %v11132_v54 = vld [vmem:[#allocation5 + $0x13b8] sm:$0xff]  }
 0x2b8   :  { %10223 = vmatprep.subr.bf16.mxu1 %v11098_v51  ;;  %10202 = vmatpush3.bf16.msra.mxu0 %v11099_v58  ;;  %v246_v51 = vld [vmem:[#allocation2 + $0x568] sm:$0xff]  ;;  %v152_v58 = vld [vmem:[#allocation2 + $0x278] sm:$0xff] }
 0x2b9   :  { %10231 = vmatprep.subr.bf16.mxu0 %v11101_v8  ;;  %v344_v62 = vpack.c.bf16 %v248_v60, %v152_v58  ;;  %v11137_v8 = vld [vmem:[#allocation5 + $0x1448] sm:$0xff]   ;;  %v153_v58 = vld [vmem:[#allocation2 + $0x280] sm:$0xff]  ;;  %v155_v60 = vld [vmem:[#allocation2 + $0x290] sm:$0xff] }
 0x2bb   :  { %10224 = vmatpush3.bf16.msra.mxu1 %v11100_v53  ;;  %8021 = vmatmul.mubr.bf16.vlgmr.msra.gmra.mrb[72].mxu0 %v337_v1  ;;  %v342_v53 = vpack.c.bf16 %v246_v51, %v150_v56  ;;  %v11135_v1 = vld [vmem:[#allocation5 + $0x1400] sm:$0xff]  }
 0x2bc   :  { %10253 = vmatprep.subr.bf16.mxu1 %v11102_v3  ;;  %10232 = vmatpush3.bf16.msra.mxu0 %v11103_v5  ;;  %v11138_v5 = vld [vmem:[#allocation5 + $0x14c8] sm:$0xff]  }
 0x2bd   :  { %10233 = vmatprep.subr.bf16.mxu0 %v11105_v11  ;;  %8102 = vmatprep.mubr.bf16.mxu0 %v342_v53  ;;  %v11139_v11 = vld [vmem:[#allocation5 + $0x1408] sm:$0xff]   ;;  %v249_v53 = vld [vmem:[#allocation2 + $0x580] sm:$0xff] }
 0x2be   :  { %8062 = vmatmul.mubr.bf16.vlgmr.msra.gmra.mrb[72].mxu1 %v339_v6  ;;  %v11136_v6 = vld [vmem:[#allocation5 + $0x1480] sm:$0xff]   ;;  %v345_v55 = vpack.c.bf16 %v249_v53, %v153_v58 }
 0x2bf   :  { %10254 = vmatpush3.bf16.msra.mxu1 %v11104_v10  ;;  %8143 = vmatprep.mubr.bf16.mxu1 %v344_v62  ;;  %v347_v62 = vpack.c.bf16 %v251_v57, %v155_v60  ;;  %v11197_v60 = vld [vmem:[#allocation5 + $0x1640] sm:$0xff]  }
 0x2c0   :  { %10255 = vmatprep.subr.bf16.mxu1 %v11106_v7  ;;  %10234 = vmatpush3.bf16.msra.mxu0 %v11107_v13  ;;  %v11199_v57 = vld [vmem:[#allocation5 + $0x1600] sm:$0xff]  }
 0x2c1   :  { %10235 = vmatprep.subr.bf16.mxu0 %v11109_v17 }
 0x2c3   :  { %10256 = vmatpush3.bf16.msra.mxu1 %v11108_v15  ;;  %v11141_v15 = vld [vmem:[#allocation5 + $0x1450] sm:$0xff]  }
 0x2c4   :  { %10257 = vmatprep.subr.bf16.mxu1 %v11110_v16  ;;  %10236 = vmatpush3.bf16.msra.mxu0 %v11111_v22  ;;  %v11144_v22 = vld [vmem:[#allocation5 + $0x1490] sm:$0xff]  }
 0x2c5   :  { %10237 = vmatprep.subr.bf16.mxu0 %v11113_v27 }
 0x2c6   :  { %v9939_v9 = vpop.f32.mrb[48].mxu0 }
 0x2c7   :  { %v9940_v12 = vpop.f32.mrb[49].mxu0  ;;  %10258 = vmatpush3.bf16.msra.mxu1 %v11112_v25 }
 0x2c8   :  { %v9941_v18 = vadd.f32 %v9940_v12, %v9939_v9  ;;  %v9942_v21 = vpop.f32.mrb[50].mxu0  ;;  %10259 = vmatprep.subr.bf16.mxu1 %v11114_v32  ;;  %10238 = vmatpush3.bf16.msra.mxu0 %v11115_v34  ;;  %v11140_v9 = vld [vmem:[#allocation5 + $0x1488] sm:$0xff]   ;;  %v11147_v32 = vld [vmem:[#allocation5 + $0x1418] sm:$0xff]   ;;  %v11149_v34 = vld [vmem:[#allocation5 + $0x1460] sm:$0xff]  }
 0x2c9   :  { %v9943_v26 = vpop.f32.mrb[51].mxu0 }
 0x2ca   :  { %v7531_v23 = vadd.f32 %v9941_v18, %v11543_v31  ;;  %v9944_v29 = vadd.f32 %v9943_v26, %v9942_v21  ;;  %v11117_v31 = vld [vmem:[#allocation5 + $0x1360] sm:$0xff]   ;;  %v11142_v18 = vld [vmem:[#allocation5 + $0x14d0] sm:$0xff]   ;;  %v11145_v26 = vld [vmem:[#allocation5 + $0x1458] sm:$0xff]  }
 0x2cb   :  { %10260 = vmatpush3.bf16.msra.mxu1 %v11116_v37  ;;  %10239 = vmatprep.subr.bf16.mxu0 %v11117_v31  ;;  %v11151_v37 = vld [vmem:[#allocation5 + $0x1420] sm:$0xff]  }
 0x2cc   :  { %v9961_v14 = vpop.f32.mrb[48].mxu1  ;;  %v7534_v36 = vadd.f32 %v9944_v29, %v11546_v41  ;;  %10261 = vmatprep.subr.bf16.mxu1 %v11118_v39  ;;  %10240 = vmatpush3.bf16.msra.mxu0 %v11119_v35  ;;  %v11124_v41 = vld [vmem:[#allocation5 + $0x13a8] sm:$0xff]   ;;  %v11146_v29 = vld [vmem:[#allocation5 + $0x14d8] sm:$0xff]   ;;  %v11152_v31 = vld [vmem:[#allocation5 + $0x14a0] sm:$0xff]  }
 0x2cd   :  { %v9962_v19 = vpop.f32.mrb[49].mxu1  ;;  %10241 = vmatprep.subr.bf16.mxu0 %v11121_v44  ;;  %v11153_v39 = vld [vmem:[#allocation5 + $0x1468] sm:$0xff]   ;;  %v11157_v44 = vld [vmem:[#allocation5 + $0x1470] sm:$0xff]  }
 0x2ce   :  { %v9963_v20 = vadd.f32 %v9962_v19, %v9961_v14  ;;  %v9964_v24 = vpop.f32.mrb[50].mxu1  ;;  %v11154_v35 = vld [vmem:[#allocation5 + $0x14e8] sm:$0xff]  }
 0x2cf   :  { %v9965_v30 = vpop.f32.mrb[51].mxu1  ;;  %10262 = vmatpush3.bf16.msra.mxu1 %v11120_v42  ;;  %v11156_v42 = vld [vmem:[#allocation5 + $0x14a8] sm:$0xff]  }
 0x2d0   :  { %v11549_v28 = vadd.f32 %v9963_v20, %v7531_v23  ;;  %v9966_v33 = vadd.f32 %v9965_v30, %v9964_v24  ;;  %10263 = vmatprep.subr.bf16.mxu1 %v11122_v40  ;;  %10242 = vmatpush3.bf16.msra.mxu0 %v11123_v46  ;;  %v11143_v20 = vld [vmem:[#allocation5 + $0x1410] sm:$0xff]  }
 0x2d1   :  { %10243 = vmatprep.subr.bf16.mxu0 %v11125_v48  ;;  %v11158_v40 = vld [vmem:[#allocation5 + $0x14f0] sm:$0xff]   ;;  %v11161_v48 = vld [vmem:[#allocation5 + $0x1478] sm:$0xff]  }
 0x2d2   :  { %v11552_v38 = vadd.f32 %v9966_v33, %v7534_v36  ;;  %v11150_v36 = vld [vmem:[#allocation5 + $0x14e0] sm:$0xff]   ;;  %v11159_v46 = vld [vmem:[#allocation5 + $0x1430] sm:$0xff]  }
 0x2d3   :  { %10264 = vmatpush3.bf16.msra.mxu1 %v11124_v41  ;;  %v11160_v41 = vld [vmem:[#allocation5 + $0x14b0] sm:$0xff]  }
 0x2d4   :  { %10265 = vmatprep.subr.bf16.mxu1 %v11126_v49  ;;  %10244 = vmatpush3.bf16.msra.mxu0 %v11127_v45  ;;  %v11162_v49 = vld [vmem:[#allocation5 + $0x14f8] sm:$0xff]  }
 0x2d5   :  { %10245 = vmatprep.subr.bf16.mxu0 %v11129_v52  ;;  %v11163_v45 = vld [vmem:[#allocation5 + $0x1438] sm:$0xff]   ;;  %v154_v52 = vld [vmem:[#allocation2 + $0x288] sm:$0xff] }
 0x2d7   :  { %10266 = vmatpush3.bf16.msra.mxu1 %v11128_v43  ;;  %v11164_v43 = vld [vmem:[#allocation5 + $0x14b8] sm:$0xff]  }
 0x2d8   :  { %10267 = vmatprep.subr.bf16.mxu1 %v11130_v47  ;;  %10246 = vmatpush3.bf16.msra.mxu0 %v11131_v50  ;;  %v250_v47 = vld [vmem:[#allocation2 + $0x588] sm:$0xff]  ;;  %v156_v50 = vld [vmem:[#allocation2 + $0x298] sm:$0xff] }
 0x2d9   :  { %10275 = vmatprep.subr.bf16.mxu0 %v11133_v4  ;;  %v346_v56 = vpack.c.bf16 %v250_v47, %v154_v52  ;;  %v11169_v4 = vld [vmem:[#allocation5 + $0x1548] sm:$0xff]   ;;  %v256_v52 = vld [vmem:[#allocation2 + $0x5b8] sm:$0xff]  ;;  %v157_v47 = vld [vmem:[#allocation2 + $0x2a0] sm:$0xff] }
 0x2db   :  { %10268 = vmatpush3.bf16.msra.mxu1 %v11132_v54  ;;  %8103 = vmatmul.mubr.bf16.vlgmr.msra.gmra.mrb[76].mxu0 %v341_v0  ;;  %v252_v54 = vld [vmem:[#allocation2 + $0x598] sm:$0xff]  ;;  %v11165_v0 = vld [vmem:[#allocation5 + $0x1540] sm:$0xff]  }
 0x2dc   :  { %10297 = vmatprep.subr.bf16.mxu1 %v11134_v63  ;;  %10276 = vmatpush3.bf16.msra.mxu0 %v11135_v1  ;;  %v348_v51 = vpack.c.bf16 %v252_v54, %v156_v50  ;;  %v11170_v1 = vld [vmem:[#allocation5 + $0x15c8] sm:$0xff]   ;;  %v253_v54 = vld [vmem:[#allocation2 + $0x5a0] sm:$0xff] }
 0x2dd   :  { %10277 = vmatprep.subr.bf16.mxu0 %v11137_v8  ;;  %8184 = vmatprep.mubr.bf16.mxu0 %v346_v56  ;;  %v11171_v8 = vld [vmem:[#allocation5 + $0x1508] sm:$0xff]   ;;  %v159_v56 = vld [vmem:[#allocation2 + $0x2b0] sm:$0xff]  ;;  %v349_v58 = vpack.c.bf16 %v253_v54, %v157_v47 }
 0x2de   :  { %8144 = vmatmul.mubr.bf16.vlgmr.msra.gmra.mrb[76].mxu1 %v343_v2  ;;  %v11168_v2 = vld [vmem:[#allocation5 + $0x1580] sm:$0xff]   ;;  %v163_v47 = vld [vmem:[#allocation2 + $0x2d0] sm:$0xff] }
 0x2df   :  { %10298 = vmatpush3.bf16.msra.mxu1 %v11136_v6  ;;  %8225 = vmatprep.mubr.bf16.mxu1 %v348_v51  ;;  %v255_v51 = vld [vmem:[#allocation2 + $0x5b0] sm:$0xff] }
 0x2e0   :  { %10299 = vmatprep.subr.bf16.mxu1 %v11138_v5  ;;  %10278 = vmatpush3.bf16.msra.mxu0 %v11139_v11  ;;  %v11172_v5 = vld [vmem:[#allocation5 + $0x1588] sm:$0xff]   ;;  %v351_v53 = vpack.c.bf16 %v255_v51, %v159_v56  ;;  %v11229_v56 = vld [vmem:[#allocation5 + $0x1740] sm:$0xff]  }
 0x2e1   :  { %10279 = vmatprep.subr.bf16.mxu0 %v11141_v15  ;;  %v11230_v51 = vld [vmem:[#allocation5 + $0x17c0] sm:$0xff]  }
 0x2e3   :  { %10300 = vmatpush3.bf16.msra.mxu1 %v11140_v9 }
 0x2e4   :  { %10301 = vmatprep.subr.bf16.mxu1 %v11142_v18  ;;  %10280 = vmatpush3.bf16.msra.mxu0 %v11143_v20 }
 0x2e5   :  { %10281 = vmatprep.subr.bf16.mxu0 %v11145_v26 }
 0x2e6   :  { %v9983_v3 = vpop.f32.mrb[52].mxu0 }
 0x2e7   :  { %v9984_v7 = vpop.f32.mrb[53].mxu0  ;;  %10302 = vmatpush3.bf16.msra.mxu1 %v11144_v22  ;;  %v11177_v22 = vld [vmem:[#allocation5 + $0x1558] sm:$0xff]  }
 0x2e8   :  { %v9985_v13 = vadd.f32 %v9984_v7, %v9983_v3  ;;  %v9986_v17 = vpop.f32.mrb[54].mxu0  ;;  %10303 = vmatprep.subr.bf16.mxu1 %v11146_v29  ;;  %10282 = vmatpush3.bf16.msra.mxu0 %v11147_v32  ;;  %v11173_v7 = vld [vmem:[#allocation5 + $0x1550] sm:$0xff]   ;;  %v11182_v32 = vld [vmem:[#allocation5 + $0x15e0] sm:$0xff]  }
 0x2e9   :  { %v9987_v21 = vpop.f32.mrb[55].mxu0  ;;  %10283 = vmatprep.subr.bf16.mxu0 %v11149_v34  ;;  %v11184_v34 = vld [vmem:[#allocation5 + $0x15a0] sm:$0xff]  }
 0x2ea   :  { %v7613_v19 = vadd.f32 %v9985_v13, %v11549_v28  ;;  %v9988_v24 = vadd.f32 %v9987_v21, %v9986_v17  ;;  %v11148_v28 = vld [vmem:[#allocation5 + $0x1498] sm:$0xff]   ;;  %v11175_v17 = vld [vmem:[#allocation5 + $0x1510] sm:$0xff]  }
 0x2eb   :  { %10304 = vmatpush3.bf16.msra.mxu1 %v11148_v28  ;;  %v11183_v28 = vld [vmem:[#allocation5 + $0x1520] sm:$0xff]  }
 0x2ec   :  { %v10005_v10 = vpop.f32.mrb[52].mxu1  ;;  %v7616_v30 = vadd.f32 %v9988_v24, %v11552_v38  ;;  %10305 = vmatprep.subr.bf16.mxu1 %v11150_v36  ;;  %10284 = vmatpush3.bf16.msra.mxu0 %v11151_v37  ;;  %v11155_v38 = vld [vmem:[#allocation5 + $0x1428] sm:$0xff]  }
 0x2ed   :  { %v10006_v14 = vpop.f32.mrb[53].mxu1  ;;  %10285 = vmatprep.subr.bf16.mxu0 %v11153_v39  ;;  %v11185_v36 = vld [vmem:[#allocation5 + $0x1568] sm:$0xff]   ;;  %v11189_v39 = vld [vmem:[#allocation5 + $0x1570] sm:$0xff]  }
 0x2ee   :  { %v10007_v12 = vadd.f32 %v10006_v14, %v10005_v10  ;;  %v10008_v16 = vpop.f32.mrb[54].mxu1  ;;  %v11174_v14 = vld [vmem:[#allocation5 + $0x15d0] sm:$0xff]   ;;  %v11186_v37 = vld [vmem:[#allocation5 + $0x15e8] sm:$0xff]  }
 0x2ef   :  { %v10009_v25 = vpop.f32.mrb[55].mxu1  ;;  %10306 = vmatpush3.bf16.msra.mxu1 %v11152_v31  ;;  %v11188_v31 = vld [vmem:[#allocation5 + $0x15a8] sm:$0xff]  }
 0x2f0   :  { %v11555_v23 = vadd.f32 %v10007_v12, %v7613_v19  ;;  %v10010_v27 = vadd.f32 %v10009_v25, %v10008_v16  ;;  %10307 = vmatprep.subr.bf16.mxu1 %v11154_v35  ;;  %10286 = vmatpush3.bf16.msra.mxu0 %v11155_v38  ;;  %v11176_v19 = vld [vmem:[#allocation5 + $0x1590] sm:$0xff]   ;;  %v11178_v25 = vld [vmem:[#allocation5 + $0x15d8] sm:$0xff]  }
 0x2f1   :  { %10287 = vmatprep.subr.bf16.mxu0 %v11157_v44  ;;  %v11190_v35 = vld [vmem:[#allocation5 + $0x15f0] sm:$0xff]   ;;  %v11193_v44 = vld [vmem:[#allocation5 + $0x1578] sm:$0xff]  }
 0x2f2   :  { %v11558_v33 = vadd.f32 %v10010_v27, %v7616_v30  ;;  %v11179_v27 = vld [vmem:[#allocation5 + $0x1518] sm:$0xff]   ;;  %v11181_v30 = vld [vmem:[#allocation5 + $0x1560] sm:$0xff]   ;;  %v11191_v38 = vld [vmem:[#allocation5 + $0x1530] sm:$0xff]  }
 0x2f3   :  { %10308 = vmatpush3.bf16.msra.mxu1 %v11156_v42  ;;  %v11192_v42 = vld [vmem:[#allocation5 + $0x15b0] sm:$0xff]  }
 0x2f4   :  { %10309 = vmatprep.subr.bf16.mxu1 %v11158_v40  ;;  %10288 = vmatpush3.bf16.msra.mxu0 %v11159_v46  ;;  %v11194_v40 = vld [vmem:[#allocation5 + $0x15f8] sm:$0xff]  }
 0x2f5   :  { %10289 = vmatprep.subr.bf16.mxu0 %v11161_v48  ;;  %v11195_v46 = vld [vmem:[#allocation5 + $0x1538] sm:$0xff]   ;;  %v158_v48 = vld [vmem:[#allocation2 + $0x2a8] sm:$0xff] }
 0x2f7   :  { %10310 = vmatpush3.bf16.msra.mxu1 %v11160_v41  ;;  %v11196_v41 = vld [vmem:[#allocation5 + $0x15b8] sm:$0xff]  }
 0x2f8   :  { %10311 = vmatprep.subr.bf16.mxu1 %v11162_v49  ;;  %10290 = vmatpush3.bf16.msra.mxu0 %v11163_v45  ;;  %v254_v49 = vld [vmem:[#allocation2 + $0x5a8] sm:$0xff] }
 0x2f9   :  { %10319 = vmatprep.subr.bf16.mxu0 %v11165_v0  ;;  %v350_v45 = vpack.c.bf16 %v254_v49, %v158_v48  ;;  %v11201_v0 = vld [vmem:[#allocation5 + $0x1648] sm:$0xff]   ;;  %v260_v48 = vld [vmem:[#allocation2 + $0x5d8] sm:$0xff]  ;;  %v161_v49 = vld [vmem:[#allocation2 + $0x2c0] sm:$0xff] }
 0x2fb   :  { %10312 = vmatpush3.bf16.msra.mxu1 %v11164_v43  ;;  %8185 = vmatmul.mubr.bf16.vlgmr.msra.gmra.mrb[80].mxu0 %v345_v55  ;;  %v160_v43 = vld [vmem:[#allocation2 + $0x2b8] sm:$0xff]  ;;  %v11198_v55 = vld [vmem:[#allocation5 + $0x16c0] sm:$0xff]  }
 0x2fc   :  { %10341 = vmatprep.subr.bf16.mxu1 %v11166_v59  ;;  %10320 = vmatpush3.bf16.msra.mxu0 %v11167_v61  ;;  %v352_v50 = vpack.c.bf16 %v256_v52, %v160_v43  ;;  %v11202_v59 = vld [vmem:[#allocation5 + $0x16c8] sm:$0xff]  }
 0x2fd   :  { %10321 = vmatprep.subr.bf16.mxu0 %v11169_v4  ;;  %8266 = vmatprep.mubr.bf16.mxu0 %v350_v45  ;;  %v257_v45 = vld [vmem:[#allocation2 + $0x5c0] sm:$0xff] }
 0x2fe   :  { %8226 = vmatmul.mubr.bf16.vlgmr.msra.gmra.mrb[80].mxu1 %v347_v62  ;;  %v11200_v62 = vld [vmem:[#allocation5 + $0x1680] sm:$0xff]   ;;  %v353_v52 = vpack.c.bf16 %v257_v45, %v161_v49  ;;  %v263_v45 = vld [vmem:[#allocation2 + $0x5f0] sm:$0xff] }
 0x2ff   :  { %10342 = vmatpush3.bf16.msra.mxu1 %v11168_v2  ;;  %8307 = vmatprep.mubr.bf16.mxu1 %v352_v50  ;;  %v11203_v2 = vld [vmem:[#allocation5 + $0x1608] sm:$0xff]   ;;  %v259_v50 = vld [vmem:[#allocation2 + $0x5d0] sm:$0xff] }
 0x300   :  { %10343 = vmatprep.subr.bf16.mxu1 %v11170_v1  ;;  %10322 = vmatpush3.bf16.msra.mxu0 %v11171_v8  ;;  %v355_v54 = vpack.c.bf16 %v259_v50, %v163_v47 }
 0x301   :  { %10323 = vmatprep.subr.bf16.mxu0 %v11173_v7  ;;  %v11207_v7 = vld [vmem:[#allocation5 + $0x1610] sm:$0xff]  }
 0x303   :  { %10344 = vmatpush3.bf16.msra.mxu1 %v11172_v5  ;;  %v11206_v5 = vld [vmem:[#allocation5 + $0x16d0] sm:$0xff]  }
 0x304   :  { %10345 = vmatprep.subr.bf16.mxu1 %v11174_v14  ;;  %10324 = vmatpush3.bf16.msra.mxu0 %v11175_v17  ;;  %v11208_v14 = vld [vmem:[#allocation5 + $0x1690] sm:$0xff]  }
 0x305   :  { %10325 = vmatprep.subr.bf16.mxu0 %v11177_v22  ;;  %v11211_v22 = vld [vmem:[#allocation5 + $0x1618] sm:$0xff]  }
 0x306   :  { %v10027_v63 = vpop.f32.mrb[56].mxu0 }
 0x307   :  { %v10028_v3 = vpop.f32.mrb[57].mxu0  ;;  %10346 = vmatpush3.bf16.msra.mxu1 %v11176_v19 }
 0x308   :  { %v10029_v10 = vadd.f32 %v10028_v3, %v10027_v63  ;;  %v10030_v13 = vpop.f32.mrb[58].mxu0  ;;  %10347 = vmatprep.subr.bf16.mxu1 %v11178_v25  ;;  %10326 = vmatpush3.bf16.msra.mxu0 %v11179_v27  ;;  %v11204_v63 = vld [vmem:[#allocation5 + $0x1688] sm:$0xff]   ;;  %v11212_v25 = vld [vmem:[#allocation5 + $0x1698] sm:$0xff]   ;;  %v11214_v27 = vld [vmem:[#allocation5 + $0x16e0] sm:$0xff]  }
 0x309   :  { %v10031_v18 = vpop.f32.mrb[59].mxu0  ;;  %10327 = vmatprep.subr.bf16.mxu0 %v11181_v30  ;;  %v11216_v30 = vld [vmem:[#allocation5 + $0x16a0] sm:$0xff]  }
 0x30a   :  { %v7695_v15 = vadd.f32 %v10029_v10, %v11555_v23  ;;  %v10032_v20 = vadd.f32 %v10031_v18, %v10030_v13  ;;  %v11180_v23 = vld [vmem:[#allocation5 + $0x1598] sm:$0xff]  }
 0x30b   :  { %10348 = vmatpush3.bf16.msra.mxu1 %v11180_v23  ;;  %v11215_v23 = vld [vmem:[#allocation5 + $0x1620] sm:$0xff]  }
 0x30c   :  { %v10049_v6 = vpop.f32.mrb[56].mxu1  ;;  %v7698_v26 = vadd.f32 %v10032_v20, %v11558_v33  ;;  %10349 = vmatprep.subr.bf16.mxu1 %v11182_v32  ;;  %10328 = vmatpush3.bf16.msra.mxu0 %v11183_v28  ;;  %v11187_v33 = vld [vmem:[#allocation5 + $0x1528] sm:$0xff]   ;;  %v11210_v20 = vld [vmem:[#allocation5 + $0x16d8] sm:$0xff]  }
 0x30d   :  { %v10050_v11 = vpop.f32.mrb[57].mxu1  ;;  %10329 = vmatprep.subr.bf16.mxu0 %v11185_v36  ;;  %v11217_v32 = vld [vmem:[#allocation5 + $0x1668] sm:$0xff]   ;;  %v11221_v36 = vld [vmem:[#allocation5 + $0x1670] sm:$0xff]  }
 0x30e   :  { %v10051_v9 = vadd.f32 %v10050_v11, %v10049_v6  ;;  %v10052_v12 = vpop.f32.mrb[58].mxu1  ;;  %v11205_v6 = vld [vmem:[#allocation5 + $0x1650] sm:$0xff]   ;;  %v11218_v28 = vld [vmem:[#allocation5 + $0x16e8] sm:$0xff]  }
 0x30f   :  { %v10053_v21 = vpop.f32.mrb[59].mxu1  ;;  %10350 = vmatpush3.bf16.msra.mxu1 %v11184_v34  ;;  %v11219_v34 = vld [vmem:[#allocation5 + $0x1628] sm:$0xff]  }
 0x310   :  { %v11561_v16 = vadd.f32 %v10051_v9, %v7695_v15  ;;  %v10054_v24 = vadd.f32 %v10053_v21, %v10052_v12  ;;  %10351 = vmatprep.subr.bf16.mxu1 %v11186_v37  ;;  %10330 = vmatpush3.bf16.msra.mxu0 %v11187_v33  ;;  %v11209_v12 = vld [vmem:[#allocation5 + $0x1658] sm:$0xff]   ;;  %v11222_v37 = vld [vmem:[#allocation5 + $0x16f0] sm:$0xff]  }
 0x311   :  { %10331 = vmatprep.subr.bf16.mxu0 %v11189_v39  ;;  %v11223_v33 = vld [vmem:[#allocation5 + $0x1630] sm:$0xff]   ;;  %v11225_v39 = vld [vmem:[#allocation5 + $0x1678] sm:$0xff]  }
 0x312   :  { %v11564_v29 = vadd.f32 %v10054_v24, %v7698_v26 }
 0x313   :  { %10352 = vmatpush3.bf16.msra.mxu1 %v11188_v31  ;;  %v11224_v31 = vld [vmem:[#allocation5 + $0x16b0] sm:$0xff]  }
 0x314   :  { %10353 = vmatprep.subr.bf16.mxu1 %v11190_v35  ;;  %10332 = vmatpush3.bf16.msra.mxu0 %v11191_v38  ;;  %v11226_v35 = vld [vmem:[#allocation5 + $0x16f8] sm:$0xff]  }
 0x315   :  { %10333 = vmatprep.subr.bf16.mxu0 %v11193_v44  ;;  %v11227_v38 = vld [vmem:[#allocation5 + $0x1638] sm:$0xff]   ;;  %v162_v44 = vld [vmem:[#allocation2 + $0x2c8] sm:$0xff] }
 0x317   :  { %10354 = vmatpush3.bf16.msra.mxu1 %v11192_v42  ;;  %v11228_v42 = vld [vmem:[#allocation5 + $0x16b8] sm:$0xff]  }
 0x318   :  { %10355 = vmatprep.subr.bf16.mxu1 %v11194_v40  ;;  %10334 = vmatpush3.bf16.msra.mxu0 %v11195_v46  ;;  %v258_v40 = vld [vmem:[#allocation2 + $0x5c8] sm:$0xff]  ;;  %v164_v46 = vld [vmem:[#allocation2 + $0x2d8] sm:$0xff] }
 0x319   :  { %10363 = vmatprep.subr.bf16.mxu0 %v11197_v60  ;;  %v356_v43 = vpack.c.bf16 %v260_v48, %v164_v46  ;;  %v11233_v60 = vld [vmem:[#allocation5 + $0x1748] sm:$0xff]   ;;  %v165_v46 = vld [vmem:[#allocation2 + $0x2e0] sm:$0xff]  ;;  %v167_v48 = vld [vmem:[#allocation2 + $0x2f0] sm:$0xff] }
 0x31b   :  { %10356 = vmatpush3.bf16.msra.mxu1 %v11196_v41  ;;  %8267 = vmatmul.mubr.bf16.vlgmr.msra.gmra.mrb[84].mxu0 %v349_v58  ;;  %v354_v41 = vpack.c.bf16 %v258_v40, %v162_v44  ;;  %v11231_v58 = vld [vmem:[#allocation5 + $0x1700] sm:$0xff]  }
 0x31c   :  { %10385 = vmatprep.subr.bf16.mxu1 %v11198_v55  ;;  %10364 = vmatpush3.bf16.msra.mxu0 %v11199_v57  ;;  %v11234_v57 = vld [vmem:[#allocation5 + $0x17c8] sm:$0xff]  }
 0x31d   :  { %10365 = vmatprep.subr.bf16.mxu0 %v11201_v0  ;;  %8348 = vmatprep.mubr.bf16.mxu0 %v354_v41  ;;  %v11235_v0 = vld [vmem:[#allocation5 + $0x1708] sm:$0xff]   ;;  %v261_v41 = vld [vmem:[#allocation2 + $0x5e0] sm:$0xff] }
 0x31e   :  { %8308 = vmatmul.mubr.bf16.vlgmr.msra.gmra.mrb[84].mxu1 %v351_v53  ;;  %v11232_v53 = vld [vmem:[#allocation5 + $0x1780] sm:$0xff]   ;;  %v357_v49 = vpack.c.bf16 %v261_v41, %v165_v46 }
 0x31f   :  { %10386 = vmatpush3.bf16.msra.mxu1 %v11200_v62  ;;  %8389 = vmatprep.mubr.bf16.mxu1 %v356_v43  ;;  %v359_v43 = vpack.c.bf16 %v263_v45, %v167_v48 }
 0x320   :  { %10387 = vmatprep.subr.bf16.mxu1 %v11202_v59  ;;  %10366 = vmatpush3.bf16.msra.mxu0 %v11203_v2 }
 0x321   :  { %10367 = vmatprep.subr.bf16.mxu0 %v11205_v6 }
 0x323   :  { %10388 = vmatpush3.bf16.msra.mxu1 %v11204_v63  ;;  %v11237_v63 = vld [vmem:[#allocation5 + $0x1750] sm:$0xff]  }
 0x324   :  { %10389 = vmatprep.subr.bf16.mxu1 %v11206_v5  ;;  %10368 = vmatpush3.bf16.msra.mxu0 %v11207_v7  ;;  %v11240_v7 = vld [vmem:[#allocation5 + $0x1790] sm:$0xff]  }
 0x325   :  { %10369 = vmatprep.subr.bf16.mxu0 %v11209_v12 }
 0x327   :  { %v10071_v61 = vpop.f32.mrb[60].mxu0  ;;  %10390 = vmatpush3.bf16.msra.mxu1 %v11208_v14 }
 0x328   :  { %v10072_v1 = vpop.f32.mrb[61].mxu0  ;;  %10391 = vmatprep.subr.bf16.mxu1 %v11210_v20  ;;  %10370 = vmatpush3.bf16.msra.mxu0 %v11211_v22  ;;  %v11243_v20 = vld [vmem:[#allocation5 + $0x1718] sm:$0xff]   ;;  %v11245_v22 = vld [vmem:[#allocation5 + $0x1760] sm:$0xff]  }
 0x329   :  { %v10073_v8 = vadd.f32 %v10072_v1, %v10071_v61  ;;  %v10074_v11 = vpop.f32.mrb[62].mxu0  ;;  %v11236_v61 = vld [vmem:[#allocation5 + $0x1788] sm:$0xff]  }
 0x32a   :  { %v10075_v15 = vpop.f32.mrb[63].mxu0 }
 0x32b   :  { %v7777_v9 = vadd.f32 %v10073_v8, %v11561_v16  ;;  %v10076_v18 = vadd.f32 %v10075_v15, %v10074_v11  ;;  %v11213_v16 = vld [vmem:[#allocation5 + $0x1660] sm:$0xff]   ;;  %10392 = vmatpush3.bf16.msra.mxu1 %v11212_v25  ;;  %v11238_v8 = vld [vmem:[#allocation5 + $0x17d0] sm:$0xff]   ;;  %v11241_v15 = vld [vmem:[#allocation5 + $0x1758] sm:$0xff]  }
 0x32c   :  { %10371 = vmatprep.subr.bf16.mxu0 %v11213_v16  ;;  %10393 = vmatprep.subr.bf16.mxu1 %v11214_v27  ;;  %v11247_v25 = vld [vmem:[#allocation5 + $0x1720] sm:$0xff]   ;;  %v11249_v27 = vld [vmem:[#allocation5 + $0x1768] sm:$0xff]  }
 0x32d   :  { %v10093_v4 = vpop.f32.mrb[60].mxu1  ;;  %v7780_v24 = vadd.f32 %v10076_v18, %v11564_v29  ;;  %10372 = vmatpush3.bf16.msra.mxu0 %v11215_v23  ;;  %v11220_v29 = vld [vmem:[#allocation5 + $0x16a8] sm:$0xff]   ;;  %v11242_v18 = vld [vmem:[#allocation5 + $0x17d8] sm:$0xff]   ;;  %v11248_v16 = vld [vmem:[#allocation5 + $0x17a0] sm:$0xff]  }
 0x32e   :  { %v10094_v3 = vpop.f32.mrb[61].mxu1  ;;  %10373 = vmatprep.subr.bf16.mxu0 %v11217_v32  ;;  %v11250_v23 = vld [vmem:[#allocation5 + $0x17e8] sm:$0xff]   ;;  %v11253_v32 = vld [vmem:[#allocation5 + $0x1770] sm:$0xff]  }
 0x32f   :  { %v10095_v10 = vadd.f32 %v10094_v3, %v10093_v4  ;;  %v10096_v13 = vpop.f32.mrb[62].mxu1  ;;  %10394 = vmatpush3.bf16.msra.mxu1 %v11216_v30  ;;  %v11252_v30 = vld [vmem:[#allocation5 + $0x17a8] sm:$0xff]  }
 0x330   :  { %v10097_v19 = vpop.f32.mrb[63].mxu1  ;;  %10395 = vmatprep.subr.bf16.mxu1 %v11218_v28  ;;  %v11254_v28 = vld [vmem:[#allocation5 + $0x17f0] sm:$0xff]  }
 0x331   :  { %v11567_v17 = vadd.f32 %v10095_v10, %v7777_v9  ;;  %v10098_v21 = vadd.f32 %v10097_v19, %v10096_v13  ;;  %10374 = vmatpush3.bf16.msra.mxu0 %v11219_v34  ;;  %v11239_v10 = vld [vmem:[#allocation5 + $0x1710] sm:$0xff]  }
 0x332   :  { %10375 = vmatprep.subr.bf16.mxu0 %v11221_v36  ;;  %v11255_v34 = vld [vmem:[#allocation5 + $0x1730] sm:$0xff]   ;;  %v11257_v36 = vld [vmem:[#allocation5 + $0x1778] sm:$0xff]  }
 0x333   :  { %v11570_v26 = vadd.f32 %v10098_v21, %v7780_v24  ;;  %10396 = vmatpush3.bf16.msra.mxu1 %v11220_v29  ;;  %v11246_v24 = vld [vmem:[#allocation5 + $0x17e0] sm:$0xff]   ;;  %v11256_v29 = vld [vmem:[#allocation5 + $0x17b0] sm:$0xff]  }
 0x334   :  { %10397 = vmatprep.subr.bf16.mxu1 %v11222_v37  ;;  %v11258_v37 = vld [vmem:[#allocation5 + $0x17f8] sm:$0xff]  }
 0x335   :  { %10376 = vmatpush3.bf16.msra.mxu0 %v11223_v33  ;;  %v11259_v33 = vld [vmem:[#allocation5 + $0x1738] sm:$0xff]  }
 0x336   :  { %10377 = vmatprep.subr.bf16.mxu0 %v11225_v39  ;;  %v166_v39 = vld [vmem:[#allocation2 + $0x2e8] sm:$0xff] }
 0x337   :  { %10398 = vmatpush3.bf16.msra.mxu1 %v11224_v31  ;;  %v11260_v31 = vld [vmem:[#allocation5 + $0x17b8] sm:$0xff]  }
 0x338   :  { %10399 = vmatprep.subr.bf16.mxu1 %v11226_v35  ;;  %v262_v35 = vld [vmem:[#allocation2 + $0x5e8] sm:$0xff] }
 0x339   :  { %10378 = vmatpush3.bf16.msra.mxu0 %v11227_v38  ;;  %v168_v38 = vld [vmem:[#allocation2 + $0x2f8] sm:$0xff]  ;;  %v358_v44 = vpack.c.bf16 %v262_v35, %v166_v39 }
 0x33a   :  { %10407 = vmatprep.subr.bf16.mxu0 %v11229_v56 }
 0x33b   :  { %10400 = vmatpush3.bf16.msra.mxu1 %v11228_v42  ;;  %v264_v42 = vld [vmem:[#allocation2 + $0x5f8] sm:$0xff] }
 0x33c   :  { %8349 = vmatmul.mubr.bf16.vlgmr.msra.gmra.mrb[88].mxu0 %v353_v52  ;;  %10429 = vmatprep.subr.bf16.mxu1 %v11230_v51  ;;  %v360_v40 = vpack.c.bf16 %v264_v42, %v168_v38  ;;  %v11266_v38 = vld [vmem:[%s11619_s3 + $0x28] sm:$0xff]   ;;  %v11267_v42 = vld [vmem:[%s11619_s3 + $0x30] sm:$0xff]  }
 0x33d   :  { %10408 = vmatpush3.bf16.msra.mxu0 %v11231_v58  ;;  %8430 = vmatprep.mubr.bf16.mxu0 %v358_v44  ;;  %v11268_v44 = vld [vmem:[%s11619_s3 + $0x38] sm:$0xff]  }
 0x33e   :  { %8390 = vmatmul.mubr.bf16.vlgmr.msra.gmra.mrb[88].mxu1 %v355_v54  ;;  %10409 = vmatprep.subr.bf16.mxu0 %v11233_v60 }
 0x33f   :  { %10430 = vmatpush3.bf16.msra.mxu1 %v11232_v53  ;;  %8471 = vmatprep.mubr.bf16.mxu1 %v360_v40 }
 0x340   :  { %10431 = vmatprep.subr.bf16.mxu1 %v11234_v57 }
 0x341   :  { %10410 = vmatpush3.bf16.msra.mxu0 %v11235_v0 }
 0x342   :  { %10411 = vmatprep.subr.bf16.mxu0 %v11237_v63 }
 0x343   :  { %10432 = vmatpush3.bf16.msra.mxu1 %v11236_v61 }
 0x344   :  { %10433 = vmatprep.subr.bf16.mxu1 %v11238_v8 }
 0x345   :  { %10412 = vmatpush3.bf16.msra.mxu0 %v11239_v10 }
 0x346   :  { %10413 = vmatprep.subr.bf16.mxu0 %v11241_v15 }
 0x347   :  { %10434 = vmatpush3.bf16.msra.mxu1 %v11240_v7 }
 0x348   :  { %10435 = vmatprep.subr.bf16.mxu1 %v11242_v18 }
 0x349   :  { %10414 = vmatpush3.bf16.msra.mxu0 %v11243_v20  ;;  %v11395_v20 = vmov 0.0  }
 0x34a   :  { %10415 = vmatprep.subr.bf16.mxu0 %v11245_v22  ;;  %v11264_v22 = vld [vmem:[%s11619_s3 + $0x18] sm:$0xff]  }
 0x34d   :  { %v10137_v62 = vpop.f32.mrb[64].mxu1  ;;  %10416 = vmatpush3.bf16.msra.mxu0 %v11247_v25 }
 0x34e   :  { %v10115_v55 = vpop.f32.mrb[64].mxu0  ;;  %v10138_v4 = vpop.f32.mrb[65].mxu1  ;;  %10417 = vmatprep.subr.bf16.mxu0 %v11249_v27 }
 0x34f   :  { %v10116_v59 = vpop.f32.mrb[65].mxu0  ;;  %v10139_v1 = vadd.f32 %v10138_v4, %v10137_v62  ;;  %v10140_v5 = vpop.f32.mrb[66].mxu1 }
 0x350   :  { %v10117_v2 = vadd.f32 %v10116_v59, %v10115_v55  ;;  %v10118_v6 = vpop.f32.mrb[66].mxu0  ;;  %v10141_v14 = vpop.f32.mrb[67].mxu1 }
 0x351   :  { %v10119_v11 = vpop.f32.mrb[67].mxu0  ;;  %v10142_v12 = vadd.f32 %v10141_v14, %v10140_v5 }
 0x352   :  { %v7859_v3 = vadd.f32 %v10117_v2, %v11567_v17  ;;  %v10120_v13 = vadd.f32 %v10119_v11, %v10118_v6  ;;  %v11244_v17 = vld [vmem:[#allocation5 + $0x1798] sm:$0xff]  }
 0x353   :  { %10436 = vmatpush3.bf16.msra.mxu1 %v11244_v17  ;;  %v11262_v17 = vld [vmem:[%s11619_s3 + $0x8] sm:$0xff]  }
 0x354   :  { %v11573_v9 = vadd.f32 %v10139_v1, %v7859_v3  ;;  %v7862_v19 = vadd.f32 %v10120_v13, %v11570_v26  ;;  %10437 = vmatprep.subr.bf16.mxu1 %v11246_v24  ;;  %v11251_v26 = vld [vmem:[#allocation5 + $0x1728] sm:$0xff]   ;;  %v11265_v24 = vld [vmem:[%s11619_s3 + $0x20] sm:$0xff]  }
 0x355   :  { %10418 = vmatpush3.bf16.msra.mxu0 %v11251_v26 }
 0x356   :  { %v11576_v21 = vadd.f32 %v10142_v12, %v7862_v19  ;;  %10419 = vmatprep.subr.bf16.mxu0 %v11253_v32  ;;  %v11261_v19 = vld [vmem:[%s11619_s3] sm:$0xff]  }
 0x357   :  { %10438 = vmatpush3.bf16.msra.mxu1 %v11248_v16 }
 0x358   :  { %10439 = vmatprep.subr.bf16.mxu1 %v11250_v23 }
 0x359   :  { %10420 = vmatpush3.bf16.msra.mxu0 %v11255_v34 }
 0x35a   :  { %10421 = vmatprep.subr.bf16.mxu0 %v11257_v36 }
 0x35b   :  { %10440 = vmatpush3.bf16.msra.mxu1 %v11252_v30 }
 0x35c   :  { %10441 = vmatprep.subr.bf16.mxu1 %v11254_v28 }
 0x35d   :  { %10422 = vmatpush3.bf16.msra.mxu0 %v11259_v33 }
 0x35e   :  { %10460 = vmatprep.subr.bf16.mxu0 %v11395_v20 }
 0x35f   :  { %10442 = vmatpush3.bf16.msra.mxu1 %v11256_v29 }
 0x360   :  { %10443 = vmatprep.subr.bf16.mxu1 %v11258_v37  ;;  %8431 = vmatmul.mubr.bf16.vlgmr.msra.gmra.mrb[92].mxu0 %v357_v49 }
 0x361   :  { %10461 = vmatpush3.bf16.msra.mxu0 %v11261_v19  ;;  %10476 = vmatprep.mubr.msk.bf16.mxu0 %vm11396_vm0, %v11395_v20 }
 0x362   :  { %10462 = vmatprep.subr.bf16.mxu0 %v11395_v20 }
 0x363   :  { %10444 = vmatpush3.bf16.msra.mxu1 %v11260_v31 }
 0x365   :  { %10463 = vmatpush3.bf16.msra.mxu0 %v11262_v17 }
 0x366   :  { %8472 = vmatmul.mubr.bf16.vlgmr.msra.gmra.mrb[92].mxu1 %v359_v43  ;;  %10464 = vmatprep.subr.bf16.mxu0 %v11395_v20 }
 0x36e   :  { %v10159_v52 = vpop.f32.mrb[68].mxu0 }
 0x36f   :  { %v10160_v50 = vpop.f32.mrb[69].mxu0 }
 0x370   :  { %v10161_v54 = vadd.f32 %v10160_v50, %v10159_v52  ;;  %v10162_v51 = vpop.f32.mrb[70].mxu0 }
 0x371   :  { %v10181_v47 = vpop.f32.mrb[68].mxu1  ;;  %v10163_v60 = vpop.f32.mrb[71].mxu0 }
 0x372   :  { %v10182_v56 = vpop.f32.mrb[69].mxu1  ;;  %v7941_v55 = vadd.f32 %v10161_v54, %v11573_v9  ;;  %v10164_v57 = vadd.f32 %v10163_v60, %v10162_v51 }
 0x373   :  { %v10183_v58 = vadd.f32 %v10182_v56, %v10181_v47  ;;  %v10184_v53 = vpop.f32.mrb[70].mxu1 }
 0x374   :  { %v10185_v62 = vpop.f32.mrb[71].mxu1  ;;  %v7944_v61 = vadd.f32 %v10164_v57, %v11576_v21  ;;  %v11263_v21 = vld [vmem:[%s11619_s3 + $0x10] sm:$0xff]   ;;  %s11397_s3 = smov [#allocation10]  }
 0x375   :  { %v10186_v0 = vadd.f32 %v10185_v62, %v10184_v53  ;;  %v7982_v59 = vadd.f32 %v10183_v58, %v7941_v55  ;;  %10465 = vmatpush3.bf16.msra.mxu0 %v11263_v21  ;;  %s8603_s7 = sshll.u32 %s11397_s3, 4  ;;  %s8604_s7 = int_to_ptr.vmem [resolvable:$true] %s8603_s7 }
 0x376   :  { %10466 = vmatprep.subr.bf16.mxu0 %v11395_v20  ;;  %s11357_s8 = scalar_lea.vmem %s8604_s7, 256  ;;  %p11362_p5 = scmp.lt.s32.totalorder %s8604_s7, %s8604_s7 }
 0x377   :  { %v7985_v2 = vadd.f32 %v10186_v0, %v7944_v61  ;;  %p11358_p4 = scmp.ne.s32.totalorder %s8604_s7, %s11357_s8  ;;  %p11363_p6 = scmp.lt.s32.totalorder %s11357_s8, %s11357_s8 }
 0x379   :  { %10467 = vmatpush3.bf16.msra.mxu0 %v11264_v22  ;;  %p11364_p7 = por %p11363_p6, %p11362_p5 }
 0x37a   :  { %10468 = vmatprep.subr.bf16.mxu0 %v11395_v20 }
 0x37b   :  { %p11365_p8 = pnand %p11364_p7, %p11358_p4 }
 0x37d   :  { %10469 = vmatpush3.bf16.msra.mxu0 %v11265_v24 }
 0x37e   :  { %10470 = vmatprep.subr.bf16.mxu0 %v11395_v20 }
 0x381   :  { %10471 = vmatpush3.bf16.msra.mxu0 %v11266_v38 }
 0x382   :  { %10472 = vmatprep.subr.bf16.mxu0 %v11395_v20 }
 0x385   :  { %10473 = vmatpush3.bf16.msra.mxu0 %v11267_v42 }
 0x386   :  { %10474 = vmatprep.subr.bf16.mxu0 %v11395_v20 }
 0x389   :  { %10475 = vmatpush3.bf16.msra.mxu0 %v11268_v44 }
 0x38e   :  { %v10203_v4 = vpop.f32.mrb[72].mxu0 }
 0x38f   :  { %v10204_v1 = vpop.f32.mrb[73].mxu0 }
 0x390   :  { %v10205_v8 = vadd.f32 %v10204_v1, %v10203_v4  ;;  %v10206_v5 = vpop.f32.mrb[74].mxu0 }
 0x391   :  { %v10225_v63 = vpop.f32.mrb[72].mxu1  ;;  %v10207_v11 = vpop.f32.mrb[75].mxu0 }
 0x392   :  { %v10226_v6 = vpop.f32.mrb[73].mxu1  ;;  %v8023_v13 = vadd.f32 %v10205_v8, %v7982_v59  ;;  %v10208_v14 = vadd.f32 %v10207_v11, %v10206_v5 }
 0x393   :  { %v10227_v3 = vadd.f32 %v10226_v6, %v10225_v63  ;;  %v10228_v10 = vpop.f32.mrb[74].mxu1 }
 0x394   :  { %v10229_v7 = vpop.f32.mrb[75].mxu1  ;;  %v8026_v12 = vadd.f32 %v10208_v14, %v7985_v2 }
 0x395   :  { %v10230_v9 = vadd.f32 %v10229_v7, %v10228_v10  ;;  %v8064_v15 = vadd.f32 %v10227_v3, %v8023_v13 }
 0x397   :  { %v8067_v18 = vadd.f32 %v10230_v9, %v8026_v12 }
 0x3ae   :  { %v10247_v25 = vpop.f32.mrb[76].mxu0 }
 0x3af   :  { %v10248_v27 = vpop.f32.mrb[77].mxu0 }
 0x3b0   :  { %v10249_v23 = vadd.f32 %v10248_v27, %v10247_v25  ;;  %v10250_v30 = vpop.f32.mrb[78].mxu0 }
 0x3b1   :  { %v10269_v16 = vpop.f32.mrb[76].mxu1  ;;  %v10251_v34 = vpop.f32.mrb[79].mxu0 }
 0x3b2   :  { %v10270_v26 = vpop.f32.mrb[77].mxu1  ;;  %v8105_v29 = vadd.f32 %v10249_v23, %v8064_v15  ;;  %v10252_v36 = vadd.f32 %v10251_v34, %v10250_v30 }
 0x3b3   :  { %v10271_v32 = vadd.f32 %v10270_v26, %v10269_v16  ;;  %v10272_v28 = vpop.f32.mrb[78].mxu1 }
 0x3b4   :  { %v10273_v37 = vpop.f32.mrb[79].mxu1  ;;  %v8108_v39 = vadd.f32 %v10252_v36, %v8067_v18 }
 0x3b5   :  { %v10274_v33 = vadd.f32 %v10273_v37, %v10272_v28  ;;  %v8146_v31 = vadd.f32 %v10271_v32, %v8105_v29 }
 0x3b7   :  { %v8149_v35 = vadd.f32 %v10274_v33, %v8108_v39 }
 0x3ce   :  { %v10291_v40 = vpop.f32.mrb[80].mxu0 }
 0x3cf   :  { %v10292_v41 = vpop.f32.mrb[81].mxu0 }
 0x3d0   :  { %v10293_v48 = vadd.f32 %v10292_v41, %v10291_v40  ;;  %v10294_v45 = vpop.f32.mrb[82].mxu0 }
 0x3d1   :  { %v10313_v46 = vpop.f32.mrb[80].mxu1  ;;  %v10295_v47 = vpop.f32.mrb[83].mxu0 }
 0x3d2   :  { %v10314_v49 = vpop.f32.mrb[81].mxu1  ;;  %v8187_v50 = vadd.f32 %v10293_v48, %v8146_v31  ;;  %v10296_v54 = vadd.f32 %v10295_v47, %v10294_v45  ;;  %v9386_v48 = vld [vmem:[#allocation8] ss:$0 sm:$0xff] }
 0x3d3   :  { %v10315_v43 = vadd.f32 %v10314_v49, %v10313_v46  ;;  %v10316_v52 = vpop.f32.mrb[82].mxu1 }
 0x3d4   :  { %v10317_v56 = vpop.f32.mrb[83].mxu1  ;;  %v8190_v53 = vadd.f32 %v10296_v54, %v8149_v35 }
 0x3d5   :  { %v10318_v51 = vadd.f32 %v10317_v56, %v10316_v52  ;;  %v8228_v58 = vadd.f32 %v10315_v43, %v8187_v50 }
 0x3d7   :  { %v8231_v60 = vadd.f32 %v10318_v51, %v8190_v53 }
 0x3ee   :  { %v10335_v55 = vpop.f32.mrb[84].mxu0 }
 0x3ef   :  { %v10336_v62 = vpop.f32.mrb[85].mxu0 }
 0x3f0   :  { %v10337_v59 = vadd.f32 %v10336_v62, %v10335_v55  ;;  %v10338_v2 = vpop.f32.mrb[86].mxu0 }
 0x3f1   :  { %v10357_v57 = vpop.f32.mrb[84].mxu1  ;;  %v10339_v63 = vpop.f32.mrb[87].mxu0 }
 0x3f2   :  { %v10358_v0 = vpop.f32.mrb[85].mxu1  ;;  %v8269_v6 = vadd.f32 %v10337_v59, %v8228_v58  ;;  %v10340_v8 = vadd.f32 %v10339_v63, %v10338_v2 }
 0x3f3   :  { %v10359_v61 = vadd.f32 %v10358_v0, %v10357_v57  ;;  %v10360_v4 = vpop.f32.mrb[86].mxu1 }
 0x3f4   :  { %v10361_v1 = vpop.f32.mrb[87].mxu1  ;;  %v8272_v10 = vadd.f32 %v10340_v8, %v8231_v60 }
 0x3f5   :  { %v10362_v3 = vadd.f32 %v10361_v1, %v10360_v4  ;;  %v8310_v5 = vadd.f32 %v10359_v61, %v8269_v6 }
 0x3f7   :  { %v8313_v11 = vadd.f32 %v10362_v3, %v8272_v10 }
 0x40f   :  { %v10379_v7 = vpop.f32.mrb[88].mxu0 }
 0x410   :  { %v10380_v14 = vpop.f32.mrb[89].mxu0 }
 0x411   :  { %v10401_v13 = vpop.f32.mrb[88].mxu1  ;;  %v10381_v9 = vadd.f32 %v10380_v14, %v10379_v7  ;;  %v10382_v12 = vpop.f32.mrb[90].mxu0 }
 0x412   :  { %v10402_v15 = vpop.f32.mrb[89].mxu1  ;;  %v10383_v20 = vpop.f32.mrb[91].mxu0 }
 0x413   :  { %v10403_v18 = vadd.f32 %v10402_v15, %v10401_v13  ;;  %v10404_v19 = vpop.f32.mrb[90].mxu1  ;;  %v8351_v17 = vadd.f32 %v10381_v9, %v8310_v5  ;;  %v10384_v21 = vadd.f32 %v10383_v20, %v10382_v12 }
 0x414   :  { %v10405_v22 = vpop.f32.mrb[91].mxu1 }
 0x415   :  { %v10406_v24 = vadd.f32 %v10405_v22, %v10404_v19  ;;  %v8392_v25 = vadd.f32 %v10403_v18, %v8351_v17  ;;  %v8354_v16 = vadd.f32 %v10384_v21, %v8313_v11 }
 0x417   :  { %v8395_v27 = vadd.f32 %v10406_v24, %v8354_v16 }
 0x433   :  { %v10423_v23 = vpop.f32.mrb[92].mxu0 }
 0x434   :  { %v10424_v30 = vpop.f32.mrb[93].mxu0 }
 0x435   :  { %v10425_v32 = vadd.f32 %v10424_v30, %v10423_v23  ;;  %v10426_v34 = vpop.f32.mrb[94].mxu0 }
 0x436   :  { %v10427_v37 = vpop.f32.mrb[95].mxu0 }
 0x437   :  { %v8433_v33 = vadd.f32 %v10425_v32, %v8392_v25  ;;  %v10428_v31 = vadd.f32 %v10427_v37, %v10426_v34 }
 0x439   :  { %v10445_v26 = vpop.f32.mrb[92].mxu1  ;;  %v8436_v42 = vadd.f32 %v10428_v31, %v8395_v27 }
 0x43a   :  { %v10446_v28 = vpop.f32.mrb[93].mxu1 }
 0x43b   :  { %v10447_v29 = vadd.f32 %v10446_v28, %v10445_v26  ;;  %v10448_v36 = vpop.f32.mrb[94].mxu1 }
 0x43c   :  { %v10449_v39 = vpop.f32.mrb[95].mxu1 }
 0x43d   :  { %v10450_v35 = vadd.f32 %v10449_v39, %v10448_v36  ;;  %v8474_v38 = vadd.f32 %v10447_v29, %v8433_v33 }
 0x43f   :  { %v8477_v44 = vadd.f32 %v10450_v35, %v8436_v42  ;;  %v8480_v40 = vmax.f32 %v8474_v38, 0.0 }
 0x441   :  { %v8481_v46 = vmax.f32 %v8477_v44, 0.0 }
 0x443   :  { %v8482_v41 = vpack.c.bf16 %v8481_v46, %v8480_v40 }
 0x445   :  { %10477 = vmatmul.mubr.bf16.vlgmr.msra.gmra.mrb[96].mxu0 %v8482_v41 }
 0x518   :  { %v8588_v49 = vpop.f32.mrb[96].mxu0 }
 0x519   :  { %v8589_v45 = vadd.f32 %v9386_v48, %v8588_v49  ;;  %v10478_v43 = vpop.f32.mrb[97].mxu0 }
 0x51a   :  { %v8591_v52 = vpop.f32.mrb[98].mxu0 }
 0x51b   :  { %8596 = vst.msk [vmem:[#allocation10] sm:$0xff] %vm8595_vm1, %v8589_v45  ;;  %v8592_v47 = vadd.f32 %v9386_v48, %v8591_v52  ;;  %v10479_v50 = vpop.f32.mrb[99].mxu0 }
 0x51d   :  { %8597 = vst.msk [vmem:[#allocation10 + $0x8] sm:$0xff] %vm8595_vm1, %v8592_v47 }
 0x51e   :  { %11368 = shalt.err (!%p11365_p8)
}
 0x51f   :  { %s11369_s11 = scalar_lea.hbm %s11621_s5, 256 }
 0x520   :  { %p11370_p9 = scmp.ne.s32.totalorder %s11621_s5, %s11369_s11  ;;  %p11373_p10 = scmp.lt.u32.totalorder %s11369_s11, %s11621_s5 }
 0x522   :  { %p11375_p11 = pnand %p11373_p10, %p11370_p9 }
 0x524   :  { %11378 = shalt.err (!%p11375_p11)
}
 0x525   :  { %s11398_s16 = smov 128   ;;  %s11399_s1 = smov 8  }
 0x526   :  { %8609 = dma.vmem_to_hbm [thread:$0]  %s8604_s7, 256, %s11621_s5, [#allocation4], %s11398_s16, %s11398_s16, %s11399_s1  }
 0x527   :  { %11385 = dma.done.wait [#allocation4], 256  }
 0x528   :  { %11386 = vsyncadd [#allocation4], 4294967040 }
 0x529   :  { %8613 = vsyncpa [#allocation3], 1 }
 0x52a   :  { %8614 = vsyncpa [#allocation6], 1 }
 0x52b   :  { %8615 = vsyncpa [#allocation9], 1 }
 0x52c   :  { %8616 = vsyncpa [#allocation4], 1 }

</bundles_post_ra>
